<compile_context>
chip_gen: v5e
topology: v5e:2x2
jax: 0.10.0
libtpu: 0.0.40
codegen_flags: <defaults>
</compile_context>

<pallas_src>
import functools

import numpy as np
import jax
import jax.numpy as jnp
from jax.experimental import pallas as pl
from jax.experimental.pallas import tpu as pltpu

# ---------------- config (mirrors MFVI.__init__ / args) ----------------
ENT_DIM = 32          # ent_dim
REL_DIM = 32          # rel_dim  (== ent_dim so the torch .expand() is valid)
MEM_DIM = 32          # mem_dim  (CPD rank)
N_ENT_LABELS = 4      # self.re
N_REL_LABELS = 4      # self.rr
ITERS = 3             # args.iter
BS = 2
NE = 8                # ns == no == ne (multiple of 8 for clean sublane tiling)


# ----------------------------------------------------------------------
# Host-precomputed 0/1 selector matrices (constants of the index algebra).
#   row ij = i*n + j ; col c = (e*E + f)*R + r
# ----------------------------------------------------------------------
@functools.lru_cache(maxsize=None)
def _selectors(n, e, r):
    nn = n * n
    eer = e * e * r
    ij = np.arange(nn)
    c = np.arange(eer)
    S = (ij[:, None] // n == np.arange(n)[None, :]).astype(np.float32)        # row ij -> i
    T = (ij[:, None] % n == np.arange(n)[None, :]).astype(np.float32)         # row ij -> j
    A = (np.arange(e)[:, None] == (c[None, :] // (e * r))).astype(np.float32)  # col c -> e
    B = (np.arange(e)[:, None] == ((c[None, :] // r) % e)).astype(np.float32)  # col c -> f
    Kr = (np.arange(r)[:, None] == (c[None, :] % r)).astype(np.float32)        # col c -> r
    return dict(
        S=S, T=T,
        ST=np.ascontiguousarray(S.T), TT=np.ascontiguousarray(T.T),
        A=A, B=B, Kr=Kr,
        GA=np.ascontiguousarray(A.T), GB=np.ascontiguousarray(B.T),
        Gr=np.ascontiguousarray(Kr.T))


# ======================================================================
# Fused kernel: CPD trilinear scorer + mean-field iterations
# ======================================================================
def _mfvi_fused_kernel(sub_ref, obj_ref, rel_ref, ss_ref, os_ref, rs_ref,
                       m1_ref, m2_ref,
                       w1_ref, b1_ref, w2_ref, b2_ref, w3_ref, b3_ref,
                       w4_ref, b4_ref,
                       S_ref, T_ref, ST_ref, TT_ref, A_ref, B_ref, Kr_ref,
                       GA_ref, GB_ref, Gr_ref,
                       qs_out, qo_out, qr_out, *, iters):
    def dot(a, b):
        return jnp.dot(a, b, preferred_element_type=jnp.float32)

    m1 = m1_ref[0]                      # (n, 1)  float {0,1}
    m2 = m2_ref[0]                      # (nn, 1) float {0,1}
    S = S_ref[...]                      # (nn, n)  row ij -> i
    T = T_ref[...]                      # (nn, n)  row ij -> j

    # ---- CPD trilinear scorer (sub/obj projections at (n, rank)) ------
    # NB: BOTH sub and obj are broadcast over the object axis j (torch quirk:
    # both are unsqueezed at dim -2 and .expand()ed), so row ij uses index i.
    h1 = dot(sub_ref[0], w1_ref[...]) + b1_ref[...]          # (n, rank)
    h2 = dot(obj_ref[0], w2_ref[...]) + b2_ref[...]          # (n, rank)
    h3 = dot(rel_ref[0], w3_ref[...]) + b3_ref[...]          # (nn, rank)
    h12_row = dot(S, h1 * h2)                                # (nn, rank)
    J = dot(h12_row * h3, w4_ref[...]) + b4_ref[...]         # (nn, eer)
    J = J * m2                                               # jointscores *= mask2d

    ST = ST_ref[...]; TT = TT_ref[...]
    A = A_ref[...]; B = B_ref[...]; Kr = Kr_ref[...]
    GA = GA_ref[...]; GB = GB_ref[...]; Gr = Gr_ref[...]

    neg = jnp.float32(-10000.0)
    keep1 = m1 > 0.5
    keep2 = m2 > 0.5

    def softmax(x):
        mx = jnp.max(x, axis=-1, keepdims=True)
        ex = jnp.exp(x - mx)
        return ex * pl.reciprocal(jnp.sum(ex, axis=-1, keepdims=True),
                                  approx=True)

    qsv = ss_ref[0]                     # (n, e)
    qov = os_ref[0]                     # (n, e)
    qrv = rs_ref[0]                     # (nn, r)

    for _ in range(iters):
        qsv = jnp.where(keep1, qsv, neg)
        qov = jnp.where(keep1, qov, neg)
        qrv = jnp.where(keep2, qrv, neg)
        qs = softmax(qsv)               # (n, e)
        qo = softmax(qov)               # (n, e)
        qr = softmax(qrv)               # (nn, r)

        # Expand to the (nn, eer) index space:
        #   P[ij, c]  = qs[i, e(c)]
        #   Q[ij, c]  = qo[j, f(c)]
        #   RJ[ij, c] = qr[ij, r(c)] * J[ij, c]
        P = dot(dot(S, qs), A)          # (nn, eer)
        Q = dot(dot(T, qo), B)          # (nn, eer)
        RJ = dot(qr, Kr) * J            # (nn, eer)

        # Fs[i, e] = sum_{j,f,r} qo[j,f] qr[ij,r] J[ij,(eE+f)R+r]
        Fs = dot(ST, dot(Q * RJ, GA))   # (n, e)
        # Fo[j, f] = sum_{i,e,r} qs[i,e] qr[ij,r] J[ij,(eE+f)R+r]
        Fo = dot(TT, dot(P * RJ, GB))   # (n, e)
        # Fr[ij, r] = sum_{e,f} qs[i,e] qo[j,f] J[ij,(eE+f)R+r]
        Fr = dot(P * Q * J, Gr)         # (nn, r)

        qsv = qsv + Fs
        qov = qov + Fo
        qrv = qrv + Fr

    qs_out[0] = qsv
    qo_out[0] = qov
    qr_out[0] = qrv


# ======================================================================
# Full forward (masks / reshapes in plain JAX; everything else fused)
# ======================================================================
def mfvi_forward(params, sub_reprs, obj_reprs, rel_reprs,
                 subscores, objscores, relscores, ent_numbers):
    bs, ne, d = sub_reprs.shape
    e, r = N_ENT_LABELS, N_REL_LABELS
    nn = ne * ne
    eer = e * e * r
    d3 = rel_reprs.shape[-1]
    rank = params["w1"].shape[1]

    rel2 = rel_reprs.reshape(bs, nn, d3)
    rs2 = relscores.reshape(bs, nn, r)

    # masks (index arithmetic only -> plain JAX glue)
    mask1 = (jnp.arange(ne)[None, :] < ent_numbers[:, None]).astype(jnp.float32)
    mask2 = (mask1[:, :, None] * mask1[:, None, :]).reshape(bs, nn, 1)
    mask1 = mask1[..., None]                                   # (bs, ne, 1)

    sel = _selectors(ne, e, r)

    kern = functools.partial(_mfvi_fused_kernel, iters=ITERS)
    bidx = lambda b: (b, 0, 0)
    const = lambda b: (0, 0)
    full2 = lambda shape: pl.BlockSpec(shape, const)

    args = (sub_reprs, obj_reprs, rel2, subscores, objscores, rs2,
            mask1, mask2,
            params["w1"], params["b1"], params["w2"], params["b2"],
            params["w3"], params["b3"], params["w4"], params["b4"],
            sel["S"], sel["T"], sel["ST"], sel["TT"],
            sel["A"], sel["B"], sel["Kr"], sel["GA"], sel["GB"], sel["Gr"])

    # advisory cost estimate so XLA can overlap this tiny call with glue ops
    cpd_flops = 2 * (2 * ne * d * rank + nn * d3 * rank
                     + nn * ne * rank + nn * rank * eer)
    it_flops = 2 * (2 * nn * ne * e + 2 * nn * e * eer + nn * r * eer
                    + 2 * nn * eer * e + 2 * ne * nn * e + nn * eer * r)
    flops = int(bs * (cpd_flops + ITERS * it_flops))
    transcendentals = int(bs * ITERS * (2 * ne * e + nn * r))
    bytes_accessed = int(4 * (sum(int(np.prod(a.shape)) for a in args)
                              + bs * (2 * ne * e + nn * r)))

    qsv, qov, qrv = pl.pallas_call(
        kern,
        out_shape=(
            jax.ShapeDtypeStruct((bs, ne, e), jnp.float32),
            jax.ShapeDtypeStruct((bs, ne, e), jnp.float32),
            jax.ShapeDtypeStruct((bs, nn, r), jnp.float32),
        ),
        grid_spec=pltpu.PrefetchScalarGridSpec(
            num_scalar_prefetch=0,
            grid=(bs,),
            in_specs=[
                pl.BlockSpec((1, ne, d), bidx),      # sub_reprs
                pl.BlockSpec((1, ne, d), bidx),      # obj_reprs
                pl.BlockSpec((1, nn, d3), bidx),     # rel_reprs (flattened)
                pl.BlockSpec((1, ne, e), bidx),      # subscores
                pl.BlockSpec((1, ne, e), bidx),      # objscores
                pl.BlockSpec((1, nn, r), bidx),      # relscores (flattened)
                pl.BlockSpec((1, ne, 1), bidx),      # mask1d
                pl.BlockSpec((1, nn, 1), bidx),      # mask2d
                full2((d, rank)), full2((1, rank)),  # w1, b1
                full2((d, rank)), full2((1, rank)),  # w2, b2
                full2((d3, rank)), full2((1, rank)), # w3, b3
                full2((rank, eer)), full2((1, eer)), # w4, b4
                full2((nn, ne)), full2((nn, ne)),    # S, T
                full2((ne, nn)), full2((ne, nn)),    # ST, TT
                full2((e, eer)), full2((e, eer)),    # A, B
                full2((r, eer)),                     # Kr
                full2((eer, e)), full2((eer, e)),    # GA, GB
                full2((eer, r)),                     # Gr
            ],
            out_specs=[
                pl.BlockSpec((1, ne, e), bidx),
                pl.BlockSpec((1, ne, e), bidx),
                pl.BlockSpec((1, nn, r), bidx),
            ],
        ),
        compiler_params=pltpu.CompilerParams(
            dimension_semantics=("parallel",)),
        cost_estimate=pl.CostEstimate(flops=flops,
                                      transcendentals=transcendentals,
                                      bytes_accessed=bytes_accessed),
    )(*args)

    return qsv, qov, qrv.reshape(bs, ne, ne, r)


# ======================================================================
# Deterministic parameter init (CPDTrilinear of MFVI.ter_scorer)
# ======================================================================
def init_params(key):
    ks = jax.random.split(key, 4)

    def lin(k, din, dout):
        kw, kb = jax.random.split(k)
        w = jax.random.normal(kw, (din, dout), jnp.float32) / jnp.sqrt(din)
        b = jax.random.normal(kb, (1, dout), jnp.float32) * 0.01
        return w, b

    w1, b1 = lin(ks[0], ENT_DIM, MEM_DIM)
    w2, b2 = lin(ks[1], ENT_DIM, MEM_DIM)
    w3, b3 = lin(ks[2], REL_DIM, MEM_DIM)
    w4, b4 = lin(ks[3], MEM_DIM, N_ENT_LABELS ** 2 * N_REL_LABELS)
    return dict(w1=w1, b1=b1, w2=w2, b2=b2, w3=w3, b3=b3, w4=w4, b4=b4)


# ======================================================================
# Pure-JAX reference (mirrors the PyTorch code) for a sanity check
# ======================================================================
def reference_forward(params, sub, obj, rel, ss, os_, rs, ent_numbers):
    bs, ne, _ = sub.shape
    re_, rr = N_ENT_LABELS, N_REL_LABELS
    sub_e = jnp.broadcast_to(sub[:, :, None, :], rel.shape)
    obj_e = jnp.broadcast_to(obj[:, :, None, :], rel.shape)
    h1 = sub_e @ params["w1"] + params["b1"][0]
    h2 = obj_e @ params["w2"] + params["b2"][0]
    h3 = rel @ params["w3"] + params["b3"][0]
    J = ((h1 * h2 * h3) @ params["w4"] + params["b4"][0]
         ).reshape(bs, ne, ne, re_, re_, rr)
    mask1 = jnp.arange(ne)[None, :] < ent_numbers[:, None]
    mask2 = mask1[:, :, None] & mask1[:, None, :]
    J = J * mask2[..., None, None, None]
    qsv, qov, qrv = ss, os_, rs
    for _ in range(ITERS):
        qsv = jnp.where(mask1[..., None], qsv, -10000.0)
        qov = jnp.where(mask1[..., None], qov, -10000.0)
        qrv = jnp.where(mask2[..., None], qrv, -10000.0)
        qs = jax.nn.softmax(qsv, -1)
        qo = jax.nn.softmax(qov, -1)
        qr = jax.nn.softmax(qrv, -1)
        Fso = jnp.einsum('bijr,bijefr->bijef', qr, J)
        Fs = jnp.einsum('bjf,bijef->bie', qo, Fso)
        Fo = jnp.einsum('bie,bijef->bjf', qs, Fso)
        Fr = jnp.einsum('bie,bjf,bijefr->bijr', qs, qo, J)
        qsv = qsv + Fs
        qov = qov + Fo
        qrv = qrv + Fr
    return qsv, qov, qrv


if __name__ == "__main__":
    key = jax.random.PRNGKey(0)
    kp, k1, k2, k3, k4, k5, k6 = jax.random.split(key, 7)
    params = init_params(kp)

    sub = jax.random.normal(k1, (BS, NE, ENT_DIM), jnp.float32)
    obj = jax.random.normal(k2, (BS, NE, ENT_DIM), jnp.float32)
    rel = jax.random.normal(k3, (BS, NE, NE, REL_DIM), jnp.float32)
    ss = jax.random.normal(k4, (BS, NE, N_ENT_LABELS), jnp.float32)
    oss = jax.random.normal(k5, (BS, NE, N_ENT_LABELS), jnp.float32)
    rs = jax.random.normal(k6, (BS, NE, NE, N_REL_LABELS), jnp.float32)
    ent_numbers = jnp.array([NE, 5], dtype=jnp.int32)   # max == NE (torch uses max(n_ents))

    qsv, qov, qrv = jax.jit(mfvi_forward)(
        params, sub, obj, rel, ss, oss, rs, ent_numbers)
    jax.block_until_ready((qsv, qov, qrv))

    # sanity check vs. pure-JAX reference
    rqs, rqo, rqr = reference_forward(params, sub, obj, rel, ss, oss, rs,
                                      ent_numbers)
    assert qsv.shape == (BS, NE, N_ENT_LABELS)
    assert qov.shape == (BS, NE, N_ENT_LABELS)
    assert qrv.shape == (BS, NE, NE, N_REL_LABELS)
    assert jnp.allclose(qsv, rqs, atol=5e-2, rtol=5e-2)
    assert jnp.allclose(qov, rqo, atol=5e-2, rtol=5e-2)
    assert jnp.allclose(qrv, rqr, atol=5e-2, rtol=5e-2)

    print("KERNEL_OK")
</pallas_src>

<mosaic_0001>
module attributes {stable_mosaic.version = 11 : i64} {
  func.func @_mfvi_fused_kernel(%arg0: i32, %arg1: memref<1x8x32xf32, #tpu.memory_space<vmem>>, %arg2: memref<1x8x32xf32, #tpu.memory_space<vmem>>, %arg3: memref<1x64x32xf32, #tpu.memory_space<vmem>>, %arg4: memref<1x8x4xf32, #tpu.memory_space<vmem>>, %arg5: memref<1x8x4xf32, #tpu.memory_space<vmem>>, %arg6: memref<1x64x4xf32, #tpu.memory_space<vmem>>, %arg7: memref<1x8x1xf32, #tpu.memory_space<vmem>>, %arg8: memref<1x64x1xf32, #tpu.memory_space<vmem>>, %arg9: memref<32x32xf32, #tpu.memory_space<vmem>>, %arg10: memref<1x32xf32, #tpu.memory_space<vmem>>, %arg11: memref<32x32xf32, #tpu.memory_space<vmem>>, %arg12: memref<1x32xf32, #tpu.memory_space<vmem>>, %arg13: memref<32x32xf32, #tpu.memory_space<vmem>>, %arg14: memref<1x32xf32, #tpu.memory_space<vmem>>, %arg15: memref<32x64xf32, #tpu.memory_space<vmem>>, %arg16: memref<1x64xf32, #tpu.memory_space<vmem>>, %arg17: memref<64x8xf32, #tpu.memory_space<vmem>>, %arg18: memref<64x8xf32, #tpu.memory_space<vmem>>, %arg19: memref<8x64xf32, #tpu.memory_space<vmem>>, %arg20: memref<8x64xf32, #tpu.memory_space<vmem>>, %arg21: memref<4x64xf32, #tpu.memory_space<vmem>>, %arg22: memref<4x64xf32, #tpu.memory_space<vmem>>, %arg23: memref<4x64xf32, #tpu.memory_space<vmem>>, %arg24: memref<64x4xf32, #tpu.memory_space<vmem>>, %arg25: memref<64x4xf32, #tpu.memory_space<vmem>>, %arg26: memref<64x4xf32, #tpu.memory_space<vmem>>, %arg27: memref<1x8x4xf32, #tpu.memory_space<vmem>>, %arg28: memref<1x8x4xf32, #tpu.memory_space<vmem>>, %arg29: memref<1x64x4xf32, #tpu.memory_space<vmem>>) attributes {dimension_semantics = [#tpu.dimension_semantics<parallel>], iteration_bounds = array<i64: 2>, scalar_prefetch = 0 : i64, scratch_operands = 0 : i64, tpu.core_type = #tpu.core_type<tc>, window_params = [{transform_indices = @transform_0, window_bounds = array<i64: 1, 8, 32>}, {transform_indices = @transform_1, window_bounds = array<i64: 1, 8, 32>}, {transform_indices = @transform_2, window_bounds = array<i64: 1, 64, 32>}, {transform_indices = @transform_3, window_bounds = array<i64: 1, 8, 4>}, {transform_indices = @transform_4, window_bounds = array<i64: 1, 8, 4>}, {transform_indices = @transform_5, window_bounds = array<i64: 1, 64, 4>}, {transform_indices = @transform_6, window_bounds = array<i64: 1, 8, 1>}, {transform_indices = @transform_7, window_bounds = array<i64: 1, 64, 1>}, {pipeline_mode = #tpu.pipeline_mode<synchronous>, transform_indices = @transform_8, window_bounds = array<i64: 32, 32>}, {pipeline_mode = #tpu.pipeline_mode<synchronous>, transform_indices = @transform_9, window_bounds = array<i64: 1, 32>}, {pipeline_mode = #tpu.pipeline_mode<synchronous>, transform_indices = @transform_10, window_bounds = array<i64: 32, 32>}, {pipeline_mode = #tpu.pipeline_mode<synchronous>, transform_indices = @transform_11, window_bounds = array<i64: 1, 32>}, {pipeline_mode = #tpu.pipeline_mode<synchronous>, transform_indices = @transform_12, window_bounds = array<i64: 32, 32>}, {pipeline_mode = #tpu.pipeline_mode<synchronous>, transform_indices = @transform_13, window_bounds = array<i64: 1, 32>}, {pipeline_mode = #tpu.pipeline_mode<synchronous>, transform_indices = @transform_14, window_bounds = array<i64: 32, 64>}, {pipeline_mode = #tpu.pipeline_mode<synchronous>, transform_indices = @transform_15, window_bounds = array<i64: 1, 64>}, {pipeline_mode = #tpu.pipeline_mode<synchronous>, transform_indices = @transform_16, window_bounds = array<i64: 64, 8>}, {pipeline_mode = #tpu.pipeline_mode<synchronous>, transform_indices = @transform_17, window_bounds = array<i64: 64, 8>}, {pipeline_mode = #tpu.pipeline_mode<synchronous>, transform_indices = @transform_18, window_bounds = array<i64: 8, 64>}, {pipeline_mode = #tpu.pipeline_mode<synchronous>, transform_indices = @transform_19, window_bounds = array<i64: 8, 64>}, {pipeline_mode = #tpu.pipeline_mode<synchronous>, transform_indices = @transform_20, window_bounds = array<i64: 4, 64>}, {pipeline_mode = #tpu.pipeline_mode<synchronous>, transform_indices = @transform_21, window_bounds = array<i64: 4, 64>}, {pipeline_mode = #tpu.pipeline_mode<synchronous>, transform_indices = @transform_22, window_bounds = array<i64: 4, 64>}, {pipeline_mode = #tpu.pipeline_mode<synchronous>, transform_indices = @transform_23, window_bounds = array<i64: 64, 4>}, {pipeline_mode = #tpu.pipeline_mode<synchronous>, transform_indices = @transform_24, window_bounds = array<i64: 64, 4>}, {pipeline_mode = #tpu.pipeline_mode<synchronous>, transform_indices = @transform_25, window_bounds = array<i64: 64, 4>}, {transform_indices = @transform_26, window_bounds = array<i64: 1, 8, 4>}, {transform_indices = @transform_27, window_bounds = array<i64: 1, 8, 4>}, {transform_indices = @transform_28, window_bounds = array<i64: 1, 64, 4>}]} {
    %c0 = arith.constant 0 : index
    %c0_0 = arith.constant 0 : index
    %c0_1 = arith.constant 0 : index
    %0 = vector.load %arg7[%c0, %c0_0, %c0_1] : memref<1x8x1xf32, #tpu.memory_space<vmem>>, vector<1x8x1xf32>
    %1 = vector.shape_cast %0 : vector<1x8x1xf32> to vector<8x1xf32>
    %c0_2 = arith.constant 0 : index
    %c0_3 = arith.constant 0 : index
    %c0_4 = arith.constant 0 : index
    %2 = vector.load %arg8[%c0_2, %c0_3, %c0_4] : memref<1x64x1xf32, #tpu.memory_space<vmem>>, vector<1x64x1xf32>
    %3 = vector.shape_cast %2 : vector<1x64x1xf32> to vector<64x1xf32>
    %c0_5 = arith.constant 0 : index
    %c0_6 = arith.constant 0 : index
    %4 = vector.load %arg17[%c0_5, %c0_6] : memref<64x8xf32, #tpu.memory_space<vmem>>, vector<64x8xf32>
    %c0_7 = arith.constant 0 : index
    %c0_8 = arith.constant 0 : index
    %5 = vector.load %arg18[%c0_7, %c0_8] : memref<64x8xf32, #tpu.memory_space<vmem>>, vector<64x8xf32>
    %c0_9 = arith.constant 0 : index
    %c0_10 = arith.constant 0 : index
    %c0_11 = arith.constant 0 : index
    %6 = vector.load %arg1[%c0_9, %c0_10, %c0_11] : memref<1x8x32xf32, #tpu.memory_space<vmem>>, vector<1x8x32xf32>
    %7 = vector.shape_cast %6 : vector<1x8x32xf32> to vector<8x32xf32>
    %c0_12 = arith.constant 0 : index
    %c0_13 = arith.constant 0 : index
    %8 = vector.load %arg9[%c0_12, %c0_13] : memref<32x32xf32, #tpu.memory_space<vmem>>, vector<32x32xf32>
    %cst = arith.constant dense<0.000000e+00> : vector<8x32xf32>
    %9 = tpu.matmul %7, %8, %cst {dimension_numbers = #tpu.dot_dimension_numbers<[1], [0], [0], [1], [0, 0, 1, 1], [], []>} : vector<8x32xf32>, vector<32x32xf32>, vector<8x32xf32> -> vector<8x32xf32>
    %c0_14 = arith.constant 0 : index
    %c0_15 = arith.constant 0 : index
    %10 = vector.load %arg10[%c0_14, %c0_15] : memref<1x32xf32, #tpu.memory_space<vmem>>, vector<1x32xf32>
    %11 = vector.broadcast %10 : vector<1x32xf32> to vector<8x32xf32>
    %12 = arith.addf %9, %11 : vector<8x32xf32>
    %c0_16 = arith.constant 0 : index
    %c0_17 = arith.constant 0 : index
    %c0_18 = arith.constant 0 : index
    %13 = vector.load %arg2[%c0_16, %c0_17, %c0_18] : memref<1x8x32xf32, #tpu.memory_space<vmem>>, vector<1x8x32xf32>
    %14 = vector.shape_cast %13 : vector<1x8x32xf32> to vector<8x32xf32>
    %c0_19 = arith.constant 0 : index
    %c0_20 = arith.constant 0 : index
    %15 = vector.load %arg11[%c0_19, %c0_20] : memref<32x32xf32, #tpu.memory_space<vmem>>, vector<32x32xf32>
    %cst_21 = arith.constant dense<0.000000e+00> : vector<8x32xf32>
    %16 = tpu.matmul %14, %15, %cst_21 {dimension_numbers = #tpu.dot_dimension_numbers<[1], [0], [0], [1], [0, 0, 1, 1], [], []>} : vector<8x32xf32>, vector<32x32xf32>, vector<8x32xf32> -> vector<8x32xf32>
    %c0_22 = arith.constant 0 : index
    %c0_23 = arith.constant 0 : index
    %17 = vector.load %arg12[%c0_22, %c0_23] : memref<1x32xf32, #tpu.memory_space<vmem>>, vector<1x32xf32>
    %18 = vector.broadcast %17 : vector<1x32xf32> to vector<8x32xf32>
    %19 = arith.addf %16, %18 : vector<8x32xf32>
    %c0_24 = arith.constant 0 : index
    %c0_25 = arith.constant 0 : index
    %c0_26 = arith.constant 0 : index
    %20 = vector.load %arg3[%c0_24, %c0_25, %c0_26] : memref<1x64x32xf32, #tpu.memory_space<vmem>>, vector<1x64x32xf32>
    %21 = vector.shape_cast %20 : vector<1x64x32xf32> to vector<64x32xf32>
    %c0_27 = arith.constant 0 : index
    %c0_28 = arith.constant 0 : index
    %22 = vector.load %arg13[%c0_27, %c0_28] : memref<32x32xf32, #tpu.memory_space<vmem>>, vector<32x32xf32>
    %cst_29 = arith.constant dense<0.000000e+00> : vector<64x32xf32>
    %23 = tpu.matmul %21, %22, %cst_29 {dimension_numbers = #tpu.dot_dimension_numbers<[1], [0], [0], [1], [0, 0, 1, 1], [], []>} : vector<64x32xf32>, vector<32x32xf32>, vector<64x32xf32> -> vector<64x32xf32>
    %c0_30 = arith.constant 0 : index
    %c0_31 = arith.constant 0 : index
    %24 = vector.load %arg14[%c0_30, %c0_31] : memref<1x32xf32, #tpu.memory_space<vmem>>, vector<1x32xf32>
    %25 = vector.broadcast %24 : vector<1x32xf32> to vector<64x32xf32>
    %26 = arith.addf %23, %25 : vector<64x32xf32>
    %27 = arith.mulf %12, %19 : vector<8x32xf32>
    %cst_32 = arith.constant dense<0.000000e+00> : vector<64x32xf32>
    %28 = tpu.matmul %4, %27, %cst_32 {dimension_numbers = #tpu.dot_dimension_numbers<[1], [0], [0], [1], [0, 0, 1, 1], [], []>} : vector<64x8xf32>, vector<8x32xf32>, vector<64x32xf32> -> vector<64x32xf32>
    %29 = arith.mulf %28, %26 : vector<64x32xf32>
    %c0_33 = arith.constant 0 : index
    %c0_34 = arith.constant 0 : index
    %30 = vector.load %arg15[%c0_33, %c0_34] : memref<32x64xf32, #tpu.memory_space<vmem>>, vector<32x64xf32>
    %cst_35 = arith.constant dense<0.000000e+00> : vector<64x64xf32>
    %31 = tpu.matmul %29, %30, %cst_35 {dimension_numbers = #tpu.dot_dimension_numbers<[1], [0], [0], [1], [0, 0, 1, 1], [], []>} : vector<64x32xf32>, vector<32x64xf32>, vector<64x64xf32> -> vector<64x64xf32>
    %c0_36 = arith.constant 0 : index
    %c0_37 = arith.constant 0 : index
    %32 = vector.load %arg16[%c0_36, %c0_37] : memref<1x64xf32, #tpu.memory_space<vmem>>, vector<1x64xf32>
    %33 = vector.broadcast %32 : vector<1x64xf32> to vector<64x64xf32>
    %34 = arith.addf %31, %33 : vector<64x64xf32>
    %35 = vector.broadcast %3 : vector<64x1xf32> to vector<64x64xf32>
    %36 = arith.mulf %34, %35 : vector<64x64xf32>
    %c0_38 = arith.constant 0 : index
    %c0_39 = arith.constant 0 : index
    %37 = vector.load %arg19[%c0_38, %c0_39] : memref<8x64xf32, #tpu.memory_space<vmem>>, vector<8x64xf32>
    %c0_40 = arith.constant 0 : index
    %c0_41 = arith.constant 0 : index
    %38 = vector.load %arg20[%c0_40, %c0_41] : memref<8x64xf32, #tpu.memory_space<vmem>>, vector<8x64xf32>
    %c0_42 = arith.constant 0 : index
    %c0_43 = arith.constant 0 : index
    %39 = vector.load %arg21[%c0_42, %c0_43] : memref<4x64xf32, #tpu.memory_space<vmem>>, vector<4x64xf32>
    %c0_44 = arith.constant 0 : index
    %c0_45 = arith.constant 0 : index
    %40 = vector.load %arg22[%c0_44, %c0_45] : memref<4x64xf32, #tpu.memory_space<vmem>>, vector<4x64xf32>
    %c0_46 = arith.constant 0 : index
    %c0_47 = arith.constant 0 : index
    %41 = vector.load %arg23[%c0_46, %c0_47] : memref<4x64xf32, #tpu.memory_space<vmem>>, vector<4x64xf32>
    %c0_48 = arith.constant 0 : index
    %c0_49 = arith.constant 0 : index
    %42 = vector.load %arg24[%c0_48, %c0_49] : memref<64x4xf32, #tpu.memory_space<vmem>>, vector<64x4xf32>
    %c0_50 = arith.constant 0 : index
    %c0_51 = arith.constant 0 : index
    %43 = vector.load %arg25[%c0_50, %c0_51] : memref<64x4xf32, #tpu.memory_space<vmem>>, vector<64x4xf32>
    %c0_52 = arith.constant 0 : index
    %c0_53 = arith.constant 0 : index
    %44 = vector.load %arg26[%c0_52, %c0_53] : memref<64x4xf32, #tpu.memory_space<vmem>>, vector<64x4xf32>
    %cst_54 = arith.constant 5.000000e-01 : f32
    %45 = vector.broadcast %cst_54 : f32 to vector<8x1xf32>
    %46 = arith.cmpf ogt, %1, %45 : vector<8x1xf32>
    %cst_55 = arith.constant 5.000000e-01 : f32
    %47 = vector.broadcast %cst_55 : f32 to vector<64x1xf32>
    %48 = arith.cmpf ogt, %3, %47 : vector<64x1xf32>
    %c0_56 = arith.constant 0 : index
    %c0_57 = arith.constant 0 : index
    %c0_58 = arith.constant 0 : index
    %49 = vector.load %arg4[%c0_56, %c0_57, %c0_58] : memref<1x8x4xf32, #tpu.memory_space<vmem>>, vector<1x8x4xf32>
    %50 = vector.shape_cast %49 : vector<1x8x4xf32> to vector<8x4xf32>
    %c0_59 = arith.constant 0 : index
    %c0_60 = arith.constant 0 : index
    %c0_61 = arith.constant 0 : index
    %51 = vector.load %arg5[%c0_59, %c0_60, %c0_61] : memref<1x8x4xf32, #tpu.memory_space<vmem>>, vector<1x8x4xf32>
    %52 = vector.shape_cast %51 : vector<1x8x4xf32> to vector<8x4xf32>
    %c0_62 = arith.constant 0 : index
    %c0_63 = arith.constant 0 : index
    %c0_64 = arith.constant 0 : index
    %53 = vector.load %arg6[%c0_62, %c0_63, %c0_64] : memref<1x64x4xf32, #tpu.memory_space<vmem>>, vector<1x64x4xf32>
    %54 = vector.shape_cast %53 : vector<1x64x4xf32> to vector<64x4xf32>
    %cst_65 = arith.constant -1.000000e+04 : f32
    %55 = vector.shape_cast %46 : vector<8x1xi1> to vector<8x1xi1>
    %56 = vector.broadcast %55 : vector<8x1xi1> to vector<8x4xi1>
    %57 = vector.broadcast %cst_65 : f32 to vector<8x4xf32>
    %58 = arith.select %56, %50, %57 : vector<8x4xi1>, vector<8x4xf32>
    %cst_66 = arith.constant -1.000000e+04 : f32
    %59 = vector.shape_cast %46 : vector<8x1xi1> to vector<8x1xi1>
    %60 = vector.broadcast %59 : vector<8x1xi1> to vector<8x4xi1>
    %61 = vector.broadcast %cst_66 : f32 to vector<8x4xf32>
    %62 = arith.select %60, %52, %61 : vector<8x4xi1>, vector<8x4xf32>
    %cst_67 = arith.constant -1.000000e+04 : f32
    %63 = vector.shape_cast %48 : vector<64x1xi1> to vector<64x1xi1>
    %64 = vector.broadcast %63 : vector<64x1xi1> to vector<64x4xi1>
    %65 = vector.broadcast %cst_67 : f32 to vector<64x4xf32>
    %66 = arith.select %64, %54, %65 : vector<64x4xi1>, vector<64x4xf32>
    %cst_68 = arith.constant dense<0xFF800000> : vector<8xf32>
    %67 = vector.multi_reduction <maximumf>, %58, %cst_68 [1] : vector<8x4xf32> to vector<8xf32>
    %68 = vector.shape_cast %67 : vector<8xf32> to vector<8x1xf32>
    %69 = vector.broadcast %68 : vector<8x1xf32> to vector<8x4xf32>
    %70 = arith.subf %58, %69 : vector<8x4xf32>
    %71 = math.exp %70 : vector<8x4xf32>
    %cst_69 = arith.constant dense<0.000000e+00> : vector<8xf32>
    %72 = vector.multi_reduction <add>, %71, %cst_69 [1] : vector<8x4xf32> to vector<8xf32>
    %73 = vector.shape_cast %72 : vector<8xf32> to vector<8x1xf32>
    %74 = tpu.reciprocal %73 {approx = true} : vector<8x1xf32> -> vector<8x1xf32>
    %75 = vector.broadcast %74 : vector<8x1xf32> to vector<8x4xf32>
    %76 = arith.mulf %71, %75 : vector<8x4xf32>
    %cst_70 = arith.constant dense<0xFF800000> : vector<8xf32>
    %77 = vector.multi_reduction <maximumf>, %62, %cst_70 [1] : vector<8x4xf32> to vector<8xf32>
    %78 = vector.shape_cast %77 : vector<8xf32> to vector<8x1xf32>
    %79 = vector.broadcast %78 : vector<8x1xf32> to vector<8x4xf32>
    %80 = arith.subf %62, %79 : vector<8x4xf32>
    %81 = math.exp %80 : vector<8x4xf32>
    %cst_71 = arith.constant dense<0.000000e+00> : vector<8xf32>
    %82 = vector.multi_reduction <add>, %81, %cst_71 [1] : vector<8x4xf32> to vector<8xf32>
    %83 = vector.shape_cast %82 : vector<8xf32> to vector<8x1xf32>
    %84 = tpu.reciprocal %83 {approx = true} : vector<8x1xf32> -> vector<8x1xf32>
    %85 = vector.broadcast %84 : vector<8x1xf32> to vector<8x4xf32>
    %86 = arith.mulf %81, %85 : vector<8x4xf32>
    %cst_72 = arith.constant dense<0xFF800000> : vector<64xf32>
    %87 = vector.multi_reduction <maximumf>, %66, %cst_72 [1] : vector<64x4xf32> to vector<64xf32>
    %88 = vector.shape_cast %87 : vector<64xf32> to vector<64x1xf32>
    %89 = vector.broadcast %88 : vector<64x1xf32> to vector<64x4xf32>
    %90 = arith.subf %66, %89 : vector<64x4xf32>
    %91 = math.exp %90 : vector<64x4xf32>
    %cst_73 = arith.constant dense<0.000000e+00> : vector<64xf32>
    %92 = vector.multi_reduction <add>, %91, %cst_73 [1] : vector<64x4xf32> to vector<64xf32>
    %93 = vector.shape_cast %92 : vector<64xf32> to vector<64x1xf32>
    %94 = tpu.reciprocal %93 {approx = true} : vector<64x1xf32> -> vector<64x1xf32>
    %95 = vector.broadcast %94 : vector<64x1xf32> to vector<64x4xf32>
    %96 = arith.mulf %91, %95 : vector<64x4xf32>
    %cst_74 = arith.constant dense<0.000000e+00> : vector<64x4xf32>
    %97 = tpu.matmul %4, %76, %cst_74 {dimension_numbers = #tpu.dot_dimension_numbers<[1], [0], [0], [1], [0, 0, 1, 1], [], []>} : vector<64x8xf32>, vector<8x4xf32>, vector<64x4xf32> -> vector<64x4xf32>
    %cst_75 = arith.constant dense<0.000000e+00> : vector<64x64xf32>
    %98 = tpu.matmul %97, %39, %cst_75 {dimension_numbers = #tpu.dot_dimension_numbers<[1], [0], [0], [1], [0, 0, 1, 1], [], []>} : vector<64x4xf32>, vector<4x64xf32>, vector<64x64xf32> -> vector<64x64xf32>
    %cst_76 = arith.constant dense<0.000000e+00> : vector<64x4xf32>
    %99 = tpu.matmul %5, %86, %cst_76 {dimension_numbers = #tpu.dot_dimension_numbers<[1], [0], [0], [1], [0, 0, 1, 1], [], []>} : vector<64x8xf32>, vector<8x4xf32>, vector<64x4xf32> -> vector<64x4xf32>
    %cst_77 = arith.constant dense<0.000000e+00> : vector<64x64xf32>
    %100 = tpu.matmul %99, %40, %cst_77 {dimension_numbers = #tpu.dot_dimension_numbers<[1], [0], [0], [1], [0, 0, 1, 1], [], []>} : vector<64x4xf32>, vector<4x64xf32>, vector<64x64xf32> -> vector<64x64xf32>
    %cst_78 = arith.constant dense<0.000000e+00> : vector<64x64xf32>
    %101 = tpu.matmul %96, %41, %cst_78 {dimension_numbers = #tpu.dot_dimension_numbers<[1], [0], [0], [1], [0, 0, 1, 1], [], []>} : vector<64x4xf32>, vector<4x64xf32>, vector<64x64xf32> -> vector<64x64xf32>
    %102 = arith.mulf %101, %36 : vector<64x64xf32>
    %103 = arith.mulf %100, %102 : vector<64x64xf32>
    %cst_79 = arith.constant dense<0.000000e+00> : vector<64x4xf32>
    %104 = tpu.matmul %103, %42, %cst_79 {dimension_numbers = #tpu.dot_dimension_numbers<[1], [0], [0], [1], [0, 0, 1, 1], [], []>} : vector<64x64xf32>, vector<64x4xf32>, vector<64x4xf32> -> vector<64x4xf32>
    %cst_80 = arith.constant dense<0.000000e+00> : vector<8x4xf32>
    %105 = tpu.matmul %37, %104, %cst_80 {dimension_numbers = #tpu.dot_dimension_numbers<[1], [0], [0], [1], [0, 0, 1, 1], [], []>} : vector<8x64xf32>, vector<64x4xf32>, vector<8x4xf32> -> vector<8x4xf32>
    %106 = arith.mulf %98, %102 : vector<64x64xf32>
    %cst_81 = arith.constant dense<0.000000e+00> : vector<64x4xf32>
    %107 = tpu.matmul %106, %43, %cst_81 {dimension_numbers = #tpu.dot_dimension_numbers<[1], [0], [0], [1], [0, 0, 1, 1], [], []>} : vector<64x64xf32>, vector<64x4xf32>, vector<64x4xf32> -> vector<64x4xf32>
    %cst_82 = arith.constant dense<0.000000e+00> : vector<8x4xf32>
    %108 = tpu.matmul %38, %107, %cst_82 {dimension_numbers = #tpu.dot_dimension_numbers<[1], [0], [0], [1], [0, 0, 1, 1], [], []>} : vector<8x64xf32>, vector<64x4xf32>, vector<8x4xf32> -> vector<8x4xf32>
    %109 = arith.mulf %98, %100 : vector<64x64xf32>
    %110 = arith.mulf %109, %36 : vector<64x64xf32>
    %cst_83 = arith.constant dense<0.000000e+00> : vector<64x4xf32>
    %111 = tpu.matmul %110, %44, %cst_83 {dimension_numbers = #tpu.dot_dimension_numbers<[1], [0], [0], [1], [0, 0, 1, 1], [], []>} : vector<64x64xf32>, vector<64x4xf32>, vector<64x4xf32> -> vector<64x4xf32>
    %112 = arith.addf %58, %105 : vector<8x4xf32>
    %113 = arith.addf %62, %108 : vector<8x4xf32>
    %114 = arith.addf %66, %111 : vector<64x4xf32>
    %cst_84 = arith.constant -1.000000e+04 : f32
    %115 = vector.shape_cast %46 : vector<8x1xi1> to vector<8x1xi1>
    %116 = vector.broadcast %115 : vector<8x1xi1> to vector<8x4xi1>
    %117 = vector.broadcast %cst_84 : f32 to vector<8x4xf32>
    %118 = arith.select %116, %112, %117 : vector<8x4xi1>, vector<8x4xf32>
    %cst_85 = arith.constant -1.000000e+04 : f32
    %119 = vector.shape_cast %46 : vector<8x1xi1> to vector<8x1xi1>
    %120 = vector.broadcast %119 : vector<8x1xi1> to vector<8x4xi1>
    %121 = vector.broadcast %cst_85 : f32 to vector<8x4xf32>
    %122 = arith.select %120, %113, %121 : vector<8x4xi1>, vector<8x4xf32>
    %cst_86 = arith.constant -1.000000e+04 : f32
    %123 = vector.shape_cast %48 : vector<64x1xi1> to vector<64x1xi1>
    %124 = vector.broadcast %123 : vector<64x1xi1> to vector<64x4xi1>
    %125 = vector.broadcast %cst_86 : f32 to vector<64x4xf32>
    %126 = arith.select %124, %114, %125 : vector<64x4xi1>, vector<64x4xf32>
    %cst_87 = arith.constant dense<0xFF800000> : vector<8xf32>
    %127 = vector.multi_reduction <maximumf>, %118, %cst_87 [1] : vector<8x4xf32> to vector<8xf32>
    %128 = vector.shape_cast %127 : vector<8xf32> to vector<8x1xf32>
    %129 = vector.broadcast %128 : vector<8x1xf32> to vector<8x4xf32>
    %130 = arith.subf %118, %129 : vector<8x4xf32>
    %131 = math.exp %130 : vector<8x4xf32>
    %cst_88 = arith.constant dense<0.000000e+00> : vector<8xf32>
    %132 = vector.multi_reduction <add>, %131, %cst_88 [1] : vector<8x4xf32> to vector<8xf32>
    %133 = vector.shape_cast %132 : vector<8xf32> to vector<8x1xf32>
    %134 = tpu.reciprocal %133 {approx = true} : vector<8x1xf32> -> vector<8x1xf32>
    %135 = vector.broadcast %134 : vector<8x1xf32> to vector<8x4xf32>
    %136 = arith.mulf %131, %135 : vector<8x4xf32>
    %cst_89 = arith.constant dense<0xFF800000> : vector<8xf32>
    %137 = vector.multi_reduction <maximumf>, %122, %cst_89 [1] : vector<8x4xf32> to vector<8xf32>
    %138 = vector.shape_cast %137 : vector<8xf32> to vector<8x1xf32>
    %139 = vector.broadcast %138 : vector<8x1xf32> to vector<8x4xf32>
    %140 = arith.subf %122, %139 : vector<8x4xf32>
    %141 = math.exp %140 : vector<8x4xf32>
    %cst_90 = arith.constant dense<0.000000e+00> : vector<8xf32>
    %142 = vector.multi_reduction <add>, %141, %cst_90 [1] : vector<8x4xf32> to vector<8xf32>
    %143 = vector.shape_cast %142 : vector<8xf32> to vector<8x1xf32>
    %144 = tpu.reciprocal %143 {approx = true} : vector<8x1xf32> -> vector<8x1xf32>
    %145 = vector.broadcast %144 : vector<8x1xf32> to vector<8x4xf32>
    %146 = arith.mulf %141, %145 : vector<8x4xf32>
    %cst_91 = arith.constant dense<0xFF800000> : vector<64xf32>
    %147 = vector.multi_reduction <maximumf>, %126, %cst_91 [1] : vector<64x4xf32> to vector<64xf32>
    %148 = vector.shape_cast %147 : vector<64xf32> to vector<64x1xf32>
    %149 = vector.broadcast %148 : vector<64x1xf32> to vector<64x4xf32>
    %150 = arith.subf %126, %149 : vector<64x4xf32>
    %151 = math.exp %150 : vector<64x4xf32>
    %cst_92 = arith.constant dense<0.000000e+00> : vector<64xf32>
    %152 = vector.multi_reduction <add>, %151, %cst_92 [1] : vector<64x4xf32> to vector<64xf32>
    %153 = vector.shape_cast %152 : vector<64xf32> to vector<64x1xf32>
    %154 = tpu.reciprocal %153 {approx = true} : vector<64x1xf32> -> vector<64x1xf32>
    %155 = vector.broadcast %154 : vector<64x1xf32> to vector<64x4xf32>
    %156 = arith.mulf %151, %155 : vector<64x4xf32>
    %cst_93 = arith.constant dense<0.000000e+00> : vector<64x4xf32>
    %157 = tpu.matmul %4, %136, %cst_93 {dimension_numbers = #tpu.dot_dimension_numbers<[1], [0], [0], [1], [0, 0, 1, 1], [], []>} : vector<64x8xf32>, vector<8x4xf32>, vector<64x4xf32> -> vector<64x4xf32>
    %cst_94 = arith.constant dense<0.000000e+00> : vector<64x64xf32>
    %158 = tpu.matmul %157, %39, %cst_94 {dimension_numbers = #tpu.dot_dimension_numbers<[1], [0], [0], [1], [0, 0, 1, 1], [], []>} : vector<64x4xf32>, vector<4x64xf32>, vector<64x64xf32> -> vector<64x64xf32>
    %cst_95 = arith.constant dense<0.000000e+00> : vector<64x4xf32>
    %159 = tpu.matmul %5, %146, %cst_95 {dimension_numbers = #tpu.dot_dimension_numbers<[1], [0], [0], [1], [0, 0, 1, 1], [], []>} : vector<64x8xf32>, vector<8x4xf32>, vector<64x4xf32> -> vector<64x4xf32>
    %cst_96 = arith.constant dense<0.000000e+00> : vector<64x64xf32>
    %160 = tpu.matmul %159, %40, %cst_96 {dimension_numbers = #tpu.dot_dimension_numbers<[1], [0], [0], [1], [0, 0, 1, 1], [], []>} : vector<64x4xf32>, vector<4x64xf32>, vector<64x64xf32> -> vector<64x64xf32>
    %cst_97 = arith.constant dense<0.000000e+00> : vector<64x64xf32>
    %161 = tpu.matmul %156, %41, %cst_97 {dimension_numbers = #tpu.dot_dimension_numbers<[1], [0], [0], [1], [0, 0, 1, 1], [], []>} : vector<64x4xf32>, vector<4x64xf32>, vector<64x64xf32> -> vector<64x64xf32>
    %162 = arith.mulf %161, %36 : vector<64x64xf32>
    %163 = arith.mulf %160, %162 : vector<64x64xf32>
    %cst_98 = arith.constant dense<0.000000e+00> : vector<64x4xf32>
    %164 = tpu.matmul %163, %42, %cst_98 {dimension_numbers = #tpu.dot_dimension_numbers<[1], [0], [0], [1], [0, 0, 1, 1], [], []>} : vector<64x64xf32>, vector<64x4xf32>, vector<64x4xf32> -> vector<64x4xf32>
    %cst_99 = arith.constant dense<0.000000e+00> : vector<8x4xf32>
    %165 = tpu.matmul %37, %164, %cst_99 {dimension_numbers = #tpu.dot_dimension_numbers<[1], [0], [0], [1], [0, 0, 1, 1], [], []>} : vector<8x64xf32>, vector<64x4xf32>, vector<8x4xf32> -> vector<8x4xf32>
    %166 = arith.mulf %158, %162 : vector<64x64xf32>
    %cst_100 = arith.constant dense<0.000000e+00> : vector<64x4xf32>
    %167 = tpu.matmul %166, %43, %cst_100 {dimension_numbers = #tpu.dot_dimension_numbers<[1], [0], [0], [1], [0, 0, 1, 1], [], []>} : vector<64x64xf32>, vector<64x4xf32>, vector<64x4xf32> -> vector<64x4xf32>
    %cst_101 = arith.constant dense<0.000000e+00> : vector<8x4xf32>
    %168 = tpu.matmul %38, %167, %cst_101 {dimension_numbers = #tpu.dot_dimension_numbers<[1], [0], [0], [1], [0, 0, 1, 1], [], []>} : vector<8x64xf32>, vector<64x4xf32>, vector<8x4xf32> -> vector<8x4xf32>
    %169 = arith.mulf %158, %160 : vector<64x64xf32>
    %170 = arith.mulf %169, %36 : vector<64x64xf32>
    %cst_102 = arith.constant dense<0.000000e+00> : vector<64x4xf32>
    %171 = tpu.matmul %170, %44, %cst_102 {dimension_numbers = #tpu.dot_dimension_numbers<[1], [0], [0], [1], [0, 0, 1, 1], [], []>} : vector<64x64xf32>, vector<64x4xf32>, vector<64x4xf32> -> vector<64x4xf32>
    %172 = arith.addf %118, %165 : vector<8x4xf32>
    %173 = arith.addf %122, %168 : vector<8x4xf32>
    %174 = arith.addf %126, %171 : vector<64x4xf32>
    %cst_103 = arith.constant -1.000000e+04 : f32
    %175 = vector.shape_cast %46 : vector<8x1xi1> to vector<8x1xi1>
    %176 = vector.broadcast %175 : vector<8x1xi1> to vector<8x4xi1>
    %177 = vector.broadcast %cst_103 : f32 to vector<8x4xf32>
    %178 = arith.select %176, %172, %177 : vector<8x4xi1>, vector<8x4xf32>
    %cst_104 = arith.constant -1.000000e+04 : f32
    %179 = vector.shape_cast %46 : vector<8x1xi1> to vector<8x1xi1>
    %180 = vector.broadcast %179 : vector<8x1xi1> to vector<8x4xi1>
    %181 = vector.broadcast %cst_104 : f32 to vector<8x4xf32>
    %182 = arith.select %180, %173, %181 : vector<8x4xi1>, vector<8x4xf32>
    %cst_105 = arith.constant -1.000000e+04 : f32
    %183 = vector.shape_cast %48 : vector<64x1xi1> to vector<64x1xi1>
    %184 = vector.broadcast %183 : vector<64x1xi1> to vector<64x4xi1>
    %185 = vector.broadcast %cst_105 : f32 to vector<64x4xf32>
    %186 = arith.select %184, %174, %185 : vector<64x4xi1>, vector<64x4xf32>
    %cst_106 = arith.constant dense<0xFF800000> : vector<8xf32>
    %187 = vector.multi_reduction <maximumf>, %178, %cst_106 [1] : vector<8x4xf32> to vector<8xf32>
    %188 = vector.shape_cast %187 : vector<8xf32> to vector<8x1xf32>
    %189 = vector.broadcast %188 : vector<8x1xf32> to vector<8x4xf32>
    %190 = arith.subf %178, %189 : vector<8x4xf32>
    %191 = math.exp %190 : vector<8x4xf32>
    %cst_107 = arith.constant dense<0.000000e+00> : vector<8xf32>
    %192 = vector.multi_reduction <add>, %191, %cst_107 [1] : vector<8x4xf32> to vector<8xf32>
    %193 = vector.shape_cast %192 : vector<8xf32> to vector<8x1xf32>
    %194 = tpu.reciprocal %193 {approx = true} : vector<8x1xf32> -> vector<8x1xf32>
    %195 = vector.broadcast %194 : vector<8x1xf32> to vector<8x4xf32>
    %196 = arith.mulf %191, %195 : vector<8x4xf32>
    %cst_108 = arith.constant dense<0xFF800000> : vector<8xf32>
    %197 = vector.multi_reduction <maximumf>, %182, %cst_108 [1] : vector<8x4xf32> to vector<8xf32>
    %198 = vector.shape_cast %197 : vector<8xf32> to vector<8x1xf32>
    %199 = vector.broadcast %198 : vector<8x1xf32> to vector<8x4xf32>
    %200 = arith.subf %182, %199 : vector<8x4xf32>
    %201 = math.exp %200 : vector<8x4xf32>
    %cst_109 = arith.constant dense<0.000000e+00> : vector<8xf32>
    %202 = vector.multi_reduction <add>, %201, %cst_109 [1] : vector<8x4xf32> to vector<8xf32>
    %203 = vector.shape_cast %202 : vector<8xf32> to vector<8x1xf32>
    %204 = tpu.reciprocal %203 {approx = true} : vector<8x1xf32> -> vector<8x1xf32>
    %205 = vector.broadcast %204 : vector<8x1xf32> to vector<8x4xf32>
    %206 = arith.mulf %201, %205 : vector<8x4xf32>
    %cst_110 = arith.constant dense<0xFF800000> : vector<64xf32>
    %207 = vector.multi_reduction <maximumf>, %186, %cst_110 [1] : vector<64x4xf32> to vector<64xf32>
    %208 = vector.shape_cast %207 : vector<64xf32> to vector<64x1xf32>
    %209 = vector.broadcast %208 : vector<64x1xf32> to vector<64x4xf32>
    %210 = arith.subf %186, %209 : vector<64x4xf32>
    %211 = math.exp %210 : vector<64x4xf32>
    %cst_111 = arith.constant dense<0.000000e+00> : vector<64xf32>
    %212 = vector.multi_reduction <add>, %211, %cst_111 [1] : vector<64x4xf32> to vector<64xf32>
    %213 = vector.shape_cast %212 : vector<64xf32> to vector<64x1xf32>
    %214 = tpu.reciprocal %213 {approx = true} : vector<64x1xf32> -> vector<64x1xf32>
    %215 = vector.broadcast %214 : vector<64x1xf32> to vector<64x4xf32>
    %216 = arith.mulf %211, %215 : vector<64x4xf32>
    %cst_112 = arith.constant dense<0.000000e+00> : vector<64x4xf32>
    %217 = tpu.matmul %4, %196, %cst_112 {dimension_numbers = #tpu.dot_dimension_numbers<[1], [0], [0], [1], [0, 0, 1, 1], [], []>} : vector<64x8xf32>, vector<8x4xf32>, vector<64x4xf32> -> vector<64x4xf32>
    %cst_113 = arith.constant dense<0.000000e+00> : vector<64x64xf32>
    %218 = tpu.matmul %217, %39, %cst_113 {dimension_numbers = #tpu.dot_dimension_numbers<[1], [0], [0], [1], [0, 0, 1, 1], [], []>} : vector<64x4xf32>, vector<4x64xf32>, vector<64x64xf32> -> vector<64x64xf32>
    %cst_114 = arith.constant dense<0.000000e+00> : vector<64x4xf32>
    %219 = tpu.matmul %5, %206, %cst_114 {dimension_numbers = #tpu.dot_dimension_numbers<[1], [0], [0], [1], [0, 0, 1, 1], [], []>} : vector<64x8xf32>, vector<8x4xf32>, vector<64x4xf32> -> vector<64x4xf32>
    %cst_115 = arith.constant dense<0.000000e+00> : vector<64x64xf32>
    %220 = tpu.matmul %219, %40, %cst_115 {dimension_numbers = #tpu.dot_dimension_numbers<[1], [0], [0], [1], [0, 0, 1, 1], [], []>} : vector<64x4xf32>, vector<4x64xf32>, vector<64x64xf32> -> vector<64x64xf32>
    %cst_116 = arith.constant dense<0.000000e+00> : vector<64x64xf32>
    %221 = tpu.matmul %216, %41, %cst_116 {dimension_numbers = #tpu.dot_dimension_numbers<[1], [0], [0], [1], [0, 0, 1, 1], [], []>} : vector<64x4xf32>, vector<4x64xf32>, vector<64x64xf32> -> vector<64x64xf32>
    %222 = arith.mulf %221, %36 : vector<64x64xf32>
    %223 = arith.mulf %220, %222 : vector<64x64xf32>
    %cst_117 = arith.constant dense<0.000000e+00> : vector<64x4xf32>
    %224 = tpu.matmul %223, %42, %cst_117 {dimension_numbers = #tpu.dot_dimension_numbers<[1], [0], [0], [1], [0, 0, 1, 1], [], []>} : vector<64x64xf32>, vector<64x4xf32>, vector<64x4xf32> -> vector<64x4xf32>
    %cst_118 = arith.constant dense<0.000000e+00> : vector<8x4xf32>
    %225 = tpu.matmul %37, %224, %cst_118 {dimension_numbers = #tpu.dot_dimension_numbers<[1], [0], [0], [1], [0, 0, 1, 1], [], []>} : vector<8x64xf32>, vector<64x4xf32>, vector<8x4xf32> -> vector<8x4xf32>
    %226 = arith.mulf %218, %222 : vector<64x64xf32>
    %cst_119 = arith.constant dense<0.000000e+00> : vector<64x4xf32>
    %227 = tpu.matmul %226, %43, %cst_119 {dimension_numbers = #tpu.dot_dimension_numbers<[1], [0], [0], [1], [0, 0, 1, 1], [], []>} : vector<64x64xf32>, vector<64x4xf32>, vector<64x4xf32> -> vector<64x4xf32>
    %cst_120 = arith.constant dense<0.000000e+00> : vector<8x4xf32>
    %228 = tpu.matmul %38, %227, %cst_120 {dimension_numbers = #tpu.dot_dimension_numbers<[1], [0], [0], [1], [0, 0, 1, 1], [], []>} : vector<8x64xf32>, vector<64x4xf32>, vector<8x4xf32> -> vector<8x4xf32>
    %229 = arith.mulf %218, %220 : vector<64x64xf32>
    %230 = arith.mulf %229, %36 : vector<64x64xf32>
    %cst_121 = arith.constant dense<0.000000e+00> : vector<64x4xf32>
    %231 = tpu.matmul %230, %44, %cst_121 {dimension_numbers = #tpu.dot_dimension_numbers<[1], [0], [0], [1], [0, 0, 1, 1], [], []>} : vector<64x64xf32>, vector<64x4xf32>, vector<64x4xf32> -> vector<64x4xf32>
    %232 = arith.addf %178, %225 : vector<8x4xf32>
    %233 = arith.addf %182, %228 : vector<8x4xf32>
    %234 = arith.addf %186, %231 : vector<64x4xf32>
    %c0_122 = arith.constant 0 : index
    %c0_123 = arith.constant 0 : index
    %c0_124 = arith.constant 0 : index
    %235 = vector.load %arg27[%c0_122, %c0_123, %c0_124] : memref<1x8x4xf32, #tpu.memory_space<vmem>>, vector<1x8x4xf32>
    %236 = vector.shape_cast %235 : vector<1x8x4xf32> to vector<8x4xf32>
    %237 = vector.shape_cast %232 : vector<8x4xf32> to vector<1x8x4xf32>
    tpu.vector_store %arg27[%c0_122, %c0_123, %c0_124], %237 {strides = array<i32>} : memref<1x8x4xf32, #tpu.memory_space<vmem>>, vector<1x8x4xf32>,
    %c0_125 = arith.constant 0 : index
    %c0_126 = arith.constant 0 : index
    %c0_127 = arith.constant 0 : index
    %238 = vector.load %arg28[%c0_125, %c0_126, %c0_127] : memref<1x8x4xf32, #tpu.memory_space<vmem>>, vector<1x8x4xf32>
    %239 = vector.shape_cast %238 : vector<1x8x4xf32> to vector<8x4xf32>
    %240 = vector.shape_cast %233 : vector<8x4xf32> to vector<1x8x4xf32>
    tpu.vector_store %arg28[%c0_125, %c0_126, %c0_127], %240 {strides = array<i32>} : memref<1x8x4xf32, #tpu.memory_space<vmem>>, vector<1x8x4xf32>,
    %c0_128 = arith.constant 0 : index
    %c0_129 = arith.constant 0 : index
    %c0_130 = arith.constant 0 : index
    %241 = vector.load %arg29[%c0_128, %c0_129, %c0_130] : memref<1x64x4xf32, #tpu.memory_space<vmem>>, vector<1x64x4xf32>
    %242 = vector.shape_cast %241 : vector<1x64x4xf32> to vector<64x4xf32>
    %243 = vector.shape_cast %234 : vector<64x4xf32> to vector<1x64x4xf32>
    tpu.vector_store %arg29[%c0_128, %c0_129, %c0_130], %243 {strides = array<i32>} : memref<1x64x4xf32, #tpu.memory_space<vmem>>, vector<1x64x4xf32>,
    return
  }
  func.func @transform_0(%arg0: i32) -> (i32, i32, i32) {
    %c0_i32 = arith.constant 0 : i32
    %c0_i32_0 = arith.constant 0 : i32
    %c0_i32_1 = arith.constant 0 : i32
    return %arg0, %c0_i32, %c0_i32_0 : i32, i32, i32
  }
  func.func @transform_1(%arg0: i32) -> (i32, i32, i32) {
    %c0_i32 = arith.constant 0 : i32
    %c0_i32_0 = arith.constant 0 : i32
    %c0_i32_1 = arith.constant 0 : i32
    return %arg0, %c0_i32, %c0_i32_0 : i32, i32, i32
  }
  func.func @transform_2(%arg0: i32) -> (i32, i32, i32) {
    %c0_i32 = arith.constant 0 : i32
    %c0_i32_0 = arith.constant 0 : i32
    %c0_i32_1 = arith.constant 0 : i32
    return %arg0, %c0_i32, %c0_i32_0 : i32, i32, i32
  }
  func.func @transform_3(%arg0: i32) -> (i32, i32, i32) {
    %c0_i32 = arith.constant 0 : i32
    %c0_i32_0 = arith.constant 0 : i32
    %c0_i32_1 = arith.constant 0 : i32
    return %arg0, %c0_i32, %c0_i32_0 : i32, i32, i32
  }
  func.func @transform_4(%arg0: i32) -> (i32, i32, i32) {
    %c0_i32 = arith.constant 0 : i32
    %c0_i32_0 = arith.constant 0 : i32
    %c0_i32_1 = arith.constant 0 : i32
    return %arg0, %c0_i32, %c0_i32_0 : i32, i32, i32
  }
  func.func @transform_5(%arg0: i32) -> (i32, i32, i32) {
    %c0_i32 = arith.constant 0 : i32
    %c0_i32_0 = arith.constant 0 : i32
    %c0_i32_1 = arith.constant 0 : i32
    return %arg0, %c0_i32, %c0_i32_0 : i32, i32, i32
  }
  func.func @transform_6(%arg0: i32) -> (i32, i32, i32) {
    %c0_i32 = arith.constant 0 : i32
    %c0_i32_0 = arith.constant 0 : i32
    %c0_i32_1 = arith.constant 0 : i32
    return %arg0, %c0_i32, %c0_i32_0 : i32, i32, i32
  }
  func.func @transform_7(%arg0: i32) -> (i32, i32, i32) {
    %c0_i32 = arith.constant 0 : i32
    %c0_i32_0 = arith.constant 0 : i32
    %c0_i32_1 = arith.constant 0 : i32
    return %arg0, %c0_i32, %c0_i32_0 : i32, i32, i32
  }
  func.func @transform_8(%arg0: i32) -> (i32, i32) {
    %c0_i32 = arith.constant 0 : i32
    %c0_i32_0 = arith.constant 0 : i32
    %c0_i32_1 = arith.constant 0 : i32
    return %c0_i32, %c0_i32_0 : i32, i32
  }
  func.func @transform_9(%arg0: i32) -> (i32, i32) {
    %c0_i32 = arith.constant 0 : i32
    %c0_i32_0 = arith.constant 0 : i32
    %c0_i32_1 = arith.constant 0 : i32
    return %c0_i32, %c0_i32_0 : i32, i32
  }
  func.func @transform_10(%arg0: i32) -> (i32, i32) {
    %c0_i32 = arith.constant 0 : i32
    %c0_i32_0 = arith.constant 0 : i32
    %c0_i32_1 = arith.constant 0 : i32
    return %c0_i32, %c0_i32_0 : i32, i32
  }
  func.func @transform_11(%arg0: i32) -> (i32, i32) {
    %c0_i32 = arith.constant 0 : i32
    %c0_i32_0 = arith.constant 0 : i32
    %c0_i32_1 = arith.constant 0 : i32
    return %c0_i32, %c0_i32_0 : i32, i32
  }
  func.func @transform_12(%arg0: i32) -> (i32, i32) {
    %c0_i32 = arith.constant 0 : i32
    %c0_i32_0 = arith.constant 0 : i32
    %c0_i32_1 = arith.constant 0 : i32
    return %c0_i32, %c0_i32_0 : i32, i32
  }
  func.func @transform_13(%arg0: i32) -> (i32, i32) {
    %c0_i32 = arith.constant 0 : i32
    %c0_i32_0 = arith.constant 0 : i32
    %c0_i32_1 = arith.constant 0 : i32
    return %c0_i32, %c0_i32_0 : i32, i32
  }
  func.func @transform_14(%arg0: i32) -> (i32, i32) {
    %c0_i32 = arith.constant 0 : i32
    %c0_i32_0 = arith.constant 0 : i32
    %c0_i32_1 = arith.constant 0 : i32
    return %c0_i32, %c0_i32_0 : i32, i32
  }
  func.func @transform_15(%arg0: i32) -> (i32, i32) {
    %c0_i32 = arith.constant 0 : i32
    %c0_i32_0 = arith.constant 0 : i32
    %c0_i32_1 = arith.constant 0 : i32
    return %c0_i32, %c0_i32_0 : i32, i32
  }
  func.func @transform_16(%arg0: i32) -> (i32, i32) {
    %c0_i32 = arith.constant 0 : i32
    %c0_i32_0 = arith.constant 0 : i32
    %c0_i32_1 = arith.constant 0 : i32
    return %c0_i32, %c0_i32_0 : i32, i32
  }
  func.func @transform_17(%arg0: i32) -> (i32, i32) {
    %c0_i32 = arith.constant 0 : i32
    %c0_i32_0 = arith.constant 0 : i32
    %c0_i32_1 = arith.constant 0 : i32
    return %c0_i32, %c0_i32_0 : i32, i32
  }
  func.func @transform_18(%arg0: i32) -> (i32, i32) {
    %c0_i32 = arith.constant 0 : i32
    %c0_i32_0 = arith.constant 0 : i32
    %c0_i32_1 = arith.constant 0 : i32
    return %c0_i32, %c0_i32_0 : i32, i32
  }
  func.func @transform_19(%arg0: i32) -> (i32, i32) {
    %c0_i32 = arith.constant 0 : i32
    %c0_i32_0 = arith.constant 0 : i32
    %c0_i32_1 = arith.constant 0 : i32
    return %c0_i32, %c0_i32_0 : i32, i32
  }
  func.func @transform_20(%arg0: i32) -> (i32, i32) {
    %c0_i32 = arith.constant 0 : i32
    %c0_i32_0 = arith.constant 0 : i32
    %c0_i32_1 = arith.constant 0 : i32
    return %c0_i32, %c0_i32_0 : i32, i32
  }
  func.func @transform_21(%arg0: i32) -> (i32, i32) {
    %c0_i32 = arith.constant 0 : i32
    %c0_i32_0 = arith.constant 0 : i32
    %c0_i32_1 = arith.constant 0 : i32
    return %c0_i32, %c0_i32_0 : i32, i32
  }
  func.func @transform_22(%arg0: i32) -> (i32, i32) {
    %c0_i32 = arith.constant 0 : i32
    %c0_i32_0 = arith.constant 0 : i32
    %c0_i32_1 = arith.constant 0 : i32
    return %c0_i32, %c0_i32_0 : i32, i32
  }
  func.func @transform_23(%arg0: i32) -> (i32, i32) {
    %c0_i32 = arith.constant 0 : i32
    %c0_i32_0 = arith.constant 0 : i32
    %c0_i32_1 = arith.constant 0 : i32
    return %c0_i32, %c0_i32_0 : i32, i32
  }
  func.func @transform_24(%arg0: i32) -> (i32, i32) {
    %c0_i32 = arith.constant 0 : i32
    %c0_i32_0 = arith.constant 0 : i32
    %c0_i32_1 = arith.constant 0 : i32
    return %c0_i32, %c0_i32_0 : i32, i32
  }
  func.func @transform_25(%arg0: i32) -> (i32, i32) {
    %c0_i32 = arith.constant 0 : i32
    %c0_i32_0 = arith.constant 0 : i32
    %c0_i32_1 = arith.constant 0 : i32
    return %c0_i32, %c0_i32_0 : i32, i32
  }
  func.func @transform_26(%arg0: i32) -> (i32, i32, i32) {
    %c0_i32 = arith.constant 0 : i32
    %c0_i32_0 = arith.constant 0 : i32
    %c0_i32_1 = arith.constant 0 : i32
    return %arg0, %c0_i32, %c0_i32_0 : i32, i32, i32
  }
  func.func @transform_27(%arg0: i32) -> (i32, i32, i32) {
    %c0_i32 = arith.constant 0 : i32
    %c0_i32_0 = arith.constant 0 : i32
    %c0_i32_1 = arith.constant 0 : i32
    return %arg0, %c0_i32, %c0_i32_0 : i32, i32, i32
  }
  func.func @transform_28(%arg0: i32) -> (i32, i32, i32) {
    %c0_i32 = arith.constant 0 : i32
    %c0_i32_0 = arith.constant 0 : i32
    %c0_i32_1 = arith.constant 0 : i32
    return %arg0, %c0_i32, %c0_i32_0 : i32, i32, i32
  }
}

</mosaic_0001>

<bundles_post_ra>
// kernel: mfvi_forward.1
= control target key start
LH: loop header
LB: loop body
LE: loop exit
PB: predicated region body
PF: predicated region fallthrough
CT: control target
= control target key end

     0   :  { %s6742_s0 = inlined_call_operand.hbm [shape: f32[2,8,32], index: 0, kind: input, shape index: {}]   ;;  %s6743_s1 = inlined_call_operand.hbm [shape: f32[2,8,32], index: 1, kind: input, shape index: {}]   ;;  %s6744_s2 = inlined_call_operand.vmem [shape: f32[2,64,32], index: 2, kind: input, shape index: {}]   ;;  %s6745_s3 = inlined_call_operand.vmem [shape: f32[2,8,4], index: 3, kind: input, shape index: {}]   ;;  %s6746_s4 = inlined_call_operand.vmem [shape: f32[2,8,4], index: 4, kind: input, shape index: {}]   ;;  %s6747_s5 = inlined_call_operand.vmem [shape: f32[2,64,4], index: 5, kind: input, shape index: {}]   ;;  %s6748_s6 = inlined_call_operand.vmem [shape: f32[2,8,1], index: 6, kind: input, shape index: {}]   ;;  %s6749_s7 = inlined_call_operand.vmem [shape: f32[2,64,1], index: 7, kind: input, shape index: {}]   ;;  %s6750_s8 = inlined_call_operand.vmem [shape: f32[32,32], index: 8, kind: input, shape index: {}]   ;;  %s6751_s9 = inlined_call_operand.hbm [shape: f32[1,32], index: 9, kind: input, shape index: {}]   ;;  %s6752_s10 = inlined_call_operand.hbm [shape: f32[32,32], index: 10, kind: input, shape index: {}]   ;;  %s6753_s11 = inlined_call_operand.hbm [shape: f32[1,32], index: 11, kind: input, shape index: {}]   ;;  %s6754_s12 = inlined_call_operand.hbm [shape: f32[32,32], index: 12, kind: input, shape index: {}]   ;;  %s6755_s13 = inlined_call_operand.hbm [shape: f32[1,32], index: 13, kind: input, shape index: {}]   ;;  %s6756_s14 = inlined_call_operand.hbm [shape: f32[32,64], index: 14, kind: input, shape index: {}]   ;;  %s6757_s15 = inlined_call_operand.hbm [shape: f32[1,64], index: 15, kind: input, shape index: {}]   ;;  %s6758_s16 = inlined_call_operand.hbm [shape: f32[64,8], index: 16, kind: input, shape index: {}]   ;;  %s6759_s17 = inlined_call_operand.hbm [shape: f32[64,8], index: 17, kind: input, shape index: {}]   ;;  %s6760_s18 = inlined_call_operand.vmem [shape: f32[8,64], index: 18, kind: input, shape index: {}]   ;;  %s6761_s19 = inlined_call_operand.vmem [shape: f32[8,64], index: 19, kind: input, shape index: {}]   ;;  %s6762_s20 = inlined_call_operand.hbm [shape: f32[4,64], index: 20, kind: input, shape index: {}]   ;;  %s6763_s21 = inlined_call_operand.vmem [shape: f32[4,64], index: 21, kind: input, shape index: {}]   ;;  %s6764_s22 = inlined_call_operand.vmem [shape: f32[4,64], index: 22, kind: input, shape index: {}]   ;;  %s6765_s23 = inlined_call_operand.vmem [shape: f32[64,4], index: 23, kind: input, shape index: {}]   ;;  %s6766_s24 = inlined_call_operand.vmem [shape: f32[64,4], index: 24, kind: input, shape index: {}]   ;;  %s6767_s25 = inlined_call_operand.vmem [shape: f32[64,4], index: 25, kind: input, shape index: {}]   ;;  %s6768_s26 = inlined_call_operand.vmem [shape: f32[2,8,4], index: 26, kind: output, shape index: {0}]   ;;  %s6769_s27 = inlined_call_operand.vmem [shape: f32[2,8,4], index: 27, kind: output, shape index: {1}]   ;;  %s6770_s28 = inlined_call_operand.vmem [shape: f32[2,64,4], index: 28, kind: output, shape index: {2}]  }
   0x1   :  { %6799 = sst [smem:[#allocation40_spill]] %s6742_s0 }
   0x2   :  { %6800 = sst [smem:[#allocation41_spill]] %s6743_s1 }
   0x3   :  { %6801 = sst [smem:[#allocation42_spill]] %s6744_s2 }
   0x4   :  { %6802 = sst [smem:[#allocation43_spill]] %s6745_s3 }
   0x5   :  { %6803 = sst [smem:[#allocation44_spill]] %s6746_s4 }
   0x6   :  { %6804 = sst [smem:[#allocation45_spill]] %s6747_s5 }
   0x7   :  { %6805 = sst [smem:[#allocation46_spill]] %s6748_s6 }
   0x8   :  { %6806 = sst [smem:[#allocation47_spill]] %s6749_s7 }
   0x9   :  { %6807 = sst [smem:[#allocation48_spill]] %s6750_s8 }
   0xa   :  { %6808 = sst [smem:[#allocation49_spill]] %s6751_s9 }
   0xb   :  { %6809 = sst [smem:[#allocation50_spill]] %s6752_s10 }
   0xc   :  { %6810 = sst [smem:[#allocation51_spill]] %s6753_s11 }
   0xd   :  { %6811 = sst [smem:[#allocation52_spill]] %s6754_s12 }
   0xe   :  { %6812 = sst [smem:[#allocation53_spill]] %s6755_s13 }
   0xf   :  { %6813 = sst [smem:[#allocation54_spill]] %s6756_s14 }
  0x10   :  { %6814 = sst [smem:[#allocation55_spill]] %s6757_s15 }
  0x11   :  { %6815 = sst [smem:[#allocation56_spill]] %s6758_s16 }
  0x12   :  { %6816 = sst [smem:[#allocation57_spill]] %s6759_s17 }
  0x13   :  { %6817 = sst [smem:[#allocation58_spill]] %s6760_s18 }
  0x14   :  { %6818 = sst [smem:[#allocation59_spill]] %s6761_s19 }
  0x15   :  { %6819 = sst [smem:[#allocation60_spill]] %s6762_s20 }
  0x16   :  { %6820 = sst [smem:[#allocation61_spill]] %s6767_s25 }
  0x17   :  { %6821 = sst [smem:[#allocation62_spill]] %s6768_s26 }
  0x18   :  { %6822 = sst [smem:[#allocation63_spill]] %s6769_s27 }
  0x19   :  { %6823 = sst [smem:[#allocation64_spill]] %s6770_s28 }
  0x1a   :  { %34 = vsyncpa [#allocation3], 0 }
  0x1b   :  { %36 = vsyncpa [#allocation3 + $0x1], 0 }
  0x1c   :  { %37 = vsyncpa [#allocation5], 0 }
  0x1d   :  { %39 = vsyncpa [#allocation5 + $0x1], 0 }
  0x1e   :  { %40 = vsyncpa [#allocation8], 0 }
  0x1f   :  { %41 = vsyncpa [#allocation11], 0 }
  0x20   :  { %42 = vsyncpa [#allocation14], 0 }
  0x21   :  { %43 = vsyncpa [#allocation17], 0 }
  0x22   :  { %44 = vsyncpa [#allocation20], 0  ;;  %s5248_s8 = smov 0   ;;  %s5250_s5 = smov 0  }
  0x23   :  { %s5252_s9 = smov 0   ;;  %s5254_s30 = smov 0  }
  0x24 LB: > { %s6824_s10 = sld [smem:[#allocation49_spill]]  ;;  %s5272_s11 = sadd.s32 4294967295, %s5088_s30   ;;  %s5088_s30 = sphi %s5254_s30, %s6882_s30   ;;  %s5084_s9 = sphi %s5252_s9, %s6881_s9   ;;  %s5080_s5 = sphi %s5250_s5, %s6880_s5   ;;  %s5076_s8 = sphi %s5248_s8, %s6879_s8  }
  0x25   : > { %p4069_p0 = scmp.ge.s32.totalorder %s5088_s30, 1  ;;  %p71_p1 = scmp.eq.s32.totalorder %s5272_s11, 0 }
  0x26   : > { %p719_p2 = scmp.lt.s32.totalorder %s5088_s30, 3  ;;  %s5090_s2 = smov [#allocation6]  }
  0x27   : > { %s736_s7 = sshll.u32 %s5090_s2, 4  ;;  %s6826_s4 = sld [smem:[#allocation50_spill]]  ;;  %s737_s7 = int_to_ptr.vmem [resolvable:$true] %s736_s7 }
  0x28   : > { %p5277_p3 = pnand %p4069_p0, %p719_p2  ;;  %s5092_s2 = smov 128  }
  0x29   : > { %s5093_s27 = smov 8   ;;  %s5094_s25 = smov [#allocation10]  }
  0x2a   : > { %s734_s0 = sshll.u32 %s6824_s10, 4  ;;  %p4399_p4 = pneg %p5277_p3  ;;  %s735_s0 = int_to_ptr.hbm [resolvable:$true] %s734_s0 }
  0x2b   : > { %s5091_s10 = smov [#allocation7]   ;;  %s773_s18 = sshll.u32 %s5094_s25, 4  ;;  %s774_s18 = int_to_ptr.vmem [resolvable:$true] %s773_s18 }
  0x2c   : > { %p5288_p5 = pnand %p4399_p4, %p71_p1  ;;  %s747_s28 = sshll.u32 %s5091_s10, 4  ;;  %s748_s28 = int_to_ptr.vmem [resolvable:$true] %s747_s28 }
  0x2d   : > { %s745_s3 = sshll.u32 %s6826_s4, 4  ;;  %s6828_s4 = sld [smem:[#allocation52_spill]]  ;;  %s746_s3 = int_to_ptr.hbm [resolvable:$true] %s745_s3 }
  0x2e   : > { %4402 = dma.hbm_to_vmem [thread:$0]  (!%p5288_p5), %s735_s0, 16, %s737_s7, [#allocation5]  }
  0x2f   : > { %4405 = dma.hbm_to_vmem [thread:$0]  (!%p5288_p5), %s746_s3, 512, %s748_s28, [#allocation8], %s5092_s2, %s5092_s2, %s5093_s27  }
  0x30   : > { %s6829_s14 = sld [smem:[#allocation54_spill]]  ;;  %s5095_s28 = smov [#allocation13]  }
  0x31   : > { %s799_s7 = sshll.u32 %s5095_s28, 4  ;;  %s6830_s16 = sld [smem:[#allocation56_spill]]  ;;  %s800_s7 = int_to_ptr.vmem [resolvable:$true] %s799_s7 }
  0x32   : > { %s5097_s28 = smov [#allocation9]   ;;  %s6832_s13 = sld [smem:[#allocation53_spill]] }
  0x33   : > { %s771_s26 = sshll.u32 %s6828_s4, 4  ;;  %s6831_s4 = sld [smem:[#allocation51_spill]]  ;;  %s772_s26 = int_to_ptr.hbm [resolvable:$true] %s771_s26 }
  0x34   : > { %4411 = dma.hbm_to_vmem [thread:$0]  (!%p5288_p5), %s772_s26, 512, %s774_s18, [#allocation11], %s5092_s2, %s5092_s2, %s5093_s27  }
  0x35   : > { %s5096_s18 = smov [#allocation16]   ;;  %s762_s3 = sshll.u32 %s5097_s28, 4  ;;  %s763_s3 = int_to_ptr.vmem [resolvable:$true] %s762_s3 }
  0x36   : > { %s797_s0 = sshll.u32 %s6829_s14, 4  ;;  %s825_s26 = sshll.u32 %s5096_s18, 4  ;;  %s798_s0 = int_to_ptr.hbm [resolvable:$true] %s797_s0  ;;  %s826_s26 = int_to_ptr.vmem [resolvable:$true] %s825_s26 }
  0x37   : > { %s823_s1 = sshll.u32 %s6830_s16, 4  ;;  %s6833_s15 = sld [smem:[#allocation55_spill]]  ;;  %s824_s1 = int_to_ptr.hbm [resolvable:$true] %s823_s1 }
  0x38   : > { %4417 = dma.hbm_to_vmem [thread:$0]  (!%p5288_p5), %s798_s0, 512, %s800_s7, [#allocation14], %s5092_s2, %s5092_s2, %s5093_s27  }
  0x39   : > { %s760_s10 = sshll.u32 %s6831_s4, 4  ;;  %s786_s0 = sshll.u32 %s6832_s13, 4  ;;  %s761_s10 = int_to_ptr.hbm [resolvable:$true] %s760_s10  ;;  %s787_s0 = int_to_ptr.hbm [resolvable:$true] %s786_s0 }
  0x3a   : > { %4423 = dma.hbm_to_vmem [thread:$0]  (!%p5288_p5), %s824_s1, 1024, %s826_s26, [#allocation17], %s5092_s2, %s5092_s2, %s5093_s27  }
  0x3b   : > { %4408 = dma.hbm_to_vmem [thread:$0]  (!%p5288_p5), %s761_s10, 16, %s763_s3, [#allocation8]  }
  0x3c   : > { %s5098_s4 = smov [#allocation12]   ;;  %s5099_s1 = smov [#allocation15]  }
  0x3d   : > { %s812_s25 = sshll.u32 %s6833_s15, 4  ;;  %s788_s18 = sshll.u32 %s5098_s4, 4  ;;  %s813_s25 = int_to_ptr.hbm [resolvable:$true] %s812_s25  ;;  %s789_s18 = int_to_ptr.vmem [resolvable:$true] %s788_s18 }
  0x3e   : > { %4414 = dma.hbm_to_vmem [thread:$0]  (!%p5288_p5), %s787_s0, 16, %s789_s18, [#allocation11]  }
  0x3f   : > { %s814_s14 = sshll.u32 %s5099_s1, 4  ;;  %s6834_s17 = sld [smem:[#allocation57_spill]]  ;;  %s815_s14 = int_to_ptr.vmem [resolvable:$true] %s814_s14 }
  0x40   : > { %4420 = dma.hbm_to_vmem [thread:$0]  (!%p5288_p5), %s813_s25, 16, %s815_s14, [#allocation14]  }
  0x41   : > { %s6835_s20 = sld [smem:[#allocation60_spill]]  ;;  %s5100_s7 = smov [#allocation18]  }
  0x42   : > { %s839_s19 = sshll.u32 %s5100_s7, 4  ;;  %s5101_s25 = smov [#allocation19]   ;;  %s840_s19 = int_to_ptr.vmem [resolvable:$true] %s839_s19 }
  0x43   : > { %s860_s4 = sshll.u32 %s5101_s25, 4  ;;  %s5352_s18 = sadd.s32 1, %s5088_s30   ;;  %s861_s4 = int_to_ptr.vmem [resolvable:$true] %s860_s4 }
  0x44   : > { %s57_s1 = sadd.s32 1, %s5084_s9  ;;  %s54_s14 = ssub.s32 %s5088_s30, %s5352_s18 }
  0x45   : > { %s837_s10 = sshll.u32 %s6834_s17, 4  ;;  %p64_p6 = scmp.ne.s32.totalorder %s5084_s9, %s5080_s5  ;;  %s838_s10 = int_to_ptr.hbm [resolvable:$true] %s837_s10 }
  0x46   : > { %4426 = dma.hbm_to_vmem [thread:$0]  (!%p5288_p5), %s838_s10, 1024, %s840_s19, [#allocation17], %s5092_s2, %s5092_s2, %s5093_s27  }
  0x47   : > { %s858_s0 = sshll.u32 %s6835_s20, 4  ;;  %p55_p7 = scmp.eq.s32.totalorder %s54_s14, 0  ;;  %s859_s0 = int_to_ptr.hbm [resolvable:$true] %s858_s0 }
  0x48   : > { %4429 = dma.hbm_to_vmem [thread:$0]  (!%p5288_p5), %s859_s0, 64, %s861_s4, [#allocation20]  }
  0x49   : > { %p65_p8 = scmp.eq.s32.totalorder %s5088_s30, 0  ;;  %p70_p9 = scmp.ne.s32.totalorder %s5080_s5, %s5076_s8 }
  0x4a   : > { %p4447_p10 = scmp.lt.s32.totalorder %s5088_s30, 2  ;;  %s886_s6 = sand.u32 1, %s5084_s9  }
  0x4b   : > { %s5364_s27 = scalar_select %p55_p7, %s5084_s9, %s57_s1  }
  0x4c   : > { %p66_p11 = por %p65_p8, %p64_p6  ;;  %p5368_p12 = por %p71_p1, %p70_p9 }
  0x4d   : > { %s4082_s26 = sshll.u32 %s5088_s30, 3  ;;  %s4081_s28 = sshll.u32 %s886_s6, 3 }
  0x4e   : > { %s6837_s12 = sld [smem:[#allocation40_spill]]  ;;  %s890_s19 = scalar_lea.vmem [#allocation2], %s4081_s28 }
  0x4f   : > { %s898_s8 = sshll.u32 %s890_s19, 4  ;;  %p5379_p13 = pnand %p4447_p10, %p66_p11  ;;  %s899_s8 = int_to_ptr.vmem [resolvable:$true] %s898_s8 }
  0x50   : > { %s6839_s14 = sld [smem:[#allocation41_spill]]  ;;  %s905_s15 = sand.u32 1, %s5088_s30  }
  0x51   : > { %s887_s16 = scalar_lea.sflag [#allocation3], %s886_s6  ;;  %p4970_p2 = pneg %p5379_p13 }
  0x54   : > { %s894_s0 = scalar_lea.hbm %s6837_s12, %s4082_s26  ;;  %s4973_s17 = scalar_lea.hbm %s6837_s12, 16 }
  0x55   : > { %s896_s7 = sshll.u32 %s894_s0, 4  ;;  %s897_s7 = int_to_ptr.hbm [resolvable:$true] %s896_s7 }
  0x56   : > { %s913_s13 = scalar_lea.hbm %s6839_s14, %s4082_s26  ;;  %s4966_s10 = sshra.s32 %s897_s7, 4  ;;  %s4967_s10 = int_to_ptr.hbm [resolvable:$true] %s4966_s10 }
  0x57   : > { %s4968_s3 = scalar_lea.hbm %s4967_s10, 8  ;;  %p4974_p6 = scmp.lt.s32.totalorder %s4967_s10, %s6837_s12 }
  0x58   : > { %p4969_p0 = scmp.ne.s32.totalorder %s4967_s10, %s4968_s3  ;;  %p4975_p7 = scmp.lt.s32.totalorder %s4973_s17, %s4968_s3 }
  0x5a   : > { %p4971_p4 = pnand %p4970_p2, %p4969_p0  ;;  %p4976_p8 = por %p4975_p7, %p4974_p6 }
  0x5c   : > { %p4972_p5 = pneg %p4971_p4 }
  0x5e   : > { %p4977_p9 = pnand %p4976_p8, %p4972_p5 }
  0x60   : > { %4980 = shalt.err (!%p4977_p9)
}
  0x61   : > { %4433 = dma.hbm_to_vmem [thread:$0]  (!%p5379_p13), %s897_s7, 128, %s899_s8, %s887_s16  }
  0x62   : > { %s915_s30 = sshll.u32 %s913_s13, 4  ;;  %s909_s6 = scalar_lea.vmem [#allocation4], %s4081_s28  ;;  %s916_s30 = int_to_ptr.hbm [resolvable:$true] %s915_s30 }
  0x63   : > { %s917_s26 = sshll.u32 %s909_s6, 4  ;;  %s906_s20 = scalar_lea.sflag [#allocation5], %s905_s15  ;;  %s918_s26 = int_to_ptr.vmem [resolvable:$true] %s917_s26 }
  0x64   : > { %s4996_s0 = sshra.s32 %s916_s30, 4  ;;  %s5003_s3 = scalar_lea.hbm %s6839_s14, 16  ;;  %s4997_s0 = int_to_ptr.hbm [resolvable:$true] %s4996_s0 }
  0x65   : > { %s4998_s19 = scalar_lea.hbm %s4997_s0, 8  ;;  %p5004_p4 = scmp.lt.s32.totalorder %s4997_s0, %s6839_s14 }
  0x66   : > { %p4999_p10 = scmp.ne.s32.totalorder %s4997_s0, %s4998_s19  ;;  %p5005_p5 = scmp.lt.s32.totalorder %s5003_s3, %s4998_s19 }
  0x68   : > { %p5001_p11 = pnand %p4999_p10, %p4970_p2  ;;  %p5006_p6 = por %p5005_p5, %p5004_p4 }
  0x6a   : > { %p5002_p0 = pneg %p5001_p11 }
  0x6c   : > { %p5007_p7 = pnand %p5006_p6, %p5002_p0 }
  0x6e   : > { %5010 = shalt.err (!%p5007_p7)
}
  0x6f   : > { %4436 = dma.hbm_to_vmem [thread:$0]  (!%p5379_p13), %s916_s30, 128, %s918_s26, %s906_s20  }
  0x70   : > { %971 = sbr.rel (%p5277_p3) target bundleno = 3019 (0xbcb), region = 124 }
  0x75   : > { %s973_s13 = sand.u32 1, %s5080_s5  }
  0x76   : > { %s5414_s15 = sshll.u32 %s973_s13, 3  ;;  %s974_s28 = scalar_lea.sflag [#allocation3], %s973_s13 }
  0x77   : > { %s977_s7 = scalar_lea.vmem [#allocation2], %s5414_s15 }
  0x78   : > { %5043 = dma.done.wait (%p5368_p12), %s974_s28, 128  }
  0x79   : > { %5045 = vsyncadd (%p5368_p12), %s974_s28, 4294967168  ;;  %s983_s20 = sand.u32 1, %s5272_s11   ;;  %s987_s29 = scalar_lea.vmem [#allocation4], %s5414_s15 }
  0x7a   : > { %s984_s8 = scalar_lea.sflag [#allocation5], %s983_s20 }
  0x7b   : > { %5047 = dma.done.wait (%p5368_p12), %s984_s8, 128  }
  0x7c   : > { %5049 = vsyncadd (%p5368_p12), %s984_s8, 4294967168 }
  0x7d   : > { %5051 = dma.done.wait (%p71_p1), [#allocation5], 16  }
  0x7e   : > { %5053 = vsyncadd (%p71_p1), [#allocation5], 4294967280 }
  0x7f   : > { %5055 = dma.done.wait (%p71_p1), [#allocation8], 528  }
  0x80   : > { %5057 = vsyncadd (%p71_p1), [#allocation8], 4294966768 }
  0x81   : > { %5059 = dma.done.wait (%p71_p1), [#allocation11], 528  }
  0x82   : > { %5061 = vsyncadd (%p71_p1), [#allocation11], 4294966768 }
  0x83   : > { %5063 = dma.done.wait (%p71_p1), [#allocation14], 528  }
  0x84   : > { %5065 = vsyncadd (%p71_p1), [#allocation14], 4294966768 }
  0x85   : > { %5067 = dma.done.wait (%p71_p1), [#allocation17], 2048  }
  0x86   : > { %5069 = vsyncadd (%p71_p1), [#allocation17], 4294965248 }
  0x87   : > { %5071 = dma.done.wait (%p71_p1), [#allocation20], 64  }
  0x88   : > { %5073 = vsyncadd (%p71_p1), [#allocation20], 4294967232  ;;  %p1151_p3 = scmp.lt.s32.totalorder %s5272_s11, 1  ;;  %v5102_v0 = vmov 0   ;;  %s6840_s30 = sld [smem:[#allocation46_spill]]  ;;  %v1216_v7 = vld [vmem:[%s977_s7] sm:$0xff] }
  0x89   : > { %4503 = vset.pattern.permute.xlu0 %v5102_v0  ;;  %4504 = vset.pattern.permute.xlu2 %v5102_v0  ;;  %s6841_s19 = sld [smem:[#allocation48_spill]]  ;;  %vm1225_vm1 = vcmask 261120   ;;  %v1253_v8 = vld [vmem:[#allocation7 + $0x18] sm:$0xff]  ;;  %v1252_v9 = vld [vmem:[#allocation7 + $0x10] sm:$0xff]  ;;  %v1251_v10 = vld [vmem:[#allocation7 + $0x8] sm:$0xff]  ;;  %vm1661_vm2 = vcmask 31744  }
  0x8a   : > { %s6884_s11 = smov (!%p1151_p3, %s5272_s11), 1  ;;  %4505 = vset.pattern.permute.xlu1 %v5102_v0  ;;  %v1250_v11 = vld [vmem:[#allocation7] sm:$0xff]  ;;  %v1249_v12 = vld [vmem:[%s987_s29] sm:$0xff]  ;;  %s6842_s7 = sld [smem:[#allocation44_spill]]  ;;  %v4506_v28 = vld [vmem:[#allocation6] ss:$0 sm:$0xff] }
  0x8b   : > { %s5459_s2 = sshll.u32 %s6884_s11, 3  ;;  %v1292_v16 = vld [vmem:[#allocation10 + $0x18] sm:$0xff]  ;;  %v1291_v17 = vld [vmem:[#allocation10 + $0x10] sm:$0xff]  ;;  %s5495_s15 = sshll.u32 %s6884_s11, 6  ;;  %v1290_v20 = vld [vmem:[#allocation10 + $0x8] sm:$0xff]  ;;  %vm1363_vm6 = vcmask 64512  }
  0x8c   : > { %1333 = vmatpush.msra.mxu2 %v1292_v16  ;;  %s6844_s0 = sld [smem:[#allocation42_spill]]  ;;  %v1289_v23 = vld [vmem:[#allocation10] sm:$0xff]  ;;  %v4507_v30 = vld [vmem:[#allocation9] ss:$0 sm:$0xff]  ;;  %v5544_v40 = vld [vmem:[#allocation16 + $0x8] sm:$0xff] }
  0x8d   : > { %s6845_s3 = sld [smem:[#allocation47_spill]]  ;;  %v5537_v37 = vld [vmem:[#allocation16] sm:$0xff]  ;;  %v5550_v42 = vld [vmem:[#allocation16 + $0x10] sm:$0xff]  ;;  %v5556_v44 = vld [vmem:[#allocation16 + $0x18] sm:$0xff] }
  0x8e   : > { %s1172_s6 = scalar_lea.vmem %s6840_s30, %s5459_s2  ;;  %s6843_s30 = sld [smem:[#allocation43_spill]]  ;;  %1334 = vmatpush.msra.mxu2 %v1291_v17  ;;  %v5562_v46 = vld [vmem:[#allocation16 + $0x20] sm:$0xff]  ;;  %v5568_v48 = vld [vmem:[#allocation16 + $0x28] sm:$0xff]  ;;  %v5572_v49 = vld [vmem:[#allocation16 + $0x30] sm:$0xff] }
  0x8f   : > { %v1191_v1 = vld [vmem:[%s1172_s6] sm:$0xff]  ;;  %v1220_v2 = vld [vmem:[%s6841_s19 + $0x18] sm:$0xff]  ;;  %v1219_v3 = vld [vmem:[%s6841_s19 + $0x10] sm:$0xff]  ;;  %s6846_s28 = sld [smem:[#allocation45_spill]] }
  0x90   : > { %vm1587_vm0 = vcmp.gt.f32.partialorder %v1191_v1, 0.5  ;;  %1241 = vmatpush.msra.mxu0 %v1220_v2  ;;  %v1218_v5 = vld [vmem:[%s6841_s19 + $0x8] sm:$0xff]  ;;  %v1217_v6 = vld [vmem:[%s6841_s19] sm:$0xff]  ;;  %s1163_s8 = scalar_lea.vmem %s6842_s7, %s5459_s2  ;;  %1335 = vmatpush.msra.mxu2 %v1290_v20  ;;  %s6858_s25 = sld [smem:[#allocation59_spill]] }
  0x91   : > { %v1606_v4 = vsel %vm1587_vm0, 1, %v5102_v0  ;;  %v1597_v13 = vld [vmem:[%s1163_s8] sm:$0xff]  ;;  %s6876_s7 = sld [smem:[#allocation62_spill]] }
  0x92   : > { %1608 = vperm.xlu0 %4503, %v1606_v4   ;;  %1242 = vmatpush.msra.mxu0 %v1219_v3  ;;  %s5502_s17 = scalar_lea.vmem %s6844_s0, %s5495_s15  ;;  %v5576_v50 = vld [vmem:[#allocation16 + $0x38] sm:$0xff]  ;;  %s6860_s0 = sld [smem:[#allocation61_spill]] }
  0x93   : > { %v1281_v24 = vld [vmem:[%s5502_s17] sm:$0xff]  ;;  %1336 = vmatpush.msra.mxu2 %v1289_v23  ;;  %s5522_s4 = scalar_lea.vmem %s6845_s3, %s5495_s15  ;;  %v1282_v25 = vld [vmem:[%s5502_s17 + $0x8] sm:$0xff]  ;;  %v1283_v31 = vld [vmem:[%s5502_s17 + $0x10] sm:$0xff]  ;;  %s6877_s29 = sld [smem:[#allocation63_spill]] }
  0x94   : > { %1243 = vmatpush.msra.mxu0 %v1218_v5  ;;  %s1159_s6 = scalar_lea.vmem %s6843_s30, %s5459_s2  ;;  %4113 = vmatmul.msk.f32.vlgmr.msra.gmra.mxu2 %vm1225_vm1, %v1281_v24  ;;  %v5526_v26 = vld [vmem:[%s5522_s4 + $0x30] sm:$0xff]  ;;  %v5533_v32 = vld [vmem:[%s5522_s4 + $0x38] sm:$0xff]  ;;  %v1285_v41 = vld [vmem:[%s5502_s17 + $0x20] sm:$0xff]  ;;  %s6878_s10 = sld [smem:[#allocation64_spill]] }
  0x95   : > { %v1596_v14 = vld [vmem:[%s1159_s6] sm:$0xff]  ;;  %vm1594_vm4 = vcmp.gt.f32.partialorder %v5526_v26, 0.5  ;;  %vm1595_vm5 = vcmp.gt.f32.partialorder %v5533_v32, 0.5  ;;  %v1284_v39 = vld [vmem:[%s5502_s17 + $0x18] sm:$0xff]  ;;  %v1286_v43 = vld [vmem:[%s5502_s17 + $0x28] sm:$0xff]  ;;  %s5632_s20 = scalar_lea.vmem %s6846_s28, %s5495_s15  ;;  %s6859_s6 = sld [smem:[#allocation58_spill]] }
  0x96   : > { %1244 = vmatpush.msra.mxu0 %v1217_v6  ;;  %v1619_v29 = vsel %vm1594_vm4, 1, %v5102_v0  ;;  %v1620_v38 = vsel %vm1595_vm5, 1, %v5102_v0  ;;  %v1287_v45 = vld [vmem:[%s5502_s17 + $0x30] sm:$0xff]  ;;  %v1288_v47 = vld [vmem:[%s5502_s17 + $0x38] sm:$0xff]  ;;  %v5591_v61 = vld [vmem:[%s5522_s4] sm:$0xff] }
  0x97   : > { %4111 = vmatmul.msk.f32.vlgmr.msra.gmra.mxu0 %vm1225_vm1, %v1216_v7  ;;  %v5594_v63 = vld [vmem:[%s5522_s4 + $0x8] sm:$0xff]  ;;  %vm1588_vm7 = vcmp.gt.f32.partialorder %v5591_v61, 0.5  ;;  %v5601_v3 = vld [vmem:[%s5522_s4 + $0x10] sm:$0xff]  ;;  %v5604_v5 = vld [vmem:[%s5522_s4 + $0x20] sm:$0xff]  ;;  %s1181_s8 = scalar_lea.vmem %s6876_s7, %s5459_s2 }
  0x98   : > { %1273 = vmatpush.msrb.mxu0 %v1253_v8  ;;  %vm1589_vm8 = vcmp.gt.f32.partialorder %v5594_v63, 0.5  ;;  %v1613_v1 = vsel %vm1588_vm7, 1, %v5102_v0  ;;  %vm1590_vm9 = vcmp.gt.f32.partialorder %v5601_v3, 0.5  ;;  %vm1592_vm10 = vcmp.gt.f32.partialorder %v5604_v5, 0.5  ;;  %v5616_v16 = vld [vmem:[%s5522_s4 + $0x28] sm:$0xff] }
  0x99   : > { %v1614_v2 = vsel %vm1589_vm8, 1, %v5102_v0  ;;  %v1615_v6 = vsel %vm1590_vm9, 1, %v5102_v0  ;;  %v1617_v8 = vsel %vm1592_vm10, 1, %v5102_v0  ;;  %v4508_v17 = vld [vmem:[#allocation12] ss:$0 sm:$0xff]  ;;  %vm1593_vm12 = vcmp.gt.f32.partialorder %v5616_v16, 0.5  ;;  %s1185_s26 = scalar_lea.vmem %s6877_s29, %s5459_s2 }
  0x9a   : > { %1274 = vmatpush.msrb.mxu0 %v1252_v9  ;;  %v5611_v9 = vld [vmem:[%s5522_s4 + $0x18] sm:$0xff]  ;;  %vm1837_vm8 = vcmask 1043456   ;;  %vm2099_vm9 = vcmask 523264   ;;  %s1190_s3 = scalar_lea.vmem %s6878_s10, %s5495_s15 }
  0x9b   : > { %vm1591_vm11 = vcmp.gt.f32.partialorder %v5611_v9, 0.5 }
  0x9c   : > { %1275 = vmatpush.msrb.mxu0 %v1251_v10  ;;  %4114 = vmatmul.msk.f32.gmra.mxu2 %vm1225_vm1, %v1282_v25  ;;  %v1438_v25 = vld [vmem:[#allocation13 + $0x8] sm:$0xff] }
  0x9e   : > { %1276 = vmatpush.msrb.mxu0 %v1250_v11  ;;  %v1616_v11 = vsel %vm1591_vm11, 1, %v5102_v0 }
  0x9f   : > { %4112 = vmatmul.msk.f32.vlgmr.msrb.gmra.mxu0 %vm1225_vm1, %v1249_v12 }
  0xa4   : > { %4115 = vmatmul.msk.f32.gmra.mxu2 %vm1225_vm1, %v1283_v31 }
  0xac   : > { %4116 = vmatmul.msk.f32.gmra.mxu2 %vm1225_vm1, %v1284_v39 }
  0xb4   : > { %4117 = vmatmul.msk.f32.gmra.mxu2 %vm1225_vm1, %v1285_v41 }
  0xbc   : > { %4118 = vmatmul.msk.f32.gmra.mxu2 %vm1225_vm1, %v1286_v43 }
  0xc4   : > { %4119 = vmatmul.msk.f32.gmra.mxu2 %vm1225_vm1, %v1287_v45 }
  0xcc   : > { %4120 = vmatmul.msk.f32.gmra.mxu2 %vm1225_vm1, %v1288_v47 }
 0x104   : > { %v5492_v15 = vpop.permute.xlu0 %1608 }
 0x105   : > { %vm1610_vm3 = vcmp.eq.s32.totalorder %v5492_v15, 1 }
 0x106   : > { %v5506_v18 = vsel %vm1610_vm3, %v1597_v13, -10000.0  ;;  %v5510_v19 = vsel %vm1610_vm3, %v1596_v14, -10000.0  ;;  %v1440_v13 = vld [vmem:[#allocation13 + $0x18] sm:$0xff]  ;;  %v1439_v14 = vld [vmem:[#allocation13 + $0x10] sm:$0xff] }
 0x107   : > { %v1673_v21 = vsel %vm1661_vm2, %v5506_v18, -inf  ;;  %v1662_v22 = vsel %vm1661_vm2, %v5510_v19, -inf  ;;  %4350 = vmatpush.msrb.mxu2 %v1440_v13  ;;  %1481 = vmatpush.msra.mxu0 %v1440_v13 }
 0x108   : > { %1674 = vmax.xlane.f32.xlu1 %v1673_v21  ;;  %1663 = vmax.xlane.f32.xlu0 %v1662_v22  ;;  %v1618_v22 = vsel %vm1593_vm12, 1, %v5102_v0 }
 0x109   : > { %4351 = vmatpush.msrb.mxu2 %v1439_v14  ;;  %1482 = vmatpush.msra.mxu0 %v1439_v14 }
 0x10b   : > { %4352 = vmatpush.msrb.mxu2 %v1438_v25  ;;  %1483 = vmatpush.msra.mxu0 %v1438_v25  ;;  %v1602_v25 = vld [vmem:[%s5632_s20 + $0x20] sm:$0xff] }
 0x114   : > { %v1246_v27 = vpop.f32.mrf.mxu0 }
 0x115   : > { %v1247_v33 = vadd.f32 %v4506_v28, %v1246_v27  ;;  %v1437_v27 = vld [vmem:[#allocation13] sm:$0xff] }
 0x116   : > { %4353 = vmatpush.msrb.mxu2 %v1437_v27  ;;  %1484 = vmatpush.msra.mxu0 %v1437_v27 }
 0x117   : > { %v1338_v62 = vpop.f32.mrf.mxu2 }
 0x118   : > { %v1339_v21 = vadd.f32 %v4508_v17, %v1338_v62 }
 0x11c   : > { %1640 = vperm.xlu0 %4503, %v1619_v29   ;;  %v1278_v34 = vpop.f32.mrf.mxu0 }
 0x11d   : > { %v1279_v35 = vadd.f32 %v4507_v30, %v1278_v34 }
 0x11f   : > { %v1362_v36 = vmul.f32 %v1279_v35, %v1247_v33  ;;  %v1341_v4 = vpop.f32.mrf.mxu2 }
 0x120   : > { %v1342_v29 = vadd.f32 %v4508_v17, %v1341_v4  ;;  %v1598_v4 = vld [vmem:[%s5632_s20] sm:$0xff] }
 0x121   : > { %1403 = vmatpush.msra.mxu3 %v1362_v36 }
 0x122   : > { %4121 = vmatmul.msk.f32.vlgmr.msra.gmra.mxu3 %vm1363_vm6, %v5537_v37 }
 0x124   : > { %1643 = vperm.xlu0 %4503, %v1620_v38  }
 0x127   : > { %v1344_v10 = vpop.f32.mrf.mxu2 }
 0x128   : > { %v1345_v33 = vadd.f32 %v4508_v17, %v1344_v10 }
 0x12a   : > { %4122 = vmatmul.msk.f32.gmra.mxu3 %vm1363_vm6, %v5544_v40 }
 0x12f   : > { %v1347_v20 = vpop.f32.mrf.mxu2 }
 0x130   : > { %v1348_v36 = vadd.f32 %v4508_v17, %v1347_v20 }
 0x132   : > { %4123 = vmatmul.msk.f32.gmra.mxu3 %vm1363_vm6, %v5550_v42 }
 0x137   : > { %v1350_v28 = vpop.f32.mrf.mxu2 }
 0x138   : > { %v1351_v43 = vadd.f32 %v4508_v17, %v1350_v28 }
 0x13a   : > { %4124 = vmatmul.msk.f32.gmra.mxu3 %vm1363_vm6, %v5556_v44 }
 0x13f   : > { %v1353_v34 = vpop.f32.mrf.mxu2 }
 0x142   : > { %4125 = vmatmul.msk.f32.gmra.mxu3 %vm1363_vm6, %v5562_v46 }
 0x147   : > { %v1356_v39 = vpop.f32.mrf.mxu2 }
 0x148   : > { %v1357_v45 = vadd.f32 %v4508_v17, %v1356_v39 }
 0x14a   : > { %4126 = vmatmul.msk.f32.gmra.mxu3 %vm1363_vm6, %v5568_v48 }
 0x152   : > { %4127 = vmatmul.msk.f32.gmra.mxu3 %vm1363_vm6, %v5572_v49 }
 0x15a   : > { %4128 = vmatmul.msk.f32.gmra.mxu3 %vm1363_vm6, %v5576_v50 }
 0x17b   : > { %v1675_v51 = vpop.xlane.xlu1 %1674  ;;  %v1664_v52 = vpop.xlane.xlu0 %1663 }
 0x17c   : > { %v1676_v53 = vsub.f32 %v5506_v18, %v1675_v51  ;;  %v1665_v54 = vsub.f32 %v5510_v19, %v1664_v52 }
 0x17e   : > { %v1677_v55 = vmul.f32 1.442695, %v1676_v53  ;;  %v1666_v56 = vmul.f32 1.442695, %v1665_v54  ;;  %v1359_v53 = vpop.f32.mrf.mxu2  ;;  %v1354_v54 = vadd.f32 %v4508_v17, %v1353_v34  ;;  %v5718_v34 = vld [vmem:[#allocation18 + $0x8] sm:$0xff] }
 0x180   : > { %4510 = vpow2.f32 %v1677_v55  ;;  %v1360_v55 = vadd.f32 %v4508_v17, %v1359_v53  ;;  %v1599_v17 = vld [vmem:[%s5632_s20 + $0x8] sm:$0xff] }
 0x181   : > { %4512 = vpow2.f32 %v1666_v56 }
 0x186   : > { %v5582_v57 = vpop.eup %4510 }
 0x187   : > { %v5584_v58 = vpop.eup %4512  ;;  %v1679_v59 = vsel %vm1661_vm2, %v5582_v57, 0.0 }
 0x188   : > { %1680 = vadd.xlane.f32.xlu2 %v1679_v59  ;;  %v1668_v60 = vsel %vm1661_vm2, %v5584_v58, 0.0 }
 0x189   : > { %1669 = vadd.xlane.f32.xlu1 %v1668_v60 }
 0x18e   : > { %v5692_v27 = vpop.permute.xlu0 %1640 }
 0x18f   : > { %vm1651_vm5 = vcmp.eq.s32.totalorder %v5692_v27, 1 }
 0x1a0   : > { %1622 = vperm.xlu2 %4504, %v1613_v1  }
 0x1a2   : > { %1625 = vperm.xlu1 %4505, %v1614_v2  }
 0x1a5   : > { %v1405_v7 = vpop.f32.mrf.mxu3 }
 0x1a6   : > { %v1429_v24 = vmul.f32 %v1405_v7, %v1339_v21 }
 0x1a8   : > { %1628 = vperm.xlu2 %4504, %v1615_v6   ;;  %4129 = vmatmul.msk.f32.vlgmr.msra.gmra.mxu0 %vm1225_vm1, %v1429_v24 }
 0x1aa   : > { %1634 = vperm.xlu1 %4505, %v1617_v8  }
 0x1ad   : > { %v1408_v12 = vpop.f32.mrf.mxu3 }
 0x1ae   : > { %v1430_v31 = vmul.f32 %v1408_v12, %v1342_v29 }
 0x1b0   : > { %1631 = vperm.xlu2 %4504, %v1616_v11   ;;  %4130 = vmatmul.msk.f32.gmra.mxu0 %vm1225_vm1, %v1430_v31 }
 0x1b5   : > { %v1411_v23 = vpop.f32.mrf.mxu3 }
 0x1b6   : > { %v1431_v35 = vmul.f32 %v1411_v23, %v1345_v33  ;;  %v1603_v23 = vld [vmem:[%s5632_s20 + $0x28] sm:$0xff]  ;;  %v1604_v33 = vld [vmem:[%s5632_s20 + $0x30] sm:$0xff] }
 0x1b8   : > { %1637 = vperm.xlu2 %4504, %v1618_v22   ;;  %4131 = vmatmul.msk.f32.gmra.mxu0 %vm1225_vm1, %v1431_v35  ;;  %v5724_v35 = vpop.permute.xlu0 %1643 }
 0x1b9   : > { %vm1652_vm7 = vcmp.eq.s32.totalorder %v5724_v35, 1 }
 0x1bd   : > { %v1414_v30 = vpop.f32.mrf.mxu3 }
 0x1be   : > { %v1432_v41 = vmul.f32 %v1414_v30, %v1348_v36 }
 0x1c0   : > { %4132 = vmatmul.msk.f32.gmra.mxu0 %vm1225_vm1, %v1432_v41 }
 0x1c5   : > { %v1417_v0 = vpop.f32.mrf.mxu3 }
 0x1c6   : > { %v1433_v51 = vmul.f32 %v1417_v0, %v1351_v43  ;;  %v5722_v0 = vsel %vm1651_vm5, %v1604_v33, -10000.0  ;;  %v5744_v43 = vld [vmem:[#allocation18 + $0x18] sm:$0xff] }
 0x1c7   : > { %v1702_v36 = vsel %vm1661_vm2, %v5722_v0, -inf  ;;  %6848 = vst [vmem:[#allocation30_spill] sm:$0xff] %v5744_v43 }
 0x1c8   : > { %4133 = vmatmul.msk.f32.gmra.mxu0 %vm1225_vm1, %v1433_v51  ;;  %v1215_v51 = vld [vmem:[#allocation18 + $0x38] sm:$0xff] }
 0x1cd   : > { %v1420_v38 = vpop.f32.mrf.mxu3 }
 0x1ce   : > { %v1434_v59 = vmul.f32 %v1420_v38, %v1354_v54  ;;  %v5734_v38 = vld [vmem:[#allocation18 + $0x10] sm:$0xff] }
 0x1cf   : > { %6847 = vst [vmem:[#allocation29_spill] sm:$0xff] %v5734_v38 }
 0x1d0   : > { %4134 = vmatmul.msk.f32.gmra.mxu0 %vm1225_vm1, %v1434_v59 }
 0x1d5   : > { %v1423_v47 = vpop.f32.mrf.mxu3 }
 0x1d6   : > { %v1435_v52 = vmul.f32 %v1423_v47, %v1357_v45  ;;  %v1213_v45 = vld [vmem:[#allocation18 + $0x28] sm:$0xff]  ;;  %v1214_v47 = vld [vmem:[#allocation18 + $0x30] sm:$0xff] }
 0x1d8   : > { %4135 = vmatmul.msk.f32.vlgmr.msrb.gmra.mxu2 %vm1225_vm1, %v1435_v52 }
 0x1dd   : > { %v1426_v56 = vpop.f32.mrf.mxu3 }
 0x1de   : > { %v1436_v60 = vmul.f32 %v1426_v56, %v1360_v55  ;;  %v5755_v55 = vld [vmem:[#allocation19] sm:$0xf] }
 0x1df   : > { %4145 = vmatpush.msk.msrb.mxu3 %vm1837_vm8, %v5755_v55 }
 0x1e0   : > { %4136 = vmatmul.msk.f32.gmra.mxu2 %vm1225_vm1, %v1436_v60 }
 0x1fb   : > { %v1681_v62 = vpop.xlane.xlu2 %1680 }
 0x1fc   : > { %4514 = vrcp.f32 %v1681_v62  ;;  %v1670_v1 = vpop.xlane.xlu1 %1669  ;;  %v5764_v62 = vld [vmem:[%s6763_s21] sm:$0xf] }
 0x1fd   : > { %4516 = vrcp.f32 %v1670_v1  ;;  %6849 = vst [vmem:[#allocation31_spill] sm:$0xff] %v5764_v62  ;;  %4162 = vmatpush.msk.msrb.mxu0 %vm1837_vm8, %v5764_v62 }
 0x202   : > { %v4515_v2 = vpop.eup %4514 }
 0x203   : > { %v4517_v6 = vpop.eup %4516  ;;  %v5635_v7 = vpop.permute.xlu2 %1622  ;;  %v1683_v10 = vmul.f32 %v4515_v2, %v5582_v57  ;;  %v1600_v57 = vld [vmem:[%s5632_s20 + $0x10] sm:$0xff] }
 0x204   : > { %vm1645_vm13 = vcmp.eq.s32.totalorder %v5635_v7, 1  ;;  %v1672_v8 = vmul.f32 %v4517_v6, %v5584_v58 }
 0x205   : > { %v5642_v11 = vsel %vm1645_vm13, %v1598_v4, -10000.0 }
 0x206   : > { %1787 = vmatpush.msra.mxu1 %v1672_v8  ;;  %4354 = vmatpush.msra.mxu2 %v1672_v8  ;;  %v1684_v12 = vsel %vm1661_vm2, %v5642_v11, -inf }
 0x207   : > { %4142 = vmatmul.msk.f32.vlgmr.msra.gmra.mxu2 %vm1363_vm6, %v5568_v48  ;;  %1685 = vmax.xlane.f32.xlu1 %v1684_v12 }
 0x208   : > { %1921 = vmatpush.msrb.mxu2 %v1683_v10  ;;  %4137 = vmatmul.msk.f32.vlgmr.msra.gmra.mxu1 %vm1363_vm6, %v5537_v37  ;;  %v1601_v37 = vld [vmem:[%s5632_s20 + $0x18] sm:$0xff] }
 0x20b   : > { %v5651_v58 = vpop.permute.xlu2 %1628 }
 0x20c   : > { %vm1647_vm14 = vcmp.eq.s32.totalorder %v5651_v58, 1 }
 0x20d   : > { %v5656_v13 = vsel %vm1647_vm14, %v1600_v57, -10000.0 }
 0x20e   : > { %v1690_v14 = vsel %vm1661_vm2, %v5656_v13, -inf }
 0x20f   : > { %4143 = vmatmul.msk.f32.gmra.mxu2 %vm1363_vm6, %v5572_v49  ;;  %1691 = vmax.xlane.f32.xlu0 %v1690_v14 }
 0x210   : > { %4138 = vmatmul.msk.f32.gmra.mxu1 %vm1363_vm6, %v5544_v40 }
 0x213   : > { %v5665_v48 = vpop.permute.xlu2 %1631 }
 0x214   : > { %vm1648_vm15 = vcmp.eq.s32.totalorder %v5665_v48, 1  ;;  %v5669_v20 = vpop.permute.xlu1 %1625 }
 0x215   : > { %vm1646_vm0 = vcmp.eq.s32.totalorder %v5669_v20, 1  ;;  %v5674_v21 = vsel %vm1648_vm15, %v1601_v37, -10000.0 }
 0x216   : > { %v1693_v49 = vsel %vm1661_vm2, %v5674_v21, -inf  ;;  %v5680_v40 = vsel %vm1646_vm0, %v1599_v17, -10000.0 }
 0x217   : > { %4144 = vmatmul.msk.f32.gmra.mxu2 %vm1363_vm6, %v5576_v50  ;;  %1694 = vmax.xlane.f32.xlu1 %v1693_v49  ;;  %v1687_v22 = vsel %vm1661_vm2, %v5680_v40, -inf  ;;  %v5697_v50 = vld [vmem:[#allocation18] sm:$0xff] }
 0x218   : > { %1688 = vmax.xlane.f32.xlu2 %v1687_v22  ;;  %4139 = vmatmul.msk.f32.gmra.mxu1 %vm1363_vm6, %v5550_v42 }
 0x21b   : > { %v5689_v24 = vpop.permute.xlu2 %1637 }
 0x21c   : > { %vm1650_vm1 = vcmp.eq.s32.totalorder %v5689_v24, 1  ;;  %v5695_v28 = vpop.permute.xlu1 %1634 }
 0x21d   : > { %vm1649_vm4 = vcmp.eq.s32.totalorder %v5695_v28, 1  ;;  %v5702_v29 = vsel %vm1650_vm1, %v1603_v23, -10000.0 }
 0x21e   : > { %v1699_v42 = vsel %vm1661_vm2, %v5702_v29, -inf  ;;  %v5708_v30 = vsel %vm1649_vm4, %v1602_v25, -10000.0 }
 0x21f   : > { %4154 = vmatmul.msk.f32.vlgmr.msrb.gmra.mxu2 %vm1363_vm6, %v5697_v50  ;;  %1700 = vmax.xlane.f32.xlu1 %v1699_v42  ;;  %v1696_v31 = vsel %vm1661_vm2, %v5708_v30, -inf }
 0x220   : > { %1697 = vmax.xlane.f32.xlu2 %v1696_v31  ;;  %4140 = vmatmul.msk.f32.gmra.mxu1 %vm1363_vm6, %v5556_v44  ;;  %v1605_v44 = vld [vmem:[%s5632_s20 + $0x38] sm:$0xff] }
 0x221   : > { %v5738_v39 = vsel %vm1652_vm7, %v1605_v44, -10000.0 }
 0x222   : > { %v1705_v41 = vsel %vm1661_vm2, %v5738_v39, -inf }
 0x227   : > { %4155 = vmatmul.msk.f32.gmra.mxu2 %vm1363_vm6, %v5718_v34 }
 0x228   : > { %1703 = vmax.xlane.f32.xlu2 %v1702_v36  ;;  %4141 = vmatmul.msk.f32.gmra.mxu1 %vm1363_vm6, %v5562_v46  ;;  %v1212_v46 = vld [vmem:[#allocation18 + $0x20] sm:$0xff] }
 0x22f   : > { %4156 = vmatmul.msk.f32.gmra.mxu2 %vm1363_vm6, %v5734_v38 }
 0x230   : > { %1706 = vmax.xlane.f32.xlu2 %v1705_v41 }
 0x237   : > { %4157 = vmatmul.msk.f32.gmra.mxu2 %vm1363_vm6, %v5744_v43 }
 0x23f   : > { %4158 = vmatmul.msk.f32.gmra.mxu2 %vm1363_vm6, %v1212_v46 }
 0x247   : > { %4159 = vmatmul.msk.f32.gmra.mxu2 %vm1363_vm6, %v1213_v45 }
 0x24f   : > { %4160 = vmatmul.msk.f32.gmra.mxu2 %vm1363_vm6, %v1214_v47 }
 0x257   : > { %4161 = vmatmul.msk.f32.gmra.mxu2 %vm1363_vm6, %v1215_v51 }
 0x25b   : > { %v5752_v52 = vpop.f32.mrf.mxu2 }
 0x263   : > { %v5759_v59 = vpop.f32.mrf.mxu2 }
 0x27a   : > { %v1686_v53 = vpop.xlane.xlu1 %1685 }
 0x27b   : > { %v1708_v54 = vsub.f32 %v5642_v11, %v1686_v53 }
 0x27d   : > { %v1716_v56 = vmul.f32 1.442695, %v1708_v54 }
 0x27f   : > { %4518 = vpow2.f32 %v1716_v56 }
 0x282   : > { %v1692_v60 = vpop.xlane.xlu0 %1691 }
 0x283   : > { %v1710_v1 = vsub.f32 %v5656_v13, %v1692_v60 }
 0x285   : > { %v5769_v2 = vpop.eup %4518  ;;  %v1720_v4 = vmul.f32 1.442695, %v1710_v1  ;;  %v1789_v6 = vpop.f32.mrf.mxu1 }
 0x286   : > { %v1732_v8 = vsel %vm1661_vm2, %v5769_v2, 0.0  ;;  %4146 = vmatmul.msk.f32.vlgmr.msrb.gmra.mxu3 %vm1661_vm2, %v1789_v6 }
 0x287   : > { %4520 = vpow2.f32 %v1720_v4  ;;  %1733 = vadd.xlane.f32.xlu1 %v1732_v8 }
 0x28a   : > { %v1804_v10 = vpop.f32.mrf.mxu2  ;;  %v1695_v12 = vpop.xlane.xlu1 %1694 }
 0x28b   : > { %v1689_v57 = vpop.xlane.xlu2 %1688  ;;  %v1711_v14 = vsub.f32 %v5674_v21, %v1695_v12 }
 0x28c   : > { %v1709_v37 = vsub.f32 %v5680_v40, %v1689_v57 }
 0x28d   : > { %v5776_v17 = vpop.eup %4520  ;;  %v1722_v49 = vmul.f32 1.442695, %v1711_v14  ;;  %v1792_v22 = vpop.f32.mrf.mxu1 }
 0x28e   : > { %v1718_v23 = vmul.f32 1.442695, %v1709_v37  ;;  %v1738_v25 = vsel %vm1661_vm2, %v5776_v17, 0.0  ;;  %4147 = vmatmul.msk.f32.gmra.mxu3 %vm1661_vm2, %v1792_v22 }
 0x28f   : > { %4522 = vpow2.f32 %v1722_v49  ;;  %1739 = vadd.xlane.f32.xlu0 %v1738_v25 }
 0x290   : > { %4524 = vpow2.f32 %v1718_v23 }
 0x292   : > { %v1807_v42 = vpop.f32.mrf.mxu2  ;;  %v1701_v31 = vpop.xlane.xlu1 %1700 }
 0x293   : > { %v1698_v33 = vpop.xlane.xlu2 %1697  ;;  %v1713_v36 = vsub.f32 %v5702_v29, %v1701_v31 }
 0x294   : > { %v1712_v44 = vsub.f32 %v5708_v30, %v1698_v33 }
 0x295   : > { %v5783_v41 = vpop.eup %4522  ;;  %v1726_v46 = vmul.f32 1.442695, %v1713_v36  ;;  %v1795_v45 = vpop.f32.mrf.mxu1 }
 0x296   : > { %v5785_v47 = vpop.eup %4524  ;;  %v1724_v51 = vmul.f32 1.442695, %v1712_v44  ;;  %v1741_v53 = vsel %vm1661_vm2, %v5783_v41, 0.0  ;;  %4148 = vmatmul.msk.f32.gmra.mxu3 %vm1661_vm2, %v1795_v45 }
 0x297   : > { %4526 = vpow2.f32 %v1726_v46  ;;  %v1735_v54 = vsel %vm1661_vm2, %v5785_v47, 0.0  ;;  %1742 = vadd.xlane.f32.xlu2 %v1741_v53 }
 0x298   : > { %4528 = vpow2.f32 %v1724_v51  ;;  %1736 = vadd.xlane.f32.xlu1 %v1735_v54 }
 0x29a   : > { %v1810_v56 = vpop.f32.mrf.mxu2 }
 0x29b   : > { %v1704_v60 = vpop.xlane.xlu2 %1703 }
 0x29c   : > { %v1714_v1 = vsub.f32 %v5722_v0, %v1704_v60 }
 0x29d   : > { %v5793_v4 = vpop.eup %4526  ;;  %v1798_v6 = vpop.f32.mrf.mxu1 }
 0x29e   : > { %v5795_v8 = vpop.eup %4528  ;;  %v1728_v12 = vmul.f32 1.442695, %v1714_v1  ;;  %v1747_v57 = vsel %vm1661_vm2, %v5793_v4, 0.0  ;;  %4149 = vmatmul.msk.f32.gmra.mxu3 %vm1661_vm2, %v1798_v6 }
 0x29f   : > { %v1744_v14 = vsel %vm1661_vm2, %v5795_v8, 0.0  ;;  %1748 = vadd.xlane.f32.xlu0 %v1747_v57 }
 0x2a0   : > { %4530 = vpow2.f32 %v1728_v12  ;;  %1745 = vadd.xlane.f32.xlu1 %v1744_v14 }
 0x2a2   : > { %v1923_v37 = vpop.f32.mrf.mxu2 }
 0x2a3   : > { %4163 = vmatmul.msk.f32.vlgmr.msrb.gmra.mxu0 %vm1661_vm2, %v1923_v37  ;;  %v1707_v49 = vpop.xlane.xlu2 %1706 }
 0x2a4   : > { %v1715_v22 = vsub.f32 %v5738_v39, %v1707_v49 }
 0x2a5   : > { %v1801_v23 = vpop.f32.mrf.mxu1 }
 0x2a6   : > { %v5804_v25 = vpop.eup %4530  ;;  %v1730_v31 = vmul.f32 1.442695, %v1715_v22  ;;  %4150 = vmatmul.msk.f32.gmra.mxu3 %vm1661_vm2, %v1801_v23 }
 0x2a7   : > { %v1750_v33 = vsel %vm1661_vm2, %v5804_v25, 0.0 }
 0x2a8   : > { %4532 = vpow2.f32 %v1730_v31  ;;  %1751 = vadd.xlane.f32.xlu2 %v1750_v33  ;;  %v1570_v31 = vld [vmem:[%s6765_s23 + $0x38] sm:$0xff]  ;;  %v1568_v33 = vld [vmem:[%s6765_s23 + $0x28] sm:$0xff] }
 0x2a9   : > { %2132 = vmatpush.msra.mxu3 %v1570_v31 }
 0x2aa   : > { %v1926_v36 = vpop.f32.mrf.mxu2 }
 0x2ab   : > { %4164 = vmatmul.msk.f32.gmra.mxu0 %vm1661_vm2, %v1926_v36  ;;  %v5875_v36 = vld [vmem:[%s6766_s24 + $0x28] sm:$0xff] }
 0x2ac   : > { %6852 = vst [vmem:[#allocation34_spill] sm:$0xff] %v5875_v36 }
 0x2ae   : > { %v5810_v44 = vpop.eup %4532  ;;  %4151 = vmatmul.msk.f32.gmra.mxu3 %vm1661_vm2, %v1804_v10 }
 0x2af   : > { %v1753_v46 = vsel %vm1661_vm2, %v5810_v44, 0.0 }
 0x2b0   : > { %1754 = vadd.xlane.f32.xlu1 %v1753_v46  ;;  %v1567_v46 = vld [vmem:[%s6765_s23 + $0x20] sm:$0xff] }
 0x2b2   : > { %v1929_v45 = vpop.f32.mrf.mxu2 }
 0x2b3   : > { %4165 = vmatmul.msk.f32.gmra.mxu0 %vm1661_vm2, %v1929_v45  ;;  %1512 = vperm.xlu0 %4503, %v5591_v61   ;;  %v5884_v45 = vld [vmem:[%s6766_s24 + $0x20] sm:$0xff] }
 0x2b4   : > { %6853 = vst [vmem:[#allocation35_spill] sm:$0xff] %v5884_v45 }
 0x2b6   : > { %4152 = vmatmul.msk.f32.gmra.mxu3 %vm1661_vm2, %v1807_v42 }
 0x2ba   : > { %v1932_v51 = vpop.f32.mrf.mxu2 }
 0x2bb   : > { %4166 = vmatmul.msk.f32.gmra.mxu0 %vm1661_vm2, %v1932_v51  ;;  %1527 = vperm.xlu0 %4503, %v5611_v9  }
 0x2be   : > { %4153 = vmatmul.msk.f32.gmra.mxu3 %vm1661_vm2, %v1810_v56 }
 0x2c0   : > { %1517 = vperm.xlu2 %4504, %v5594_v63  }
 0x2c2   : > { %v1935_v10 = vpop.f32.mrf.mxu2 }
 0x2c3   : > { %4167 = vmatmul.msk.f32.gmra.mxu0 %vm1661_vm2, %v1935_v10  ;;  %1537 = vperm.xlu0 %4503, %v5616_v16   ;;  %v5834_v16 = vld [vmem:[%s6764_s22] sm:$0xf]  ;;  %v1566_v10 = vld [vmem:[%s6765_s23 + $0x18] sm:$0xff] }
 0x2c4   : > { %4171 = vmatpush.msk.msrb.mxu1 %vm1837_vm8, %v5834_v16 }
 0x2c8   : > { %1532 = vperm.xlu2 %4504, %v5604_v5  }
 0x2c9   : > { %1522 = vperm.xlu1 %4505, %v5601_v3  }
 0x2ca   : > { %v1938_v61 = vpop.f32.mrf.mxu2 }
 0x2cb   : > { %4168 = vmatmul.msk.f32.gmra.mxu0 %vm1661_vm2, %v1938_v61  ;;  %v5893_v61 = vld [vmem:[%s6766_s24 + $0x18] sm:$0xff] }
 0x2cc   : > { %6854 = vst [vmem:[#allocation36_spill] sm:$0xff] %v5893_v61 }
 0x2d0   : > { %1547 = vperm.xlu2 %4504, %v5533_v32  }
 0x2d1   : > { %1542 = vperm.xlu1 %4505, %v5526_v26  }
 0x2d2   : > { %v1941_v9 = vpop.f32.mrf.mxu2 }
 0x2d3   : > { %4169 = vmatmul.msk.f32.gmra.mxu0 %vm1661_vm2, %v1941_v9 }
 0x2da   : > { %v1944_v63 = vpop.f32.mrf.mxu2 }
 0x2db   : > { %4170 = vmatmul.msk.f32.gmra.mxu0 %vm1661_vm2, %v1944_v63  ;;  %v1486_v63 = vpop.f32.mrf.mxu0 }
 0x2fa   : > { %v1734_v3 = vpop.xlane.xlu1 %1733 }
 0x2fb   : > { %4534 = vrcp.f32 %v1734_v3  ;;  %v1489_v3 = vpop.f32.mrf.mxu0 }
 0x301   : > { %v4535_v5 = vpop.eup %4534 }
 0x302   : > { %v1764_v32 = vmul.f32 %v4535_v5, %v5769_v2  ;;  %v1740_v42 = vpop.xlane.xlu0 %1739 }
 0x303   : > { %v1492_v5 = vpop.f32.mrf.mxu0 }
 0x304   : > { %4172 = vmatmul.msk.f32.vlgmr.msrb.gmra.mxu1 %vm1661_vm2, %v1764_v32 }
 0x30a   : > { %v1743_v56 = vpop.xlane.xlu2 %1742 }
 0x30b   : > { %v1737_v26 = vpop.xlane.xlu1 %1736  ;;  %v1495_v32 = vpop.f32.mrf.mxu0 }
 0x30c   : > { %4536 = vrcp.f32 %v1737_v26  ;;  %v1565_v26 = vld [vmem:[%s6765_s23 + $0x10] sm:$0xff] }
 0x30d   : > { %4538 = vrcp.f32 %v1740_v42  ;;  %v5905_v42 = vld [vmem:[%s6766_s24 + $0x10] sm:$0xff] }
 0x30e   : > { %4540 = vrcp.f32 %v1743_v56  ;;  %6855 = vst [vmem:[#allocation37_spill] sm:$0xff] %v5905_v42  ;;  %v5923_v56 = vld [vmem:[%s6766_s24] sm:$0xff] }
 0x30f   : > { %6857 = vst [vmem:[#allocation39_spill] sm:$0xff] %v5923_v56 }
 0x312   : > { %v4537_v53 = vpop.eup %4536  ;;  %v1749_v57 = vpop.xlane.xlu0 %1748 }
 0x313   : > { %v1765_v54 = vmul.f32 %v4537_v53, %v5785_v47  ;;  %v4539_v60 = vpop.eup %4538  ;;  %v1746_v6 = vpop.xlane.xlu1 %1745  ;;  %v5914_v53 = vld [vmem:[%s6766_s24 + $0x8] sm:$0xff] }
 0x314   : > { %v1766_v1 = vmul.f32 %v4539_v60, %v5776_v17  ;;  %v4541_v2 = vpop.eup %4540  ;;  %4542 = vrcp.f32 %v1746_v6  ;;  %6856 = vst [vmem:[#allocation38_spill] sm:$0xff] %v5914_v53  ;;  %v1498_v60 = vpop.f32.mrf.mxu0  ;;  %v5930_v6 = vld [vmem:[#allocation15] ss:$0 sm:$0xff] }
 0x315   : > { %4173 = vmatmul.msk.f32.gmra.mxu1 %vm1661_vm2, %v1765_v54  ;;  %v1767_v12 = vmul.f32 %v4541_v2, %v5783_v41  ;;  %4544 = vrcp.f32 %v1749_v57  ;;  %v1563_v54 = vld [vmem:[%s6765_s23] sm:$0xff]  ;;  %v5932_v2 = vpop.f32.mrf.mxu3  ;;  %v1487_v57 = vadd.f32 %v5930_v6, %v1486_v63 }
 0x31a   : > { %v4543_v14 = vpop.eup %4542 }
 0x31b   : > { %v1768_v47 = vmul.f32 %v4543_v14, %v5795_v8  ;;  %v1752_v37 = vpop.xlane.xlu2 %1751  ;;  %v4545_v49 = vpop.eup %4544  ;;  %v5857_v8 = vld [vmem:[%s6766_s24 + $0x38] sm:$0xff] }
 0x31c   : > { %4546 = vrcp.f32 %v1752_v37  ;;  %v1769_v17 = vmul.f32 %v4545_v49, %v5793_v4  ;;  %6850 = vst [vmem:[#allocation32_spill] sm:$0xff] %v5857_v8  ;;  %v1569_v4 = vld [vmem:[%s6765_s23 + $0x30] sm:$0xff]  ;;  %2228 = vmatpush.msra.mxu0 %v5857_v8 }
 0x31d   : > { %4174 = vmatmul.msk.f32.gmra.mxu1 %vm1661_vm2, %v1766_v1  ;;  %2133 = vmatpush.msra.mxu3 %v1569_v4  ;;  %v5928_v1 = vpop.f32.mrf.mxu0 }
 0x31f   : > { %2134 = vmatpush.msra.mxu3 %v1568_v33 }
 0x321   : > { %2135 = vmatpush.msra.mxu3 %v1567_v46 }
 0x322   : > { %v4547_v23 = vpop.eup %4546 }
 0x323   : > { %v1755_v22 = vpop.xlane.xlu1 %1754  ;;  %v1770_v41 = vmul.f32 %v4547_v23, %v5804_v25  ;;  %v5866_v25 = vld [vmem:[%s6766_s24 + $0x30] sm:$0xff]  ;;  %2136 = vmatpush.msra.mxu3 %v1566_v10 }
 0x324   : > { %4548 = vrcp.f32 %v1755_v22  ;;  %6851 = vst [vmem:[#allocation33_spill] sm:$0xff] %v5866_v25  ;;  %2229 = vmatpush.msra.mxu0 %v5866_v25  ;;  %v5944_v22 = vpop.f32.mrf.mxu3 }
 0x325   : > { %4175 = vmatmul.msk.f32.gmra.mxu1 %vm1661_vm2, %v1767_v12  ;;  %2137 = vmatpush.msra.mxu3 %v1565_v26  ;;  %v1513_v12 = vpop.permute.xlu0 %1512  ;;  %v5935_v14 = vpop.f32.mrf.mxu0 }
 0x326   : > { %2230 = vmatpush.msra.mxu0 %v5875_v36 }
 0x328   : > { %2231 = vmatpush.msra.mxu0 %v5884_v45 }
 0x32a   : > { %v4549_v51 = vpop.eup %4548  ;;  %2232 = vmatpush.msra.mxu0 %v5893_v61 }
 0x32b   : > { %v1771_v9 = vmul.f32 %v4549_v51, %v5810_v44  ;;  %v1564_v44 = vld [vmem:[%s6765_s23 + $0x8] sm:$0xff]  ;;  %v1490_v51 = vadd.f32 %v5930_v6, %v1489_v3 }
 0x32c   : > { %2233 = vmatpush.msra.mxu0 %v5905_v42  ;;  %2138 = vmatpush.msra.mxu3 %v1564_v44  ;;  %v5951_v63 = vpop.f32.mrf.mxu3 }
 0x32d   : > { %4176 = vmatmul.msk.f32.gmra.mxu1 %vm1661_vm2, %v1768_v47  ;;  %v5937_v47 = vmul.f32 %v1513_v12, %v1487_v57  ;;  %v5946_v23 = vpop.f32.mrf.mxu0 }
 0x32e   : > { %2234 = vmatpush.msra.mxu0 %v5914_v53  ;;  %2139 = vmatpush.msra.mxu3 %v1563_v54 }
 0x330   : > { %2235 = vmatpush.msra.mxu0 %v5923_v56  ;;  %4214 = vmatpush.msk.msrb.mxu3 %vm1837_vm8, %v5755_v55 }
 0x335   : > { %4177 = vmatmul.msk.f32.gmra.mxu1 %vm1661_vm2, %v1769_v17  ;;  %v5953_v12 = vpop.f32.mrf.mxu0 }
 0x33d   : > { %4178 = vmatmul.msk.f32.gmra.mxu1 %vm1661_vm2, %v1770_v41  ;;  %v1518_v41 = vpop.permute.xlu2 %1517 }
 0x345   : > { %4179 = vmatmul.msk.f32.gmra.mxu1 %vm1661_vm2, %v1771_v9  ;;  %v5949_v9 = vmul.f32 %v1518_v41, %v1490_v51 }
 0x381   : > { %v2059_v37 = vpop.f32.mrf.mxu1 }
 0x382   : > { %v2083_v49 = vmul.f32 %v2059_v37, %v5937_v47 }
 0x384   : > { %v2091_v55 = vmul.f32 %v2083_v49, %v5935_v14  ;;  %v2188_v17 = vmul.f32 %v2083_v49, %v5932_v2 }
 0x386   : > { %4180 = vmatmul.msk.f32.vlgmr.msra.gmra.mxu3 %vm2099_vm9, %v2091_v55  ;;  %4189 = vmatmul.msk.f32.vlgmr.msra.gmra.mxu0 %vm2099_vm9, %v2188_v17  ;;  %v1528_v17 = vpop.permute.xlu0 %1527 }
 0x387   : > { %2820 = vmatpush.msra.mxu3 %v1570_v31 }
 0x389   : > { %2821 = vmatpush.msra.mxu3 %v1569_v4 }
 0x38b   : > { %2822 = vmatpush.msra.mxu3 %v1568_v33  ;;  %v1523_v33 = vpop.permute.xlu1 %1522 }
 0x38d   : > { %2823 = vmatpush.msra.mxu3 %v1567_v46  ;;  %v1493_v46 = vadd.f32 %v5930_v6, %v1492_v5  ;;  %v1496_v5 = vadd.f32 %v5930_v6, %v1495_v32  ;;  %v1499_v32 = vadd.f32 %v5930_v6, %v1498_v60 }
 0x38f   : > { %2824 = vmatpush.msra.mxu3 %v1566_v10  ;;  %v5961_v10 = vmul.f32 %v1523_v33, %v1493_v46  ;;  %v5973_v41 = vmul.f32 %v1528_v17, %v1496_v5  ;;  %v1533_v33 = vpop.permute.xlu2 %1532  ;;  %v1538_v5 = vpop.permute.xlu0 %1537 }
 0x391   : > { %2825 = vmatpush.msra.mxu3 %v1565_v26  ;;  %v5963_v26 = vpop.f32.mrf.mxu3 }
 0x392   : > { %v2062_v57 = vpop.f32.mrf.mxu1 }
 0x393   : > { %v2084_v37 = vmul.f32 %v2062_v57, %v5949_v9  ;;  %2826 = vmatpush.msra.mxu3 %v1564_v44  ;;  %v5966_v44 = vpop.f32.mrf.mxu0 }
 0x395   : > { %v2092_v31 = vmul.f32 %v2084_v37, %v5946_v23  ;;  %v2189_v4 = vmul.f32 %v2084_v37, %v5944_v22  ;;  %2827 = vmatpush.msra.mxu3 %v1563_v54 }
 0x397   : > { %4181 = vmatmul.msk.f32.gmra.mxu3 %vm2099_vm9, %v2092_v31  ;;  %4190 = vmatmul.msk.f32.gmra.mxu0 %vm2099_vm9, %v2189_v4  ;;  %v1548_v53 = vpop.permute.xlu2 %1547 }
 0x399   : > { %v5976_v37 = vpop.f32.mrf.mxu3 }
 0x39a   : > { %v2065_v3 = vpop.f32.mrf.mxu1 }
 0x39b   : > { %v2085_v49 = vmul.f32 %v2065_v3, %v5961_v10  ;;  %v5980_v46 = vpop.f32.mrf.mxu0  ;;  %v5985_v3 = vmul.f32 %v1533_v33, %v1499_v32 }
 0x39d   : > { %v2093_v55 = vmul.f32 %v2085_v49, %v5953_v12  ;;  %v2190_v54 = vmul.f32 %v2085_v49, %v5951_v63 }
 0x39f   : > { %4182 = vmatmul.msk.f32.gmra.mxu3 %vm2099_vm9, %v2093_v55  ;;  %4191 = vmatmul.msk.f32.gmra.mxu0 %vm2099_vm9, %v2190_v54 }
 0x3a2   : > { %v2068_v51 = vpop.f32.mrf.mxu1 }
 0x3a3   : > { %v2086_v57 = vmul.f32 %v2068_v51, %v5973_v41  ;;  %v1502_v51 = vadd.f32 %v5930_v6, %v5928_v1  ;;  %v5996_v60 = vpop.f32.mrf.mxu0  ;;  %v1505_v1 = vadd.f32 %v5930_v6, %v5752_v52  ;;  %v1508_v52 = vadd.f32 %v5930_v6, %v5759_v59 }
 0x3a5   : > { %v2094_v31 = vmul.f32 %v2086_v57, %v5966_v44  ;;  %v2191_v4 = vmul.f32 %v2086_v57, %v5963_v26  ;;  %v5992_v57 = vpop.f32.mrf.mxu3 }
 0x3a7   : > { %4183 = vmatmul.msk.f32.gmra.mxu3 %vm2099_vm9, %v2094_v31  ;;  %4192 = vmatmul.msk.f32.gmra.mxu0 %vm2099_vm9, %v2191_v4  ;;  %v5998_v31 = vmul.f32 %v1538_v5, %v1502_v51 }
 0x3aa   : > { %v2071_v49 = vpop.f32.mrf.mxu1 }
 0x3ab   : > { %v2087_v55 = vmul.f32 %v2071_v49, %v5985_v3  ;;  %v6011_v5 = vpop.f32.mrf.mxu0 }
 0x3ad   : > { %v2095_v54 = vmul.f32 %v2087_v55, %v5980_v46  ;;  %v2192_v17 = vmul.f32 %v2087_v55, %v5976_v37  ;;  %v1543_v55 = vpop.permute.xlu1 %1542 }
 0x3af   : > { %4184 = vmatmul.msk.f32.gmra.mxu3 %vm2099_vm9, %v2095_v54  ;;  %4193 = vmatmul.msk.f32.gmra.mxu0 %vm2099_vm9, %v2192_v17  ;;  %v6007_v54 = vmul.f32 %v1543_v55, %v1505_v1  ;;  %v6009_v17 = vpop.f32.mrf.mxu3 }
 0x3b2   : > { %v2074_v4 = vpop.f32.mrf.mxu1 }
 0x3b3   : > { %v2088_v33 = vmul.f32 %v2074_v4, %v5998_v31 }
 0x3b5   : > { %v2096_v32 = vmul.f32 %v2088_v33, %v5996_v60  ;;  %v2193_v49 = vmul.f32 %v2088_v33, %v5992_v57 }
 0x3b7   : > { %4185 = vmatmul.msk.f32.gmra.mxu3 %vm2099_vm9, %v2096_v32  ;;  %4194 = vmatmul.msk.f32.gmra.mxu0 %vm2099_vm9, %v2193_v49  ;;  %v6020_v32 = vmul.f32 %v1548_v53, %v1508_v52  ;;  %v6023_v1 = vpop.f32.mrf.mxu3 }
 0x3ba   : > { %v2077_v51 = vpop.f32.mrf.mxu1 }
 0x3bb   : > { %v2089_v4 = vmul.f32 %v2077_v51, %v6007_v54  ;;  %v6025_v51 = vpop.f32.mrf.mxu0 }
 0x3bd   : > { %v2097_v56 = vmul.f32 %v2089_v4, %v6011_v5  ;;  %v2194_v33 = vmul.f32 %v2089_v4, %v6009_v17 }
 0x3bf   : > { %4186 = vmatmul.msk.f32.gmra.mxu3 %vm2099_vm9, %v2097_v56  ;;  %4195 = vmatmul.msk.f32.gmra.mxu0 %vm2099_vm9, %v2194_v33 }
 0x3c2   : > { %v2080_v49 = vpop.f32.mrf.mxu1 }
 0x3c3   : > { %v2090_v55 = vmul.f32 %v2080_v49, %v6020_v32 }
 0x3c5   : > { %v2098_v42 = vmul.f32 %v2090_v55, %v6025_v51  ;;  %v2195_v4 = vmul.f32 %v2090_v55, %v6023_v1  ;;  %v6034_v55 = vld [vmem:[%s6858_s25] sm:$0xff] }
 0x3c7   : > { %4187 = vmatmul.msk.f32.gmra.mxu3 %vm2099_vm9, %v2098_v42  ;;  %4196 = vmatmul.msk.f32.gmra.mxu0 %vm2099_vm9, %v2195_v4  ;;  %v6085_v4 = vld [vmem:[%s6860_s0 + $0x8] sm:$0xff] }
 0x403   : > { %v2237_v59 = vpop.f32.mrf.mxu0 }
 0x409   : > { %v2141_v56 = vpop.f32.mrf.mxu3 }
 0x414   : > { %v2240_v6 = vpop.f32.mrf.mxu0 }
 0x41a   : > { %v2144_v53 = vpop.f32.mrf.mxu3 }
 0x41c   : > { %v2243_v33 = vpop.f32.mrf.mxu0 }
 0x422   : > { %v2147_v52 = vpop.f32.mrf.mxu3 }
 0x424   : > { %v2246_v61 = vpop.f32.mrf.mxu0 }
 0x42a   : > { %v2150_v49 = vpop.f32.mrf.mxu3 }
 0x42c   : > { %v2249_v43 = vpop.f32.mrf.mxu0 }
 0x432   : > { %v2153_v45 = vpop.f32.mrf.mxu3 }
 0x434   : > { %v2252_v36 = vpop.f32.mrf.mxu0 }
 0x43a   : > { %v2156_v25 = vpop.f32.mrf.mxu3 }
 0x43c   : > { %v2255_v38 = vpop.f32.mrf.mxu0 }
 0x442   : > { %v2159_v8 = vpop.f32.mrf.mxu3 }
 0x444   : > { %v2258_v62 = vpop.f32.mrf.mxu0 }
 0x445   : > { %2272 = vmatpush.msra.mxu1 %v2258_v62  ;;  %v6053_v62 = vld [vmem:[%s6860_s0 + $0x30] sm:$0xff] }
 0x447   : > { %2273 = vmatpush.msra.mxu1 %v2255_v38  ;;  %v6041_v38 = vld [vmem:[%s6859_s6] sm:$0xff] }
 0x449   : > { %2274 = vmatpush.msra.mxu1 %v2252_v36  ;;  %v6071_v36 = vld [vmem:[%s6860_s0 + $0x18] sm:$0xff] }
 0x44a   : > { %v2162_v42 = vpop.f32.mrf.mxu3 }
 0x44b   : > { %2176 = vmatpush.msra.mxu2 %v2162_v42  ;;  %2275 = vmatpush.msra.mxu1 %v2249_v43  ;;  %v6046_v43 = vld [vmem:[%s6860_s0 + $0x38] sm:$0xff] }
 0x44d   : > { %2177 = vmatpush.msra.mxu2 %v2159_v8  ;;  %2276 = vmatpush.msra.mxu1 %v2246_v61  ;;  %v6059_v8 = vld [vmem:[%s6860_s0 + $0x28] sm:$0xff]  ;;  %v2284_v61 = vmul.f32 %v5935_v14, %v5932_v2  ;;  %v2285_v2 = vmul.f32 %v5946_v23, %v5944_v22  ;;  %v2289_v23 = vmul.f32 %v5996_v60, %v5992_v57 }
 0x44f   : > { %2178 = vmatpush.msra.mxu2 %v2156_v25  ;;  %2277 = vmatpush.msra.mxu1 %v2243_v33  ;;  %v6065_v25 = vld [vmem:[%s6860_s0 + $0x20] sm:$0xff]  ;;  %v2293_v14 = vmul.f32 %v2285_v2, %v5949_v9  ;;  %v2287_v33 = vmul.f32 %v5966_v44, %v5963_v26  ;;  %v2291_v44 = vmul.f32 %v6025_v51, %v6023_v1 }
 0x451   : > { %2179 = vmatpush.msra.mxu2 %v2153_v45  ;;  %2278 = vmatpush.msra.mxu1 %v2240_v6  ;;  %v6077_v45 = vld [vmem:[%s6860_s0 + $0x10] sm:$0xff]  ;;  %v2286_v6 = vmul.f32 %v5953_v12, %v5951_v63  ;;  %v2297_v63 = vmul.f32 %v2289_v23, %v5998_v31  ;;  %v2290_v12 = vmul.f32 %v6011_v5, %v6009_v17 }
 0x453   : > { %2180 = vmatpush.msra.mxu2 %v2150_v49  ;;  %2279 = vmatpush.msra.mxu1 %v2237_v59  ;;  %v6091_v59 = vld [vmem:[%s6860_s0] sm:$0xff]  ;;  %v2298_v26 = vmul.f32 %v2290_v12, %v6007_v54 }
 0x454   : > { %4197 = vmatmul.msk.f32.vlgmr.msra.gmra.mxu1 %vm2099_vm9, %v6034_v55 }
 0x455   : > { %2181 = vmatpush.msra.mxu2 %v2147_v52  ;;  %v2295_v52 = vmul.f32 %v2287_v33, %v5973_v41 }
 0x457   : > { %2182 = vmatpush.msra.mxu2 %v2144_v53  ;;  %v2294_v53 = vmul.f32 %v2286_v6, %v5961_v10 }
 0x459   : > { %2183 = vmatpush.msra.mxu2 %v2141_v56  ;;  %v2292_v56 = vmul.f32 %v2284_v61, %v5937_v47 }
 0x45a   : > { %4188 = vmatmul.msk.f32.vlgmr.msra.gmra.mxu2 %vm2099_vm9, %v6041_v38 }
 0x45b   : > { %2332 = vmatpush.msrb.mxu2 %v6046_v43 }
 0x45d   : > { %2333 = vmatpush.msrb.mxu2 %v6053_v62 }
 0x45f   : > { %2334 = vmatpush.msrb.mxu2 %v6059_v8 }
 0x461   : > { %2335 = vmatpush.msrb.mxu2 %v6065_v25 }
 0x463   : > { %2336 = vmatpush.msrb.mxu2 %v6071_v36 }
 0x465   : > { %2337 = vmatpush.msrb.mxu2 %v6077_v45 }
 0x467   : > { %2338 = vmatpush.msrb.mxu2 %v6085_v4 }
 0x469   : > { %2339 = vmatpush.msrb.mxu2 %v6091_v59 }
 0x46a   : > { %4198 = vmatmul.msk.f32.vlgmr.msrb.gmra.mxu2 %vm2099_vm9, %v2292_v56 }
 0x46b   : > { %4240 = vmatpush.msk.msra.mxu2 %vm1837_vm8, %v5834_v16  ;;  %v2288_v16 = vmul.f32 %v5980_v46, %v5976_v37  ;;  %v2299_v37 = vmul.f32 %v2291_v44, %v6020_v32 }
 0x46d   : > { %v2296_v22 = vmul.f32 %v2288_v16, %v5985_v3 }
 0x472   : > { %4199 = vmatmul.msk.f32.gmra.mxu2 %vm2099_vm9, %v2293_v14 }
 0x47a   : > { %4200 = vmatmul.msk.f32.gmra.mxu2 %vm2099_vm9, %v2294_v53 }
 0x482   : > { %4201 = vmatmul.msk.f32.gmra.mxu2 %vm2099_vm9, %v2295_v52 }
 0x48a   : > { %4202 = vmatmul.msk.f32.gmra.mxu2 %vm2099_vm9, %v2296_v22 }
 0x492   : > { %4203 = vmatmul.msk.f32.gmra.mxu2 %vm2099_vm9, %v2297_v63 }
 0x49a   : > { %4204 = vmatmul.msk.f32.gmra.mxu2 %vm2099_vm9, %v2298_v26 }
 0x4a2   : > { %4205 = vmatmul.msk.f32.gmra.mxu2 %vm2099_vm9, %v2299_v37 }
 0x4d1   : > { %v2281_v46 = vpop.f32.mrf.mxu1 }
 0x4d2   : > { %v2366_v57 = vadd.f32 %v2281_v46, %v5506_v18 }
 0x4d4   : > { %v6130_v60 = vsel %vm1610_vm3, %v2366_v57, -10000.0 }
 0x4d5   : > { %v2396_v17 = vsel %vm1661_vm2, %v6130_v60, -inf }
 0x4d6   : > { %2397 = vmax.xlane.f32.xlu1 %v2396_v17 }
 0x4dd   : > { %v2185_v5 = vpop.f32.mrf.mxu2 }
 0x4de   : > { %v2365_v49 = vadd.f32 %v2185_v5, %v5510_v19 }
 0x4e0   : > { %v6137_v1 = vsel %vm1610_vm3, %v2365_v49, -10000.0 }
 0x4e1   : > { %v2385_v51 = vsel %vm1661_vm2, %v6137_v1, -inf }
 0x4e2   : > { %2386 = vmax.xlane.f32.xlu0 %v2385_v51 }
 0x4ed   : > { %v2341_v18 = vpop.f32.mrf.mxu2 }
 0x4ee   : > { %v2367_v42 = vadd.f32 %v2341_v18, %v5642_v11 }
 0x4f0   : > { %v6144_v61 = vsel %vm1645_vm13, %v2367_v42, -10000.0 }
 0x4f1   : > { %v2407_v56 = vsel %vm1661_vm2, %v6144_v61, -inf }
 0x4f2   : > { %2408 = vmax.xlane.f32.xlu1 %v2407_v56 }
 0x4f5   : > { %v2344_v19 = vpop.f32.mrf.mxu2 }
 0x4f6   : > { %v2368_v42 = vadd.f32 %v2344_v19, %v5680_v40 }
 0x4fd   : > { %v2347_v2 = vpop.f32.mrf.mxu2 }
 0x4fe   : > { %v2369_v57 = vadd.f32 %v2347_v2, %v5656_v13 }
 0x500   : > { %v6168_v5 = vsel %vm1647_vm14, %v2369_v57, -10000.0 }
 0x501   : > { %v2413_v49 = vsel %vm1661_vm2, %v6168_v5, -inf }
 0x505   : > { %v2350_v14 = vpop.f32.mrf.mxu2 }
 0x506   : > { %v2370_v6 = vadd.f32 %v2350_v14, %v5674_v21 }
 0x508   : > { %v6151_v53 = vsel %vm1648_vm15, %v2370_v6, -10000.0 }
 0x509   : > { %v2416_v11 = vsel %vm1661_vm2, %v6151_v53, -inf }
 0x50a   : > { %2417 = vmax.xlane.f32.xlu1 %v2416_v11  ;;  %v6187_v11 = vsel %vm1646_vm0, %v2368_v42, -10000.0 }
 0x50b   : > { %v2410_v40 = vsel %vm1661_vm2, %v6187_v11, -inf }
 0x50d   : > { %v2353_v33 = vpop.f32.mrf.mxu2 }
 0x50e   : > { %v2371_v19 = vadd.f32 %v2353_v33, %v5708_v30 }
 0x515   : > { %v2356_v52 = vpop.f32.mrf.mxu2 }
 0x516   : > { %v2372_v51 = vadd.f32 %v2356_v52, %v5702_v29 }
 0x518   : > { %v6180_v56 = vsel %vm1650_vm1, %v2372_v51, -10000.0 }
 0x519   : > { %v2422_v6 = vsel %vm1661_vm2, %v6180_v56, -inf }
 0x51d   : > { %v2359_v16 = vpop.f32.mrf.mxu2 }
 0x51e   : > { %v2373_v22 = vadd.f32 %v2359_v16, %v5722_v0 }
 0x520   : > { %v6158_v23 = vsel %vm1651_vm5, %v2373_v22, -10000.0 }
 0x521   : > { %v2425_v21 = vsel %vm1661_vm2, %v6158_v23, -inf }
 0x522   : > { %2426 = vmax.xlane.f32.xlu1 %v2425_v21  ;;  %v6201_v21 = vsel %vm1649_vm4, %v2371_v19, -10000.0 }
 0x525   : > { %v2362_v2 = vpop.f32.mrf.mxu2 }
 0x526   : > { %v2374_v29 = vadd.f32 %v2362_v2, %v5738_v39 }
 0x528   : > { %v6195_v16 = vsel %vm1652_vm7, %v2374_v29, -10000.0 }
 0x529   : > { %v2428_v39 = vsel %vm1661_vm2, %v6195_v16, -inf }
 0x549   : > { %v2398_v63 = vpop.xlane.xlu1 %2397 }
 0x54a   : > { %v2399_v12 = vsub.f32 %v6130_v60, %v2398_v63  ;;  %v2419_v63 = vsel %vm1661_vm2, %v6201_v21, -inf }
 0x54c   : > { %v2400_v26 = vmul.f32 1.442695, %v2399_v12 }
 0x54e   : > { %4550 = vpow2.f32 %v2400_v26 }
 0x554   : > { %v4551_v44 = vpop.eup %4550 }
 0x555   : > { %v2387_v37 = vpop.xlane.xlu0 %2386  ;;  %v2402_v46 = vsel %vm1661_vm2, %v4551_v44, 0.0 }
 0x556   : > { %v2388_v0 = vsub.f32 %v6137_v1, %v2387_v37  ;;  %2403 = vadd.xlane.f32.xlu0 %v2402_v46 }
 0x558   : > { %v2389_v17 = vmul.f32 1.442695, %v2388_v0 }
 0x55a   : > { %4552 = vpow2.f32 %v2389_v17 }
 0x55e   : > { %2414 = vmax.xlane.f32.xlu0 %v2413_v49 }
 0x560   : > { %v6173_v18 = vpop.eup %4552 }
 0x561   : > { %v2391_v13 = vsel %vm1661_vm2, %v6173_v18, 0.0 }
 0x562   : > { %2392 = vadd.xlane.f32.xlu2 %v2391_v13 }
 0x565   : > { %v2409_v14 = vpop.xlane.xlu1 %2408 }
 0x566   : > { %2423 = vmax.xlane.f32.xlu0 %v2422_v6  ;;  %v2431_v52 = vsub.f32 %v6144_v61, %v2409_v14 }
 0x568   : > { %v2439_v22 = vmul.f32 1.442695, %v2431_v52 }
 0x56a   : > { %2411 = vmax.xlane.f32.xlu2 %v2410_v40  ;;  %4554 = vpow2.f32 %v2439_v22 }
 0x56e   : > { %2429 = vmax.xlane.f32.xlu0 %v2428_v39 }
 0x570   : > { %v6205_v30 = vpop.eup %4554 }
 0x571   : > { %v2455_v33 = vsel %vm1661_vm2, %v6205_v30, 0.0 }
 0x572   : > { %2420 = vmax.xlane.f32.xlu2 %v2419_v63 }
 0x57a   : > { %2456 = vadd.xlane.f32.xlu2 %v2455_v33  ;;  %v6237_v33 = vld [vmem:[#allocation16] sm:$0xff] }
 0x57d   : > { %v2418_v12 = vpop.xlane.xlu1 %2417 }
 0x57e   : > { %v2434_v26 = vsub.f32 %v6151_v53, %v2418_v12 }
 0x580   : > { %v2445_v37 = vmul.f32 1.442695, %v2434_v26 }
 0x582   : > { %4556 = vpow2.f32 %v2445_v37 }
 0x588   : > { %v6210_v46 = vpop.eup %4556 }
 0x589   : > { %v2464_v57 = vsel %vm1661_vm2, %v6210_v46, 0.0 }
 0x58a   : > { %2465 = vadd.xlane.f32.xlu0 %v2464_v57  ;;  %v6864_v57 = vld [vmem:[#allocation33_spill] sm:$0xff] }
 0x595   : > { %v2427_v0 = vpop.xlane.xlu1 %2426 }
 0x596   : > { %v2437_v17 = vsub.f32 %v6158_v23, %v2427_v0  ;;  %v6865_v0 = vld [vmem:[#allocation34_spill] sm:$0xff] }
 0x598   : > { %v2451_v49 = vmul.f32 1.442695, %v2437_v17 }
 0x59a   : > { %4558 = vpow2.f32 %v2451_v49 }
 0x5a0   : > { %v6215_v51 = vpop.eup %4558 }
 0x5a1   : > { %v2473_v13 = vsel %vm1661_vm2, %v6215_v51, 0.0 }
 0x5a2   : > { %2474 = vadd.xlane.f32.xlu0 %v2473_v13  ;;  %v6258_v13 = vld [vmem:[#allocation16 + $0x8] sm:$0xff] }
 0x5c9   : > { %v2404_v42 = vpop.xlane.xlu0 %2403 }
 0x5ca   : > { %4560 = vrcp.f32 %v2404_v42 }
 0x5d0   : > { %v4561_v2 = vpop.eup %4560 }
 0x5d1   : > { %v2415_v14 = vpop.xlane.xlu0 %2414  ;;  %v2406_v6 = vmul.f32 %v4561_v2, %v4551_v44  ;;  %v6866_v2 = vld [vmem:[#allocation35_spill] sm:$0xff] }
 0x5d2   : > { %v2433_v29 = vsub.f32 %v6168_v5, %v2415_v14 }
 0x5d3   : > { %2616 = vmatpush.msrb.mxu0 %v2406_v6  ;;  %v6867_v6 = vld [vmem:[#allocation30_spill] sm:$0xff] }
 0x5d4   : > { %v2443_v52 = vmul.f32 1.442695, %v2433_v29  ;;  %4223 = vmatmul.msk.f32.vlgmr.msrb.gmra.mxu0 %vm1363_vm6, %v5697_v50  ;;  %v6868_v29 = vld [vmem:[#allocation36_spill] sm:$0xff] }
 0x5d5   : > { %v2393_v40 = vpop.xlane.xlu2 %2392  ;;  %3014 = vmatpush.msra.mxu0 %v6046_v43 }
 0x5d6   : > { %4562 = vpow2.f32 %v2443_v52 }
 0x5d7   : > { %4564 = vrcp.f32 %v2393_v40  ;;  %3015 = vmatpush.msra.mxu0 %v6053_v62  ;;  %v6869_v40 = vld [vmem:[#allocation37_spill] sm:$0xff] }
 0x5d9   : > { %v2424_v19 = vpop.xlane.xlu0 %2423  ;;  %3016 = vmatpush.msra.mxu0 %v6059_v8 }
 0x5da   : > { %v2436_v22 = vsub.f32 %v6180_v56, %v2424_v19 }
 0x5db   : > { %3017 = vmatpush.msra.mxu0 %v6065_v25 }
 0x5dc   : > { %v6227_v44 = vpop.eup %4562  ;;  %v2449_v39 = vmul.f32 1.442695, %v2436_v22  ;;  %4224 = vmatmul.msk.f32.gmra.mxu0 %vm1363_vm6, %v5718_v34  ;;  %v6861_v34 = vld [vmem:[#allocation31_spill] sm:$0xff]  ;;  %v6870_v22 = vld [vmem:[#allocation38_spill] sm:$0xff] }
 0x5dd   : > { %v4565_v50 = vpop.eup %4564  ;;  %v2412_v63 = vpop.xlane.xlu2 %2411  ;;  %v2461_v43 = vsel %vm1661_vm2, %v6227_v44, 0.0  ;;  %3018 = vmatpush.msra.mxu0 %v6071_v36  ;;  %v6862_v36 = vld [vmem:[#allocation32_spill] sm:$0xff] }
 0x5de   : > { %4566 = vpow2.f32 %v2449_v39  ;;  %v2432_v62 = vsub.f32 %v6187_v11, %v2412_v63  ;;  %2462 = vadd.xlane.f32.xlu2 %v2461_v43  ;;  %v2395_v8 = vmul.f32 %v4565_v50, %v6173_v18  ;;  %v6271_v39 = vld [vmem:[#allocation16 + $0x10] sm:$0xff] }
 0x5df   : > { %3019 = vmatpush.msra.mxu0 %v6077_v45  ;;  %v6863_v45 = vld [vmem:[#allocation29_spill] sm:$0xff]  ;;  %v6871_v63 = vld [vmem:[#allocation39_spill] sm:$0xff] }
 0x5e0   : > { %v2441_v25 = vmul.f32 1.442695, %v2432_v62  ;;  %2510 = vmatpush.msrb.mxu1 %v2395_v8  ;;  %v6278_v62 = vld [vmem:[#allocation18 + $0x20] sm:$0xff] }
 0x5e1   : > { %4206 = vmatmul.msk.f32.vlgmr.msrb.gmra.mxu1 %vm1363_vm6, %v6237_v33  ;;  %3020 = vmatpush.msra.mxu0 %v6085_v4  ;;  %v2430_v12 = vpop.xlane.xlu0 %2429 }
 0x5e2   : > { %4568 = vpow2.f32 %v2441_v25  ;;  %4231 = vmatpush.msk.msra.mxu1 %vm1837_vm8, %v6861_v34  ;;  %v2438_v17 = vsub.f32 %v6195_v16, %v2430_v12  ;;  %v6292_v12 = vld [vmem:[#allocation18 + $0x28] sm:$0xff] }
 0x5e3   : > { %3021 = vmatpush.msra.mxu0 %v6091_v59 }
 0x5e4   : > { %2913 = vmatpush.msrb.mxu1 %v6862_v36  ;;  %v6246_v18 = vpop.eup %4566  ;;  %4225 = vmatmul.msk.f32.gmra.mxu0 %vm1363_vm6, %v6863_v45  ;;  %v2453_v14 = vmul.f32 1.442695, %v2438_v17  ;;  %v6312_v17 = vld [vmem:[#allocation16 + $0x30] sm:$0xff] }
 0x5e5   : > { %v2421_v26 = vpop.xlane.xlu2 %2420  ;;  %v2470_v37 = vsel %vm1661_vm2, %v6246_v18, 0.0  ;;  %4300 = vmatpush.msk.msrb.mxu0 %vm1837_vm8, %v6861_v34  ;;  %v6286_v34 = vld [vmem:[#allocation16 + $0x18] sm:$0xff]  ;;  %6872 = vst [vmem:[#allocation31_spill] sm:$0xff] %v6312_v17 }
 0x5e6   : > { %2914 = vmatpush.msrb.mxu1 %v6864_v57  ;;  %v2435_v4 = vsub.f32 %v6201_v21, %v2421_v26  ;;  %2471 = vadd.xlane.f32.xlu2 %v2470_v37  ;;  %v6296_v26 = vld [vmem:[#allocation16 + $0x20] sm:$0xff]  ;;  %v6304_v37 = vld [vmem:[#allocation16 + $0x28] sm:$0xff] }
 0x5e8   : > { %2915 = vmatpush.msrb.mxu1 %v6865_v0  ;;  %v4569_v59 = vpop.eup %4568  ;;  %v2447_v49 = vmul.f32 1.442695, %v2435_v4  ;;  %v6308_v4 = vld [vmem:[#allocation18 + $0x38] sm:$0xff] }
 0x5e9   : > { %4207 = vmatmul.msk.f32.gmra.mxu1 %vm1363_vm6, %v6258_v13  ;;  %v2458_v42 = vsel %vm1661_vm2, %v4569_v59, 0.0 }
 0x5ea   : > { %4570 = vpow2.f32 %v2447_v49  ;;  %2459 = vadd.xlane.f32.xlu1 %v2458_v42  ;;  %2916 = vmatpush.msrb.mxu1 %v6866_v2  ;;  %v6316_v49 = vld [vmem:[#allocation16 + $0x38] sm:$0xff] }
 0x5eb   : > { %6873 = vst [vmem:[#allocation32_spill] sm:$0xff] %v6316_v49 }
 0x5ec   : > { %4226 = vmatmul.msk.f32.gmra.mxu0 %vm1363_vm6, %v6867_v6  ;;  %2917 = vmatpush.msrb.mxu1 %v6868_v29 }
 0x5ed   : > { %v2457_v52 = vpop.xlane.xlu2 %2456 }
 0x5ee   : > { %4572 = vrcp.f32 %v2457_v52  ;;  %2918 = vmatpush.msrb.mxu1 %v6869_v40 }
 0x5ef   : > { %4574 = vpow2.f32 %v2453_v14 }
 0x5f0   : > { %v6268_v19 = vpop.eup %4570  ;;  %2919 = vmatpush.msrb.mxu1 %v6870_v22 }
 0x5f1   : > { %4208 = vmatmul.msk.f32.gmra.mxu1 %vm1363_vm6, %v6271_v39  ;;  %v2467_v50 = vsel %vm1661_vm2, %v6268_v19, 0.0 }
 0x5f2   : > { %2468 = vadd.xlane.f32.xlu1 %v2467_v50  ;;  %2920 = vmatpush.msrb.mxu1 %v6871_v63 }
 0x5f4   : > { %v4573_v43 = vpop.eup %4572  ;;  %4227 = vmatmul.msk.f32.gmra.mxu0 %vm1363_vm6, %v6278_v62 }
 0x5f5   : > { %v2487_v8 = vmul.f32 %v4573_v43, %v6205_v30  ;;  %v6283_v25 = vpop.eup %4574  ;;  %v6300_v30 = vld [vmem:[#allocation18 + $0x30] sm:$0xff] }
 0x5f6   : > { %v2476_v45 = vsel %vm1661_vm2, %v6283_v25, 0.0 }
 0x5f7   : > { %4241 = vmatmul.msk.f32.vlgmr.msra.gmra.mxu2 %vm1661_vm2, %v2487_v8 }
 0x5f9   : > { %4209 = vmatmul.msk.f32.gmra.mxu1 %vm1363_vm6, %v6286_v34 }
 0x5fa   : > { %2477 = vadd.xlane.f32.xlu1 %v2476_v45 }
 0x5fc   : > { %4228 = vmatmul.msk.f32.gmra.mxu0 %vm1363_vm6, %v6292_v12 }
 0x601   : > { %4210 = vmatmul.msk.f32.gmra.mxu1 %vm1363_vm6, %v6296_v26 }
 0x604   : > { %4229 = vmatmul.msk.f32.gmra.mxu0 %vm1363_vm6, %v6300_v30 }
 0x609   : > { %4211 = vmatmul.msk.f32.gmra.mxu1 %vm1363_vm6, %v6304_v37 }
 0x60c   : > { %4230 = vmatmul.msk.f32.gmra.mxu0 %vm1363_vm6, %v6308_v4 }
 0x611   : > { %4212 = vmatmul.msk.f32.gmra.mxu1 %vm1363_vm6, %v6312_v17 }
 0x619   : > { %4213 = vmatmul.msk.f32.gmra.mxu1 %vm1363_vm6, %v6316_v49 }
 0x651   : > { %v2618_v42 = vpop.f32.mrf.mxu0  ;;  %v2463_v50 = vpop.xlane.xlu2 %2462 }
 0x652   : > { %4232 = vmatmul.msk.f32.vlgmr.msra.gmra.mxu1 %vm1661_vm2, %v2618_v42  ;;  %v2466_v42 = vpop.xlane.xlu0 %2465 }
 0x659   : > { %v2621_v14 = vpop.f32.mrf.mxu0 }
 0x65a   : > { %4233 = vmatmul.msk.f32.gmra.mxu1 %vm1661_vm2, %v2621_v14 }
 0x65d   : > { %v2460_v6 = vpop.xlane.xlu1 %2459 }
 0x65e   : > { %v2512_v52 = vpop.f32.mrf.mxu1  ;;  %4576 = vrcp.f32 %v2460_v6 }
 0x65f   : > { %4215 = vmatmul.msk.f32.vlgmr.msrb.gmra.mxu3 %vm1661_vm2, %v2512_v52  ;;  %4578 = vrcp.f32 %v2463_v50 }
 0x660   : > { %4580 = vrcp.f32 %v2466_v42 }
 0x661   : > { %v2624_v43 = vpop.f32.mrf.mxu0 }
 0x662   : > { %4234 = vmatmul.msk.f32.gmra.mxu1 %vm1661_vm2, %v2624_v43 }
 0x664   : > { %v4577_v8 = vpop.eup %4576 }
 0x665   : > { %v2488_v45 = vmul.f32 %v4577_v8, %v4569_v59  ;;  %v4579_v14 = vpop.eup %4578  ;;  %v2469_v50 = vpop.xlane.xlu1 %2468 }
 0x666   : > { %v2515_v17 = vpop.f32.mrf.mxu1  ;;  %v2489_v6 = vmul.f32 %v4579_v14, %v6227_v44  ;;  %v4581_v43 = vpop.eup %4580  ;;  %4582 = vrcp.f32 %v2469_v50 }
 0x667   : > { %4216 = vmatmul.msk.f32.gmra.mxu3 %vm1661_vm2, %v2515_v17  ;;  %4242 = vmatmul.msk.f32.gmra.mxu2 %vm1661_vm2, %v2488_v45  ;;  %v2490_v17 = vmul.f32 %v4581_v43, %v6210_v46 }
 0x669   : > { %v2627_v49 = vpop.f32.mrf.mxu0 }
 0x66a   : > { %4235 = vmatmul.msk.f32.gmra.mxu1 %vm1661_vm2, %v2627_v49  ;;  %v2472_v49 = vpop.xlane.xlu2 %2471 }
 0x66b   : > { %4584 = vrcp.f32 %v2472_v49 }
 0x66c   : > { %v4583_v45 = vpop.eup %4582 }
 0x66d   : > { %v2491_v42 = vmul.f32 %v4583_v45, %v6268_v19  ;;  %v2478_v43 = vpop.xlane.xlu1 %2477 }
 0x66e   : > { %v2518_v52 = vpop.f32.mrf.mxu1 }
 0x66f   : > { %4217 = vmatmul.msk.f32.gmra.mxu3 %vm1661_vm2, %v2518_v52  ;;  %4243 = vmatmul.msk.f32.gmra.mxu2 %vm1661_vm2, %v2489_v6  ;;  %v2475_v6 = vpop.xlane.xlu0 %2474 }
 0x670   : > { %4586 = vrcp.f32 %v2475_v6 }
 0x671   : > { %v2630_v59 = vpop.f32.mrf.mxu0  ;;  %v4585_v52 = vpop.eup %4584  ;;  %4588 = vrcp.f32 %v2478_v43 }
 0x672   : > { %4236 = vmatmul.msk.f32.gmra.mxu1 %vm1661_vm2, %v2630_v59  ;;  %v2492_v50 = vmul.f32 %v4585_v52, %v6246_v18 }
 0x676   : > { %v2521_v8 = vpop.f32.mrf.mxu1 }
 0x677   : > { %4218 = vmatmul.msk.f32.gmra.mxu3 %vm1661_vm2, %v2521_v8  ;;  %4244 = vmatmul.msk.f32.gmra.mxu2 %vm1661_vm2, %v2490_v17  ;;  %v4587_v17 = vpop.eup %4586 }
 0x678   : > { %v2493_v8 = vmul.f32 %v4587_v17, %v6215_v51 }
 0x679   : > { %v2633_v44 = vpop.f32.mrf.mxu0 }
 0x67a   : > { %4237 = vmatmul.msk.f32.gmra.mxu1 %vm1661_vm2, %v2633_v44  ;;  %v4589_v44 = vpop.eup %4588 }
 0x67b   : > { %v2494_v18 = vmul.f32 %v4589_v44, %v6283_v25 }
 0x67e   : > { %v2524_v14 = vpop.f32.mrf.mxu1 }
 0x67f   : > { %4219 = vmatmul.msk.f32.gmra.mxu3 %vm1661_vm2, %v2524_v14  ;;  %4245 = vmatmul.msk.f32.gmra.mxu2 %vm1661_vm2, %v2491_v42  ;;  %v2748_v42 = vpop.f32.mrf.mxu2 }
 0x680   : > { %v2772_v14 = vmul.f32 %v2748_v42, %v5937_v47 }
 0x681   : > { %v2636_v46 = vpop.f32.mrf.mxu0 }
 0x682   : > { %4238 = vmatmul.msk.f32.gmra.mxu1 %vm1661_vm2, %v2636_v46 }
 0x686   : > { %v2527_v59 = vpop.f32.mrf.mxu1 }
 0x687   : > { %4220 = vmatmul.msk.f32.gmra.mxu3 %vm1661_vm2, %v2527_v59  ;;  %4246 = vmatmul.msk.f32.gmra.mxu2 %vm1661_vm2, %v2492_v50 }
 0x689   : > { %v2639_v19 = vpop.f32.mrf.mxu0 }
 0x68a   : > { %4239 = vmatmul.msk.f32.gmra.mxu1 %vm1661_vm2, %v2639_v19 }
 0x68e   : > { %v2530_v49 = vpop.f32.mrf.mxu1 }
 0x68f   : > { %4221 = vmatmul.msk.f32.gmra.mxu3 %vm1661_vm2, %v2530_v49  ;;  %4247 = vmatmul.msk.f32.gmra.mxu2 %vm1661_vm2, %v2493_v8 }
 0x696   : > { %v2533_v45 = vpop.f32.mrf.mxu1 }
 0x697   : > { %4222 = vmatmul.msk.f32.gmra.mxu3 %vm1661_vm2, %v2533_v45  ;;  %4248 = vmatmul.msk.f32.gmra.mxu2 %vm1661_vm2, %v2494_v18 }
 0x6cf   : > { %v2683_v6 = vpop.f32.mrf.mxu1 }
 0x6d0   : > { %v2780_v46 = vmul.f32 %v2772_v14, %v2683_v6 }
 0x6d2   : > { %4249 = vmatmul.msk.f32.vlgmr.msra.gmra.mxu3 %vm2099_vm9, %v2780_v46 }
 0x6d7   : > { %v2686_v51 = vpop.f32.mrf.mxu1 }
 0x6df   : > { %v2689_v25 = vpop.f32.mrf.mxu1 }
 0x6e2   : > { %v2577_v52 = vpop.f32.mrf.mxu3 }
 0x6e3   : > { %v2873_v50 = vmul.f32 %v2772_v14, %v2577_v52  ;;  %v2966_v59 = vmul.f32 %v2683_v6, %v2577_v52 }
 0x6e5   : > { %v2974_v43 = vmul.f32 %v2966_v59, %v5937_v47  ;;  %4258 = vmatmul.msk.f32.vlgmr.msrb.gmra.mxu1 %vm2099_vm9, %v2873_v50 }
 0x6e7   : > { %4267 = vmatmul.msk.f32.vlgmr.msra.gmra.mxu0 %vm2099_vm9, %v2974_v43 }
 0x6e8   : > { %3595 = vmatpush.msra.mxu0 %v6862_v36  ;;  %v2692_v36 = vpop.f32.mrf.mxu1 }
 0x6ea   : > { %v2580_v19 = vpop.f32.mrf.mxu3  ;;  %v2751_v17 = vpop.f32.mrf.mxu2  ;;  %3596 = vmatpush.msra.mxu0 %v6864_v57 }
 0x6eb   : > { %v2967_v8 = vmul.f32 %v2686_v51, %v2580_v19  ;;  %v2773_v49 = vmul.f32 %v2751_v17, %v5949_v9 }
 0x6ec   : > { %3597 = vmatpush.msra.mxu0 %v6865_v0 }
 0x6ed   : > { %v2975_v44 = vmul.f32 %v2967_v8, %v5949_v9  ;;  %v2781_v18 = vmul.f32 %v2773_v49, %v2686_v51  ;;  %v2874_v45 = vmul.f32 %v2773_v49, %v2580_v19 }
 0x6ee   : > { %3598 = vmatpush.msra.mxu0 %v6866_v2 }
 0x6ef   : > { %4268 = vmatmul.msk.f32.gmra.mxu0 %vm2099_vm9, %v2975_v44  ;;  %4250 = vmatmul.msk.f32.gmra.mxu3 %vm2099_vm9, %v2781_v18 }
 0x6f0   : > { %4259 = vmatmul.msk.f32.gmra.mxu1 %vm2099_vm9, %v2874_v45  ;;  %3599 = vmatpush.msra.mxu0 %v6868_v29  ;;  %v2695_v29 = vpop.f32.mrf.mxu1 }
 0x6f2   : > { %v2583_v57 = vpop.f32.mrf.mxu3  ;;  %v2754_v42 = vpop.f32.mrf.mxu2  ;;  %3600 = vmatpush.msra.mxu0 %v6869_v40 }
 0x6f3   : > { %v2968_v0 = vmul.f32 %v2689_v25, %v2583_v57  ;;  %v2774_v14 = vmul.f32 %v2754_v42, %v5961_v10 }
 0x6f4   : > { %3601 = vmatpush.msra.mxu0 %v6870_v22 }
 0x6f5   : > { %v2976_v2 = vmul.f32 %v2968_v0, %v5961_v10  ;;  %v2782_v6 = vmul.f32 %v2774_v14, %v2689_v25  ;;  %v2875_v46 = vmul.f32 %v2774_v14, %v2583_v57 }
 0x6f6   : > { %3602 = vmatpush.msra.mxu0 %v6871_v63 }
 0x6f7   : > { %4269 = vmatmul.msk.f32.gmra.mxu0 %vm2099_vm9, %v2976_v2  ;;  %4251 = vmatmul.msk.f32.gmra.mxu3 %vm2099_vm9, %v2782_v6 }
 0x6f8   : > { %4260 = vmatmul.msk.f32.gmra.mxu1 %vm2099_vm9, %v2875_v46  ;;  %v2698_v8 = vpop.f32.mrf.mxu1 }
 0x6fa   : > { %v2586_v51 = vpop.f32.mrf.mxu3  ;;  %v2757_v40 = vpop.f32.mrf.mxu2 }
 0x6fb   : > { %v2969_v52 = vmul.f32 %v2692_v36, %v2586_v51  ;;  %v2775_v50 = vmul.f32 %v2757_v40, %v5973_v41 }
 0x6fd   : > { %v2977_v22 = vmul.f32 %v2969_v52, %v5973_v41  ;;  %v2783_v59 = vmul.f32 %v2775_v50, %v2692_v36  ;;  %v2876_v43 = vmul.f32 %v2775_v50, %v2586_v51 }
 0x6ff   : > { %4270 = vmatmul.msk.f32.gmra.mxu0 %vm2099_vm9, %v2977_v22  ;;  %4252 = vmatmul.msk.f32.gmra.mxu3 %vm2099_vm9, %v2783_v59 }
 0x700   : > { %4261 = vmatmul.msk.f32.gmra.mxu1 %vm2099_vm9, %v2876_v43  ;;  %v2701_v6 = vpop.f32.mrf.mxu1 }
 0x702   : > { %v2589_v63 = vpop.f32.mrf.mxu3  ;;  %v2760_v25 = vpop.f32.mrf.mxu2 }
 0x703   : > { %v2970_v19 = vmul.f32 %v2695_v29, %v2589_v63  ;;  %v2776_v17 = vmul.f32 %v2760_v25, %v5985_v3 }
 0x705   : > { %v2978_v49 = vmul.f32 %v2970_v19, %v5985_v3  ;;  %v2784_v44 = vmul.f32 %v2776_v17, %v2695_v29  ;;  %v2877_v18 = vmul.f32 %v2776_v17, %v2589_v63 }
 0x707   : > { %4271 = vmatmul.msk.f32.gmra.mxu0 %vm2099_vm9, %v2978_v49  ;;  %4253 = vmatmul.msk.f32.gmra.mxu3 %vm2099_vm9, %v2784_v44 }
 0x708   : > { %4262 = vmatmul.msk.f32.gmra.mxu1 %vm2099_vm9, %v2877_v18  ;;  %v2704_v59 = vpop.f32.mrf.mxu1 }
 0x70a   : > { %v2592_v45 = vpop.f32.mrf.mxu3  ;;  %v2763_v36 = vpop.f32.mrf.mxu2 }
 0x70b   : > { %v2971_v57 = vmul.f32 %v2698_v8, %v2592_v45  ;;  %v2777_v42 = vmul.f32 %v2763_v36, %v5998_v31 }
 0x70d   : > { %v2979_v0 = vmul.f32 %v2971_v57, %v5998_v31  ;;  %v2785_v14 = vmul.f32 %v2777_v42, %v2698_v8  ;;  %v2878_v2 = vmul.f32 %v2777_v42, %v2592_v45 }
 0x70f   : > { %4272 = vmatmul.msk.f32.gmra.mxu0 %vm2099_vm9, %v2979_v0  ;;  %4254 = vmatmul.msk.f32.gmra.mxu3 %vm2099_vm9, %v2785_v14 }
 0x710   : > { %4263 = vmatmul.msk.f32.gmra.mxu1 %vm2099_vm9, %v2878_v2 }
 0x712   : > { %v2595_v46 = vpop.f32.mrf.mxu3  ;;  %v2766_v29 = vpop.f32.mrf.mxu2 }
 0x713   : > { %v2972_v51 = vmul.f32 %v2701_v6, %v2595_v46  ;;  %v2778_v40 = vmul.f32 %v2766_v29, %v6007_v54 }
 0x715   : > { %v2980_v52 = vmul.f32 %v2972_v51, %v6007_v54  ;;  %v2786_v50 = vmul.f32 %v2778_v40, %v2701_v6  ;;  %v2879_v22 = vmul.f32 %v2778_v40, %v2595_v46 }
 0x717   : > { %4273 = vmatmul.msk.f32.gmra.mxu0 %vm2099_vm9, %v2980_v52  ;;  %4255 = vmatmul.msk.f32.gmra.mxu3 %vm2099_vm9, %v2786_v50 }
 0x718   : > { %4264 = vmatmul.msk.f32.gmra.mxu1 %vm2099_vm9, %v2879_v22  ;;  %v4642_v22 = vld [vmem:[#allocation19] sm:$0xf] }
 0x71a   : > { %v2598_v43 = vpop.f32.mrf.mxu3  ;;  %v2769_v63 = vpop.f32.mrf.mxu2 }
 0x71b   : > { %v2973_v25 = vmul.f32 %v2704_v59, %v2598_v43  ;;  %v2779_v19 = vmul.f32 %v2769_v63, %v6020_v32  ;;  %v4647_v63 = vld [vmem:[%s6765_s23 + $0x18] sm:$0xff] }
 0x71d   : > { %v2981_v17 = vmul.f32 %v2973_v25, %v6020_v32  ;;  %v2787_v8 = vmul.f32 %v2779_v19, %v2704_v59  ;;  %v2880_v49 = vmul.f32 %v2779_v19, %v2598_v43  ;;  %v4643_v59 = vld [vmem:[%s6765_s23 + $0x38] sm:$0xff]  ;;  %v4644_v43 = vld [vmem:[%s6765_s23 + $0x30] sm:$0xff]  ;;  %v4649_v19 = vld [vmem:[%s6765_s23 + $0x8] sm:$0xff] }
 0x71e   : > { %v4648_v25 = vld [vmem:[%s6765_s23 + $0x10] sm:$0xff] }
 0x71f   : > { %4274 = vmatmul.msk.f32.gmra.mxu0 %vm2099_vm9, %v2981_v17  ;;  %4256 = vmatmul.msk.f32.gmra.mxu3 %vm2099_vm9, %v2787_v8  ;;  %v4650_v17 = vld [vmem:[%s6765_s23] sm:$0xff] }
 0x720   : > { %4265 = vmatmul.msk.f32.gmra.mxu1 %vm2099_vm9, %v2880_v49 }
 0x755   : > { %v2829_v18 = vpop.f32.mrf.mxu3 }
 0x762   : > { %v2922_v44 = vpop.f32.mrf.mxu1 }
 0x764   : > { %v3023_v8 = vpop.f32.mrf.mxu0 }
 0x76c   : > { %v3026_v49 = vpop.f32.mrf.mxu0 }
 0x76d   : > { %v2925_v45 = vpop.f32.mrf.mxu1 }
 0x772   : > { %v2832_v36 = vpop.f32.mrf.mxu3 }
 0x775   : > { %v2928_v57 = vpop.f32.mrf.mxu1 }
 0x77a   : > { %v2835_v42 = vpop.f32.mrf.mxu3 }
 0x77d   : > { %v2931_v0 = vpop.f32.mrf.mxu1 }
 0x782   : > { %v2838_v14 = vpop.f32.mrf.mxu3 }
 0x785   : > { %v2934_v2 = vpop.f32.mrf.mxu1 }
 0x78a   : > { %v2841_v6 = vpop.f32.mrf.mxu3 }
 0x78d   : > { %v2937_v46 = vpop.f32.mrf.mxu1 }
 0x792   : > { %v2844_v29 = vpop.f32.mrf.mxu3 }
 0x795   : > { %v2940_v51 = vpop.f32.mrf.mxu1 }
 0x79a   : > { %v2847_v40 = vpop.f32.mrf.mxu3 }
 0x79d   : > { %v2943_v52 = vpop.f32.mrf.mxu1 }
 0x79e   : > { %2954 = vmatpush.msra.mxu1 %v2943_v52 }
 0x7a0   : > { %2955 = vmatpush.msra.mxu1 %v2940_v51 }
 0x7a2   : > { %2956 = vmatpush.msra.mxu1 %v2937_v46  ;;  %v2850_v50 = vpop.f32.mrf.mxu3 }
 0x7a3   : > { %2861 = vmatpush.msrb.mxu3 %v2850_v50 }
 0x7a4   : > { %2957 = vmatpush.msra.mxu1 %v2934_v2 }
 0x7a5   : > { %2862 = vmatpush.msrb.mxu3 %v2847_v40 }
 0x7a6   : > { %2958 = vmatpush.msra.mxu1 %v2931_v0 }
 0x7a7   : > { %2863 = vmatpush.msrb.mxu3 %v2844_v29 }
 0x7a8   : > { %2959 = vmatpush.msra.mxu1 %v2928_v57 }
 0x7a9   : > { %2864 = vmatpush.msrb.mxu3 %v2841_v6 }
 0x7aa   : > { %2960 = vmatpush.msra.mxu1 %v2925_v45 }
 0x7ab   : > { %2865 = vmatpush.msrb.mxu3 %v2838_v14 }
 0x7ac   : > { %2961 = vmatpush.msra.mxu1 %v2922_v44  ;;  %v3029_v44 = vpop.f32.mrf.mxu0 }
 0x7ad   : > { %4266 = vmatmul.msk.f32.vlgmr.msra.gmra.mxu1 %vm2099_vm9, %v6034_v55  ;;  %2866 = vmatpush.msrb.mxu3 %v2835_v42  ;;  %v4645_v55 = vld [vmem:[%s6765_s23 + $0x28] sm:$0xff] }
 0x7af   : > { %2867 = vmatpush.msrb.mxu3 %v2832_v36 }
 0x7b1   : > { %2868 = vmatpush.msrb.mxu3 %v2829_v18 }
 0x7b2   : > { %4257 = vmatmul.msk.f32.vlgmr.msrb.gmra.mxu3 %vm2099_vm9, %v6041_v38  ;;  %v4646_v38 = vld [vmem:[%s6765_s23 + $0x20] sm:$0xff] }
 0x7b3   : > { %4283 = vmatpush.msk.msra.mxu3 %vm1837_vm8, %v4642_v22 }
 0x7b4   : > { %v3032_v18 = vpop.f32.mrf.mxu0 }
 0x7b5   : > { %3502 = vmatpush.msrb.mxu3 %v4643_v59 }
 0x7b7   : > { %3503 = vmatpush.msrb.mxu3 %v4644_v43 }
 0x7b9   : > { %3504 = vmatpush.msrb.mxu3 %v4645_v55 }
 0x7bb   : > { %3505 = vmatpush.msrb.mxu3 %v4646_v38 }
 0x7bc   : > { %v3035_v0 = vpop.f32.mrf.mxu0 }
 0x7bd   : > { %3506 = vmatpush.msrb.mxu3 %v4647_v63  ;;  %v3050_v63 = vadd.f32 %v3026_v49, %v6187_v11  ;;  %v3051_v49 = vadd.f32 %v3029_v44, %v6168_v5 }
 0x7bf   : > { %3507 = vmatpush.msrb.mxu3 %v4648_v25  ;;  %v6467_v25 = vsel %vm1646_vm0, %v3050_v63, -10000.0  ;;  %v4651_v63 = vld [vmem:[#allocation18] sm:$0xff] }
 0x7c1   : > { %3508 = vmatpush.msrb.mxu3 %v4649_v19 }
 0x7c3   : > { %3509 = vmatpush.msrb.mxu3 %v4650_v17 }
 0x7c4   : > { %v3038_v29 = vpop.f32.mrf.mxu0 }
 0x7cc   : > { %v3041_v52 = vpop.f32.mrf.mxu0 }
 0x7cd   : > { %v3055_v50 = vadd.f32 %v3041_v52, %v6158_v23 }
 0x7cf   : > { %v6457_v7 = vsel %vm1651_vm5, %v3055_v50, -10000.0 }
 0x7d0   : > { %v3107_v22 = vsel %vm1661_vm2, %v6457_v7, -inf }
 0x82a   : > { %v2963_v45 = vpop.f32.mrf.mxu1 }
 0x82b   : > { %v3048_v36 = vadd.f32 %v2963_v45, %v6130_v60  ;;  %v3049_v60 = vadd.f32 %v3023_v8, %v6144_v61  ;;  %v3092_v8 = vsel %vm1661_vm2, %v6467_v25, -inf }
 0x82d   : > { %v6429_v57 = vsel %vm1610_vm3, %v3048_v36, -10000.0  ;;  %v6443_v51 = vsel %vm1645_vm13, %v3049_v60, -10000.0 }
 0x82e   : > { %v3078_v42 = vsel %vm1661_vm2, %v6429_v57, -inf  ;;  %v3089_v40 = vsel %vm1661_vm2, %v6443_v51, -inf }
 0x82f   : > { %3079 = vmax.xlane.f32.xlu2 %v3078_v42  ;;  %v6481_v42 = vsel %vm1647_vm14, %v3051_v49, -10000.0 }
 0x835   : > { %v2870_v14 = vpop.f32.mrf.mxu3 }
 0x836   : > { %v3047_v2 = vadd.f32 %v2870_v14, %v6137_v1  ;;  %v3052_v1 = vadd.f32 %v3032_v18, %v6151_v53  ;;  %v3053_v18 = vadd.f32 %v3035_v0, %v6201_v21  ;;  %v3095_v0 = vsel %vm1661_vm2, %v6481_v42, -inf }
 0x837   : > { %v3054_v14 = vadd.f32 %v3038_v29, %v6180_v56 }
 0x838   : > { %v6436_v6 = vsel %vm1610_vm3, %v3047_v2, -10000.0  ;;  %v6450_v15 = vsel %vm1648_vm15, %v3052_v1, -10000.0  ;;  %v6477_v20 = vsel %vm1649_vm4, %v3053_v18, -10000.0  ;;  %v3044_v2 = vpop.f32.mrf.mxu0 }
 0x839   : > { %v3067_v46 = vsel %vm1661_vm2, %v6436_v6, -inf  ;;  %v3098_v61 = vsel %vm1661_vm2, %v6450_v15, -inf  ;;  %v3101_v21 = vsel %vm1661_vm2, %v6477_v20, -inf  ;;  %v6492_v44 = vsel %vm1650_vm1, %v3054_v14, -10000.0 }
 0x83a   : > { %3068 = vmax.xlane.f32.xlu0 %v3067_v46  ;;  %v3104_v60 = vsel %vm1661_vm2, %v6492_v44, -inf  ;;  %v3056_v56 = vadd.f32 %v3044_v2, %v6195_v16  ;;  %v4654_v2 = vld [vmem:[#allocation18 + $0x10] sm:$0xff] }
 0x83c   : > { %v6502_v24 = vsel %vm1652_vm7, %v3056_v56, -10000.0 }
 0x83d   : > { %v3110_v52 = vsel %vm1661_vm2, %v6502_v24, -inf }
 0x842   : > { %3090 = vmax.xlane.f32.xlu0 %v3089_v40 }
 0x84a   : > { %3099 = vmax.xlane.f32.xlu0 %v3098_v61 }
 0x852   : > { %3108 = vmax.xlane.f32.xlu0 %v3107_v22 }
 0x8a2   : > { %v3080_v53 = vpop.xlane.xlu2 %3079 }
 0x8a3   : > { %v3081_v48 = vsub.f32 %v6429_v57, %v3080_v53 }
 0x8a5   : > { %v3082_v59 = vmul.f32 1.442695, %v3081_v48 }
 0x8a7   : > { %4590 = vpow2.f32 %v3082_v59 }
 0x8ad   : > { %v4591_v43 = vpop.eup %4590  ;;  %v3069_v55 = vpop.xlane.xlu0 %3068 }
 0x8ae   : > { %v3070_v38 = vsub.f32 %v6436_v6, %v3069_v55  ;;  %v3084_v23 = vsel %vm1661_vm2, %v4591_v43, 0.0 }
 0x8af   : > { %3085 = vadd.xlane.f32.xlu1 %v3084_v23 }
 0x8b0   : > { %v3071_v27 = vmul.f32 1.442695, %v3070_v38 }
 0x8b2   : > { %4592 = vpow2.f32 %v3071_v27 }
 0x8b5   : > { %v3091_v19 = vpop.xlane.xlu0 %3090 }
 0x8b6   : > { %v3113_v17 = vsub.f32 %v6443_v51, %v3091_v19 }
 0x8b7   : > { %3093 = vmax.xlane.f32.xlu1 %v3092_v8 }
 0x8b8   : > { %v4593_v45 = vpop.eup %4592  ;;  %v3121_v36 = vmul.f32 1.442695, %v3113_v17 }
 0x8b9   : > { %v3073_v11 = vsel %vm1661_vm2, %v4593_v45, 0.0 }
 0x8ba   : > { %3074 = vadd.xlane.f32.xlu2 %v3073_v11  ;;  %4594 = vpow2.f32 %v3121_v36 }
 0x8bd   : > { %v3100_v28 = vpop.xlane.xlu0 %3099 }
 0x8be   : > { %v3116_v46 = vsub.f32 %v6450_v15, %v3100_v28  ;;  %v4653_v28 = vld [vmem:[%s6764_s22] sm:$0xf] }
 0x8bf   : > { %3102 = vmax.xlane.f32.xlu1 %v3101_v21  ;;  %v4652_v21 = vld [vmem:[#allocation18 + $0x8] sm:$0xff] }
 0x8c0   : > { %v6488_v5 = vpop.eup %4594  ;;  %v3127_v29 = vmul.f32 1.442695, %v3116_v46 }
 0x8c1   : > { %v3137_v58 = vsel %vm1661_vm2, %v6488_v5, 0.0 }
 0x8c2   : > { %3096 = vmax.xlane.f32.xlu2 %v3095_v0  ;;  %4596 = vpow2.f32 %v3127_v29 }
 0x8c5   : > { %v3109_v40 = vpop.xlane.xlu0 %3108 }
 0x8c6   : > { %v3119_v1 = vsub.f32 %v6457_v7, %v3109_v40 }
 0x8c7   : > { %3138 = vadd.xlane.f32.xlu1 %v3137_v58 }
 0x8c8   : > { %v3133_v61 = vmul.f32 1.442695, %v3119_v1  ;;  %v6507_v50 = vpop.eup %4596  ;;  %v4655_v1 = vld [vmem:[#allocation18 + $0x18] sm:$0xff] }
 0x8c9   : > { %v3146_v16 = vsel %vm1661_vm2, %v6507_v50, 0.0 }
 0x8ca   : > { %3105 = vmax.xlane.f32.xlu2 %v3104_v60  ;;  %4598 = vpow2.f32 %v3133_v61 }
 0x8d0   : > { %v6511_v22 = vpop.eup %4598 }
 0x8d1   : > { %v3155_v35 = vsel %vm1661_vm2, %v6511_v22, 0.0 }
 0x8d2   : > { %3111 = vmax.xlane.f32.xlu2 %v3110_v52 }
 0x8da   : > { %3147 = vadd.xlane.f32.xlu2 %v3146_v16 }
 0x8e2   : > { %3156 = vadd.xlane.f32.xlu2 %v3155_v35 }
 0x922   : > { %v3086_v53 = vpop.xlane.xlu1 %3085 }
 0x923   : > { %4600 = vrcp.f32 %v3086_v53 }
 0x929   : > { %v4601_v48 = vpop.eup %4600 }
 0x92a   : > { %v3094_v59 = vpop.xlane.xlu1 %3093  ;;  %v3088_v55 = vmul.f32 %v4601_v48, %v4591_v43 }
 0x92b   : > { %v3114_v38 = vsub.f32 %v6467_v25, %v3094_v59 }
 0x92c   : > { %3298 = vmatpush.msrb.mxu1 %v3088_v55 }
 0x92d   : > { %v3123_v23 = vmul.f32 1.442695, %v3114_v38  ;;  %4292 = vmatmul.msk.f32.vlgmr.msrb.gmra.mxu1 %vm1363_vm6, %v4651_v63  ;;  %v3075_v27 = vpop.xlane.xlu2 %3074 }
 0x92e   : > { %4602 = vrcp.f32 %v3075_v27 }
 0x92f   : > { %4604 = vpow2.f32 %v3123_v23 }
 0x932   : > { %v3103_v19 = vpop.xlane.xlu1 %3102 }
 0x933   : > { %v3117_v17 = vsub.f32 %v6477_v20, %v3103_v19 }
 0x934   : > { %v4603_v8 = vpop.eup %4602 }
 0x935   : > { %v4605_v18 = vpop.eup %4604  ;;  %v3129_v36 = vmul.f32 1.442695, %v3117_v17  ;;  %v3097_v11 = vpop.xlane.xlu2 %3096  ;;  %v3077_v49 = vmul.f32 %v4603_v8, %v4593_v45  ;;  %4293 = vmatmul.msk.f32.gmra.mxu1 %vm1363_vm6, %v4652_v21 }
 0x936   : > { %v3115_v43 = vsub.f32 %v6481_v42, %v3097_v11  ;;  %v3140_v0 = vsel %vm1661_vm2, %v4605_v18, 0.0 }
 0x937   : > { %4606 = vpow2.f32 %v3129_v36  ;;  %3141 = vadd.xlane.f32.xlu0 %v3140_v0  ;;  %3192 = vmatpush.msrb.mxu2 %v3077_v49 }
 0x938   : > { %v3125_v14 = vmul.f32 1.442695, %v3115_v43  ;;  %4275 = vmatmul.msk.f32.vlgmr.msrb.gmra.mxu2 %vm1363_vm6, %v6237_v33 }
 0x939   : > { %4309 = vmatpush.msk.msra.mxu2 %vm1837_vm8, %v4653_v28 }
 0x93a   : > { %4608 = vpow2.f32 %v3125_v14 }
 0x93d   : > { %v6527_v45 = vpop.eup %4606  ;;  %v3106_v58 = vpop.xlane.xlu2 %3105  ;;  %4294 = vmatmul.msk.f32.gmra.mxu1 %vm1363_vm6, %v4654_v2 }
 0x93e   : > { %v3118_v46 = vsub.f32 %v6492_v44, %v3106_v58  ;;  %v3149_v60 = vsel %vm1661_vm2, %v6527_v45, 0.0 }
 0x93f   : > { %3150 = vadd.xlane.f32.xlu0 %v3149_v60 }
 0x940   : > { %v4609_v33 = vpop.eup %4608  ;;  %v3131_v56 = vmul.f32 1.442695, %v3118_v46  ;;  %4276 = vmatmul.msk.f32.gmra.mxu2 %vm1363_vm6, %v6258_v13 }
 0x941   : > { %v3143_v29 = vsel %vm1661_vm2, %v4609_v33, 0.0 }
 0x942   : > { %4610 = vpow2.f32 %v3131_v56  ;;  %3144 = vadd.xlane.f32.xlu1 %v3143_v29 }
 0x945   : > { %v3112_v40 = vpop.xlane.xlu2 %3111  ;;  %4295 = vmatmul.msk.f32.gmra.mxu1 %vm1363_vm6, %v4655_v1 }
 0x946   : > { %v3120_v52 = vsub.f32 %v6502_v24, %v3112_v40 }
 0x948   : > { %v6538_v61 = vpop.eup %4610  ;;  %v3135_v16 = vmul.f32 1.442695, %v3120_v52  ;;  %4277 = vmatmul.msk.f32.gmra.mxu2 %vm1363_vm6, %v6271_v39  ;;  %v6874_v39 = vld [vmem:[#allocation31_spill] sm:$0xff] }
 0x949   : > { %v3152_v35 = vsel %vm1661_vm2, %v6538_v61, 0.0 }
 0x94a   : > { %4612 = vpow2.f32 %v3135_v16  ;;  %3153 = vadd.xlane.f32.xlu1 %v3152_v35 }
 0x94d   : > { %4296 = vmatmul.msk.f32.gmra.mxu1 %vm1363_vm6, %v6278_v62  ;;  %v3139_v62 = vpop.xlane.xlu1 %3138  ;;  %v3148_v38 = vpop.xlane.xlu2 %3147 }
 0x94e   : > { %4614 = vrcp.f32 %v3139_v62 }
 0x950   : > { %v6546_v13 = vpop.eup %4612  ;;  %4278 = vmatmul.msk.f32.gmra.mxu2 %vm1363_vm6, %v6286_v34  ;;  %v6875_v34 = vld [vmem:[#allocation32_spill] sm:$0xff] }
 0x951   : > { %v3158_v53 = vsel %vm1661_vm2, %v6546_v13, 0.0 }
 0x952   : > { %3159 = vadd.xlane.f32.xlu0 %v3158_v53 }
 0x955   : > { %4297 = vmatmul.msk.f32.gmra.mxu1 %vm1363_vm6, %v6292_v12  ;;  %v4615_v12 = vpop.eup %4614  ;;  %v3157_v14 = vpop.xlane.xlu2 %3156 }
 0x958   : > { %4279 = vmatmul.msk.f32.gmra.mxu2 %vm1363_vm6, %v6296_v26  ;;  %v3169_v26 = vmul.f32 %v4615_v12, %v6488_v5 }
 0x95d   : > { %4298 = vmatmul.msk.f32.gmra.mxu1 %vm1363_vm6, %v6300_v30 }
 0x960   : > { %4280 = vmatmul.msk.f32.gmra.mxu2 %vm1363_vm6, %v6304_v37 }
 0x965   : > { %4299 = vmatmul.msk.f32.gmra.mxu1 %vm1363_vm6, %v6308_v4 }
 0x968   : > { %4281 = vmatmul.msk.f32.gmra.mxu2 %vm1363_vm6, %v6874_v39 }
 0x970   : > { %4282 = vmatmul.msk.f32.gmra.mxu2 %vm1363_vm6, %v6875_v34 }
 0x978   : > { %4310 = vmatmul.msk.f32.vlgmr.msra.gmra.mxu2 %vm1661_vm2, %v3169_v26 }
 0x9aa   : > { %v3300_v30 = vpop.f32.mrf.mxu1  ;;  %v3142_v48 = vpop.xlane.xlu0 %3141 }
 0x9ab   : > { %4616 = vrcp.f32 %v3142_v48  ;;  %4301 = vmatmul.msk.f32.vlgmr.msrb.gmra.mxu0 %vm1661_vm2, %v3300_v30 }
 0x9b1   : > { %v4617_v37 = vpop.eup %4616 }
 0x9b2   : > { %v3170_v4 = vmul.f32 %v4617_v37, %v4605_v18  ;;  %v3303_v59 = vpop.f32.mrf.mxu1  ;;  %v3151_v19 = vpop.xlane.xlu0 %3150 }
 0x9b3   : > { %4302 = vmatmul.msk.f32.gmra.mxu0 %vm1661_vm2, %v3303_v59 }
 0x9b4   : > { %4311 = vmatmul.msk.f32.gmra.mxu2 %vm1661_vm2, %v3170_v4 }
 0x9b5   : > { %v3145_v55 = vpop.xlane.xlu1 %3144 }
 0x9b6   : > { %4618 = vrcp.f32 %v3145_v55 }
 0x9b7   : > { %4620 = vrcp.f32 %v3148_v38 }
 0x9b8   : > { %4622 = vrcp.f32 %v3151_v19 }
 0x9ba   : > { %v3306_v23 = vpop.f32.mrf.mxu1 }
 0x9bb   : > { %v3194_v63 = vpop.f32.mrf.mxu2  ;;  %4303 = vmatmul.msk.f32.gmra.mxu0 %vm1661_vm2, %v3306_v23 }
 0x9bc   : > { %v4619_v5 = vpop.eup %4618  ;;  %4284 = vmatmul.msk.f32.vlgmr.msra.gmra.mxu3 %vm1661_vm2, %v3194_v63 }
 0x9bd   : > { %v3171_v27 = vmul.f32 %v4619_v5, %v4609_v33  ;;  %v4621_v17 = vpop.eup %4620  ;;  %v3154_v11 = vpop.xlane.xlu1 %3153 }
 0x9be   : > { %v3172_v36 = vmul.f32 %v4621_v17, %v6507_v50  ;;  %v4623_v49 = vpop.eup %4622  ;;  %4624 = vrcp.f32 %v3154_v11 }
 0x9bf   : > { %4312 = vmatmul.msk.f32.gmra.mxu2 %vm1661_vm2, %v3171_v27  ;;  %v3173_v0 = vmul.f32 %v4623_v49, %v6527_v45  ;;  %4626 = vrcp.f32 %v3157_v14 }
 0x9c2   : > { %v3309_v8 = vpop.f32.mrf.mxu1 }
 0x9c3   : > { %v3197_v18 = vpop.f32.mrf.mxu2  ;;  %4304 = vmatmul.msk.f32.gmra.mxu0 %vm1661_vm2, %v3309_v8 }
 0x9c4   : > { %4285 = vmatmul.msk.f32.gmra.mxu3 %vm1661_vm2, %v3197_v18  ;;  %v4625_v28 = vpop.eup %4624 }
 0x9c5   : > { %v3174_v50 = vmul.f32 %v4625_v28, %v6538_v61  ;;  %v3160_v46 = vpop.xlane.xlu0 %3159  ;;  %v4627_v60 = vpop.eup %4626 }
 0x9c6   : > { %4628 = vrcp.f32 %v3160_v46  ;;  %v3175_v45 = vmul.f32 %v4627_v60, %v6511_v22 }
 0x9c7   : > { %4313 = vmatmul.msk.f32.gmra.mxu2 %vm1661_vm2, %v3172_v36 }
 0x9ca   : > { %v3312_v21 = vpop.f32.mrf.mxu1 }
 0x9cb   : > { %v3200_v43 = vpop.f32.mrf.mxu2  ;;  %4305 = vmatmul.msk.f32.gmra.mxu0 %vm1661_vm2, %v3312_v21 }
 0x9cc   : > { %4286 = vmatmul.msk.f32.gmra.mxu3 %vm1661_vm2, %v3200_v43  ;;  %v4629_v29 = vpop.eup %4628 }
 0x9cd   : > { %v3176_v52 = vmul.f32 %v4629_v29, %v6546_v13 }
 0x9cf   : > { %4314 = vmatmul.msk.f32.gmra.mxu2 %vm1661_vm2, %v3173_v0 }
 0x9d2   : > { %v3315_v58 = vpop.f32.mrf.mxu1 }
 0x9d3   : > { %v3203_v2 = vpop.f32.mrf.mxu2  ;;  %4306 = vmatmul.msk.f32.gmra.mxu0 %vm1661_vm2, %v3315_v58 }
 0x9d4   : > { %4287 = vmatmul.msk.f32.gmra.mxu3 %vm1661_vm2, %v3203_v2 }
 0x9d7   : > { %4315 = vmatmul.msk.f32.gmra.mxu2 %vm1661_vm2, %v3174_v50 }
 0x9da   : > { %v3318_v33 = vpop.f32.mrf.mxu1 }
 0x9db   : > { %v3206_v56 = vpop.f32.mrf.mxu2  ;;  %4307 = vmatmul.msk.f32.gmra.mxu0 %vm1661_vm2, %v3318_v33 }
 0x9dc   : > { %4288 = vmatmul.msk.f32.gmra.mxu3 %vm1661_vm2, %v3206_v56 }
 0x9df   : > { %4316 = vmatmul.msk.f32.gmra.mxu2 %vm1661_vm2, %v3175_v45 }
 0x9e2   : > { %v3321_v40 = vpop.f32.mrf.mxu1 }
 0x9e3   : > { %v3209_v1 = vpop.f32.mrf.mxu2  ;;  %4308 = vmatmul.msk.f32.gmra.mxu0 %vm1661_vm2, %v3321_v40 }
 0x9e4   : > { %4289 = vmatmul.msk.f32.gmra.mxu3 %vm1661_vm2, %v3209_v1 }
 0x9e7   : > { %4317 = vmatmul.msk.f32.gmra.mxu2 %vm1661_vm2, %v3176_v52 }
 0x9eb   : > { %v3212_v61 = vpop.f32.mrf.mxu2 }
 0x9ec   : > { %4290 = vmatmul.msk.f32.gmra.mxu3 %vm1661_vm2, %v3212_v61 }
 0x9f3   : > { %v3215_v16 = vpop.f32.mrf.mxu2 }
 0x9f4   : > { %4291 = vmatmul.msk.f32.gmra.mxu3 %vm1661_vm2, %v3215_v16 }
 0x9fb   : > { %v3430_v22 = vpop.f32.mrf.mxu2 }
 0x9fc   : > { %v3454_v35 = vmul.f32 %v3430_v22, %v5937_v47 }
 0xa28   : > { %v3365_v53 = vpop.f32.mrf.mxu0 }
 0xa29   : > { %v3462_v39 = vmul.f32 %v3454_v35, %v3365_v53 }
 0xa2b   : > { %4318 = vmatmul.msk.f32.vlgmr.msrb.gmra.mxu3 %vm2099_vm9, %v3462_v39 }
 0xa30   : > { %v3368_v62 = vpop.f32.mrf.mxu0 }
 0xa37   : > { %v3433_v34 = vpop.f32.mrf.mxu2 }
 0xa38   : > { %v3455_v12 = vmul.f32 %v3433_v34, %v5949_v9  ;;  %v3371_v13 = vpop.f32.mrf.mxu0 }
 0xa3a   : > { %v3463_v26 = vmul.f32 %v3455_v12, %v3368_v62 }
 0xa3c   : > { %4319 = vmatmul.msk.f32.gmra.mxu3 %vm2099_vm9, %v3463_v26 }
 0xa3f   : > { %v3259_v30 = vpop.f32.mrf.mxu3 }
 0xa40   : > { %v3555_v48 = vmul.f32 %v3454_v35, %v3259_v30  ;;  %v6600_v37 = vmul.f32 %v3365_v53, %v3259_v30  ;;  %v3374_v59 = vpop.f32.mrf.mxu0 }
 0xa42   : > { %v3436_v4 = vpop.f32.mrf.mxu2  ;;  %4327 = vmatmul.msk.f32.vlgmr.msra.gmra.mxu0 %vm2099_vm9, %v3555_v48 }
 0xa43   : > { %v3456_v55 = vmul.f32 %v3436_v4, %v5961_v10 }
 0xa45   : > { %v3464_v38 = vmul.f32 %v3456_v55, %v3371_v13 }
 0xa47   : > { %v3262_v23 = vpop.f32.mrf.mxu3  ;;  %4320 = vmatmul.msk.f32.gmra.mxu3 %vm2099_vm9, %v3464_v38 }
 0xa48   : > { %v3556_v63 = vmul.f32 %v3455_v12, %v3262_v23  ;;  %v6605_v5 = vmul.f32 %v3368_v62, %v3262_v23  ;;  %v3377_v17 = vpop.f32.mrf.mxu0 }
 0xa4a   : > { %v3439_v27 = vpop.f32.mrf.mxu2  ;;  %4328 = vmatmul.msk.f32.gmra.mxu0 %vm2099_vm9, %v3556_v63 }
 0xa4b   : > { %v3457_v19 = vmul.f32 %v3439_v27, %v5973_v41 }
 0xa4d   : > { %v3465_v8 = vmul.f32 %v3457_v19, %v3374_v59 }
 0xa4f   : > { %v3265_v18 = vpop.f32.mrf.mxu3  ;;  %4321 = vmatmul.msk.f32.gmra.mxu3 %vm2099_vm9, %v3465_v8 }
 0xa50   : > { %v3557_v36 = vmul.f32 %v3456_v55, %v3265_v18  ;;  %v6610_v11 = vmul.f32 %v3371_v13, %v3265_v18  ;;  %v3380_v0 = vpop.f32.mrf.mxu0 }
 0xa52   : > { %v3442_v49 = vpop.f32.mrf.mxu2  ;;  %4329 = vmatmul.msk.f32.gmra.mxu0 %vm2099_vm9, %v3557_v36 }
 0xa53   : > { %v3458_v21 = vmul.f32 %v3442_v49, %v5985_v3 }
 0xa55   : > { %v3466_v43 = vmul.f32 %v3458_v21, %v3377_v17 }
 0xa57   : > { %v3268_v14 = vpop.f32.mrf.mxu3  ;;  %4322 = vmatmul.msk.f32.gmra.mxu3 %vm2099_vm9, %v3466_v43  ;;  %v4656_v43 = vld [vmem:[%s6859_s6] sm:$0xff] }
 0xa58   : > { %v3558_v28 = vmul.f32 %v3457_v19, %v3268_v14  ;;  %v6615_v58 = vmul.f32 %v3374_v59, %v3268_v14  ;;  %v3383_v45 = vpop.f32.mrf.mxu0  ;;  %v4658_v14 = vld [vmem:[%s6860_s0 + $0x30] sm:$0xff] }
 0xa5a   : > { %v3445_v2 = vpop.f32.mrf.mxu2  ;;  %4330 = vmatmul.msk.f32.gmra.mxu0 %vm2099_vm9, %v3558_v28  ;;  %v4659_v28 = vld [vmem:[%s6860_s0 + $0x28] sm:$0xff] }
 0xa5b   : > { %v3459_v50 = vmul.f32 %v3445_v2, %v5998_v31  ;;  %v4660_v2 = vld [vmem:[%s6858_s25] sm:$0xff] }
 0xa5d   : > { %v3467_v46 = vmul.f32 %v3459_v50, %v3380_v0 }
 0xa5f   : > { %v3271_v60 = vpop.f32.mrf.mxu3  ;;  %4323 = vmatmul.msk.f32.gmra.mxu3 %vm2099_vm9, %v3467_v46  ;;  %v4662_v46 = vld [vmem:[%s6860_s0 + $0x18] sm:$0xff] }
 0xa60   : > { %v3559_v33 = vmul.f32 %v3458_v21, %v3271_v60  ;;  %v6620_v56 = vmul.f32 %v3377_v17, %v3271_v60  ;;  %v6628_v35 = vpop.f32.mrf.mxu0  ;;  %v4663_v60 = vld [vmem:[%s6860_s0 + $0x10] sm:$0xff] }
 0xa62   : > { %v3448_v29 = vpop.f32.mrf.mxu2  ;;  %4331 = vmatmul.msk.f32.gmra.mxu0 %vm2099_vm9, %v3559_v33  ;;  %v4664_v33 = vld [vmem:[%s6860_s0 + $0x8] sm:$0xff] }
 0xa63   : > { %v3460_v40 = vmul.f32 %v3448_v29, %v6007_v54  ;;  %v4665_v29 = vld [vmem:[%s6860_s0] sm:$0xff] }
 0xa65   : > { %v3468_v1 = vmul.f32 %v3460_v40, %v3383_v45 }
 0xa67   : > { %v3274_v52 = vpop.f32.mrf.mxu3  ;;  %4324 = vmatmul.msk.f32.gmra.mxu3 %vm2099_vm9, %v3468_v1  ;;  %v3658_v1 = vmul.f32 %v6610_v11, %v5961_v10 }
 0xa68   : > { %v3560_v61 = vmul.f32 %v3459_v50, %v3274_v52  ;;  %v6625_v16 = vmul.f32 %v3380_v0, %v3274_v52  ;;  %v4657_v0 = vld [vmem:[%s6860_s0 + $0x38] sm:$0xff]  ;;  %v4661_v50 = vld [vmem:[%s6860_s0 + $0x20] sm:$0xff] }
 0xa6a   : > { %v3451_v22 = vpop.f32.mrf.mxu2  ;;  %4332 = vmatmul.msk.f32.gmra.mxu0 %vm2099_vm9, %v3560_v61 }
 0xa6b   : > { %v3461_v53 = vmul.f32 %v3451_v22, %v6020_v32 }
 0xa6d   : > { %v3469_v39 = vmul.f32 %v3461_v53, %v6628_v35 }
 0xa6f   : > { %v3277_v62 = vpop.f32.mrf.mxu3  ;;  %4325 = vmatmul.msk.f32.gmra.mxu3 %vm2099_vm9, %v3469_v39 }
 0xa70   : > { %v3561_v34 = vmul.f32 %v3460_v40, %v3277_v62  ;;  %v6633_v12 = vmul.f32 %v3383_v45, %v3277_v62  ;;  %v3656_v45 = vmul.f32 %v6600_v37, %v5937_v47  ;;  %v3657_v40 = vmul.f32 %v6605_v5, %v5949_v9 }
 0xa71   : > { %v3659_v47 = vmul.f32 %v6615_v58, %v5973_v41  ;;  %v3660_v37 = vmul.f32 %v6620_v56, %v5985_v3  ;;  %v3661_v9 = vmul.f32 %v6625_v16, %v5998_v31 }
 0xa72   : > { %4333 = vmatmul.msk.f32.gmra.mxu0 %vm2099_vm9, %v3561_v34  ;;  %v3662_v10 = vmul.f32 %v6633_v12, %v6007_v54 }
 0xa77   : > { %v6636_v13 = vpop.f32.mrf.mxu3 }
 0xa78   : > { %v3562_v26 = vmul.f32 %v3461_v53, %v6636_v13  ;;  %v3655_v41 = vmul.f32 %v6628_v35, %v6636_v13 }
 0xa7a   : > { %4334 = vmatmul.msk.f32.gmra.mxu0 %vm2099_vm9, %v3562_v26  ;;  %v3663_v5 = vmul.f32 %v3655_v41, %v6020_v32 }
 0xaae   : > { %v3511_v30 = vpop.f32.mrf.mxu3 }
 0xabf   : > { %v3604_v48 = vpop.f32.mrf.mxu0  ;;  %v3514_v4 = vpop.f32.mrf.mxu3 }
 0xac7   : > { %v3607_v59 = vpop.f32.mrf.mxu0 }
 0xaca   : > { %v3517_v55 = vpop.f32.mrf.mxu3 }
 0xacf   : > { %v3610_v38 = vpop.f32.mrf.mxu0 }
 0xad2   : > { %v3520_v23 = vpop.f32.mrf.mxu3 }
 0xad7   : > { %v3613_v63 = vpop.f32.mrf.mxu0 }
 0xada   : > { %v3523_v27 = vpop.f32.mrf.mxu3 }
 0xadf   : > { %v3616_v19 = vpop.f32.mrf.mxu0 }
 0xae2   : > { %v3526_v17 = vpop.f32.mrf.mxu3 }
 0xae7   : > { %v3619_v8 = vpop.f32.mrf.mxu0 }
 0xaea   : > { %v3529_v18 = vpop.f32.mrf.mxu3 }
 0xaef   : > { %v3622_v36 = vpop.f32.mrf.mxu0 }
 0xaf2   : > { %v3532_v49 = vpop.f32.mrf.mxu3 }
 0xaf3   : > { %3543 = vmatpush.msra.mxu1 %v3532_v49 }
 0xaf5   : > { %3544 = vmatpush.msra.mxu1 %v3529_v18 }
 0xaf7   : > { %3545 = vmatpush.msra.mxu1 %v3526_v17  ;;  %v3625_v21 = vpop.f32.mrf.mxu0 }
 0xaf8   : > { %3636 = vmatpush.msrb.mxu2 %v3625_v21 }
 0xaf9   : > { %3546 = vmatpush.msra.mxu1 %v3523_v27 }
 0xafa   : > { %3637 = vmatpush.msrb.mxu2 %v3622_v36 }
 0xafb   : > { %3547 = vmatpush.msra.mxu1 %v3520_v23 }
 0xafc   : > { %3638 = vmatpush.msrb.mxu2 %v3619_v8 }
 0xafd   : > { %3548 = vmatpush.msra.mxu1 %v3517_v55 }
 0xafe   : > { %3639 = vmatpush.msrb.mxu2 %v3616_v19 }
 0xaff   : > { %3549 = vmatpush.msra.mxu1 %v3514_v4 }
 0xb00   : > { %3640 = vmatpush.msrb.mxu2 %v3613_v63 }
 0xb01   : > { %3550 = vmatpush.msra.mxu1 %v3511_v30 }
 0xb02   : > { %4326 = vmatmul.msk.f32.vlgmr.msra.gmra.mxu1 %vm2099_vm9, %v4656_v43  ;;  %3641 = vmatpush.msrb.mxu2 %v3610_v38 }
 0xb03   : > { %3696 = vmatpush.msrb.mxu1 %v4657_v0 }
 0xb04   : > { %3642 = vmatpush.msrb.mxu2 %v3607_v59 }
 0xb05   : > { %3697 = vmatpush.msrb.mxu1 %v4658_v14 }
 0xb06   : > { %3643 = vmatpush.msrb.mxu2 %v3604_v48 }
 0xb07   : > { %3698 = vmatpush.msrb.mxu1 %v4659_v28  ;;  %4335 = vmatmul.msk.f32.vlgmr.msrb.gmra.mxu2 %vm2099_vm9, %v4660_v2 }
 0xb09   : > { %3699 = vmatpush.msrb.mxu1 %v4661_v50 }
 0xb0b   : > { %3700 = vmatpush.msrb.mxu1 %v4662_v46 }
 0xb0d   : > { %3701 = vmatpush.msrb.mxu1 %v4663_v60 }
 0xb0f   : > { %3702 = vmatpush.msrb.mxu1 %v4664_v33 }
 0xb11   : > { %3703 = vmatpush.msrb.mxu1 %v4665_v29 }
 0xb12   : > { %4336 = vmatmul.msk.f32.vlgmr.msrb.gmra.mxu1 %vm2099_vm9, %v3656_v45 }
 0xb1a   : > { %4337 = vmatmul.msk.f32.gmra.mxu1 %vm2099_vm9, %v3657_v40 }
 0xb22   : > { %4338 = vmatmul.msk.f32.gmra.mxu1 %vm2099_vm9, %v3658_v1 }
 0xb2a   : > { %4339 = vmatmul.msk.f32.gmra.mxu1 %vm2099_vm9, %v3659_v47 }
 0xb32   : > { %4340 = vmatmul.msk.f32.gmra.mxu1 %vm2099_vm9, %v3660_v37 }
 0xb3a   : > { %4341 = vmatmul.msk.f32.gmra.mxu1 %vm2099_vm9, %v3661_v9 }
 0xb42   : > { %4342 = vmatmul.msk.f32.gmra.mxu1 %vm2099_vm9, %v3662_v10 }
 0xb4a   : > { %4343 = vmatmul.msk.f32.gmra.mxu1 %vm2099_vm9, %v3663_v5 }
 0xb7f   : > { %v3552_v3 = vpop.f32.mrf.mxu1 }
 0xb80   : > { %v3729_v31 = vadd.f32 %v3552_v3, %v6436_v6 }
 0xb82   : > { %3739 = vst.msk [vmem:[%s1181_s8] sm:$0xff] %vm1661_vm2, %v3729_v31 }
 0xb8a   : > { %v3645_v54 = vpop.f32.mrf.mxu2 }
 0xb8b   : > { %v3730_v11 = vadd.f32 %v3645_v54, %v6429_v57 }
 0xb8d   : > { %3740 = vst.msk [vmem:[%s1185_s26] sm:$0xff] %vm1661_vm2, %v3730_v11 }
 0xb8f   : > { %v3705_v32 = vpop.f32.mrf.mxu1 }
 0xb90   : > { %v3731_v58 = vadd.f32 %v3705_v32, %v6443_v51 }
 0xb92   : > { %3741 = vst.msk [vmem:[%s1190_s3] sm:$0xff] %vm1661_vm2, %v3731_v58 }
 0xb97   : > { %v3708_v6 = vpop.f32.mrf.mxu1 }
 0xb98   : > { %v3732_v56 = vadd.f32 %v3708_v6, %v6467_v25 }
 0xb9a   : > { %3742 = vst.msk [vmem:[%s1190_s3 + $0x8] sm:$0xff] %vm1661_vm2, %v3732_v56 }
 0xb9f   : > { %v3711_v52 = vpop.f32.mrf.mxu1 }
 0xba0   : > { %v3733_v61 = vadd.f32 %v3711_v52, %v6481_v42 }
 0xba2   : > { %3743 = vst.msk [vmem:[%s1190_s3 + $0x10] sm:$0xff] %vm1661_vm2, %v3733_v61 }
 0xba7   : > { %v3714_v57 = vpop.f32.mrf.mxu1 }
 0xba8   : > { %v3734_v16 = vadd.f32 %v3714_v57, %v6450_v15 }
 0xbaa   : > { %3744 = vst.msk [vmem:[%s1190_s3 + $0x18] sm:$0xff] %vm1661_vm2, %v3734_v16 }
 0xbaf   : > { %v3717_v22 = vpop.f32.mrf.mxu1 }
 0xbb0   : > { %v3735_v51 = vadd.f32 %v3717_v22, %v6477_v20 }
 0xbb2   : > { %3745 = vst.msk [vmem:[%s1190_s3 + $0x20] sm:$0xff] %vm1661_vm2, %v3735_v51 }
 0xbb7   : > { %v3720_v35 = vpop.f32.mrf.mxu1 }
 0xbb8   : > { %v3736_v25 = vadd.f32 %v3720_v35, %v6492_v44 }
 0xbba   : > { %3746 = vst.msk [vmem:[%s1190_s3 + $0x28] sm:$0xff] %vm1661_vm2, %v3736_v25 }
 0xbbf   : > { %v3723_v53 = vpop.f32.mrf.mxu1 }
 0xbc0   : > { %v3737_v42 = vadd.f32 %v3723_v53, %v6457_v7 }
 0xbc2   : > { %3747 = vst.msk [vmem:[%s1190_s3 + $0x30] sm:$0xff] %vm1661_vm2, %v3737_v42 }
 0xbc7   : > { %v3726_v39 = vpop.f32.mrf.mxu1 }
 0xbc8   : > { %v3738_v15 = vadd.f32 %v3726_v39, %v6502_v24 }
 0xbca   : > { %3748 = vst.msk [vmem:[%s1190_s3 + $0x38] sm:$0xff] %vm1661_vm2, %v3738_v15 }
 0xbcb PF: > { %p47_p1 = scmp.ge.s32.totalorder %s5352_s18, 4   ;;  %s6879_s8 = smov %s5080_s5 }
 0xbcc   : > { %s6880_s5 = smov %s5084_s9  ;;  %s6881_s9 = smov %s5364_s27 }
 0xbcd   : > { %s6882_s30 = smov %s5352_s18  ;;  %49 = sbr.rel (!%p47_p1) target bundleno = 36 (0x24), region = 259 }
 0xbd2   :  { %3798 = vsyncpa [#allocation3], 1 }
 0xbd3   :  { %3800 = vsyncpa [#allocation3 + $0x1], 1 }
 0xbd4   :  { %3801 = vsyncpa [#allocation5], 1 }
 0xbd5   :  { %3803 = vsyncpa [#allocation5 + $0x1], 1 }
 0xbd6   :  { %3804 = vsyncpa [#allocation8], 1 }
 0xbd7   :  { %3805 = vsyncpa [#allocation11], 1 }
 0xbd8   :  { %3806 = vsyncpa [#allocation14], 1 }
 0xbd9   :  { %3807 = vsyncpa [#allocation17], 1 }
 0xbda   :  { %3808 = vsyncpa [#allocation20], 1 }

</bundles_post_ra>
